<compile_context>
chip_gen: v6e
topology: v6e:2x2x1
jax: 0.10.0
libtpu: 0.0.40
codegen_flags: <defaults>
</compile_context>

<pallas_src>
import functools
import math

import jax
import jax.numpy as jnp
from jax.experimental import pallas as pl
from jax.experimental.pallas import tpu as pltpu

DIMENSION = 2   # overdamped-particle state dimension (module-level constant in the original script)
HID = 8

# softplus(SOFTPLUS_INV_ONE) == 1.0 : bias of the "ones producer" rows.
SOFTPLUS_INV_ONE = math.log(math.e - 1.0)

# Original torch layers: (name, in_features, out_features, has_bias)
TORCH_LAYERS = [
    ("x_input_layer",                   DIMENSION, HID, True),
    ("x_prop_layer1",                   HID, HID, True),
    ("x_prop_layer2",                   HID, HID, True),
    ("x_lateral_layer_1",               DIMENSION, HID, True),
    ("x_lateral_layer_2",               HID, HID, True),
    ("x_lateral_layer_3",               HID, HID, True),
    ("x_lateral_layer_out",             HID, 1, True),
    ("conjugate_prop_layer_1",          HID, HID, False),
    ("conjugate_prop_layer_2",          HID, HID, False),
    ("conjugate_prop_layer_out",        HID, 1, False),
    ("conjugate_prop_layer_1_mid",      HID, HID, True),
    ("conjugate_prop_layer_2_mid",      HID, HID, True),
    ("conjugate_prop_layer_out_mid",    HID, HID, True),
    ("conjugate_lateral_layer_in",      DIMENSION, HID, False),
    ("conjugate_lateral_layer_1",       DIMENSION, HID, False),
    ("conjugate_lateral_layer_2",       DIMENSION, HID, False),
    ("conjugate_lateral_layer_out",     DIMENSION, 1, False),
    ("conjugate_lateral_layer_in_mid",  DIMENSION, DIMENSION, True),
    ("conjugate_lateral_layer_1_mid",   HID, DIMENSION, True),
    ("conjugate_lateral_layer_2_mid",   HID, DIMENSION, True),
    ("conjugate_lateral_layer_out_mid", HID, DIMENSION, True),
]

# ---- slab layout --------------------------------------------------------------
# Sub-row offsets inside each fused block (all 8-aligned so every value slice of
# the matmul output starts on a sublane-tile boundary -> no cross-sublane relayout).
A_XIN, A_ONE, A_CLMID, A_LAT = 0, 8, 16, 24                      # block "A": 32 rows, K = DIMENSION+1
S_CPMID, S_XPROP, S_ONE, S_CLMID, S_LAT = 0, 8, 16, 24, 32       # blocks "B"/"C": 40 rows, K = HID+1
D_CPMID, D_CLMID, D_LAT = 0, 8, 16                               # block "D": 24 rows, K = HID+1

# name -> (row offset in slab, rows, cols).  Fused blocks include a bias column.
SLAB_BLOCKS = {
    "A":     (0,   32, DIMENSION + 1),
    "B":     (32,  40, HID + 1),
    "C":     (72,  40, HID + 1),
    "D":     (112, 24, HID + 1),
    "Cin":   (136, 8, DIMENSION),
    "Cp1":   (144, 8, HID),
    "Cl1":   (152, 8, DIMENSION),
    "Cp2":   (160, 8, HID),
    "Cl2":   (168, 8, DIMENSION),
    "Cpout": (176, 8, HID),        # only row 0 holds the real (1, 8) layer
    "Clout": (184, 8, DIMENSION),  # only row 0 holds the real (1, 2) layer
}
SLAB_ROWS = 192
SLAB_COLS = 128   # one vreg wide; 96 KiB total, trivially VMEM-resident


def softplus(x):
    # torch.nn.Softplus (beta=1, threshold=20).  Forward-only: the untaken exp()
    # branch may overflow to +inf, which the where() discards (would NaN a VJP).
    return jnp.where(x > 20.0, x, jnp.log1p(jnp.exp(x)))


def _cdiv(a, b):
    return -(-a // b)


def _round_up(a, m):
    return _cdiv(a, m) * m


# ---- kernel --------------------------------------------------------------------

def picnn_kernel(slab_ref, x0a_ref, x0s_ref, out_ref, *, precision):
    """One batch tile; activations are (features, tb) with the batch on lanes."""

    def mm(name, x):
        r0, nrows, ncols = SLAB_BLOCKS[name]
        # Static Ref slice: only the block actually needed is loaded, right
        # before its dot (keeps vreg pressure low vs. materializing the slab).
        w = slab_ref[r0:r0 + nrows, 0:ncols]
        return jnp.dot(w, x, preferred_element_type=jnp.float32, precision=precision)

    sp = softplus
    H, D = HID, DIMENSION

    x0a = x0a_ref[...]            # (D+1, tb): rows [x0 ; 1]
    x0s = x0s_ref[...]            # (D, tb)

    # TODO(synk): torch's forward mutates conjugate_prop_layer_{1,2,out}.weight via
    # enforce_pos(abs) AFTER each layer has been used, so it does not change a single
    # forward call's value; that cross-call side effect is not reproduced here.

    # ---- stage A: everything that reads x0, one matmul (biases folded via the ones row)
    a = mm("A", x0a)                                          # (32, tb)
    x_aug = sp(a[A_XIN:A_XIN + H + 1, :])                     # [softplus(x_input(x0)) ; 1]
    y = x0s * a[A_CLMID:A_CLMID + D, :]
    x_star = sp(a[A_LAT:A_LAT + H, :] + mm("Cin", y))

    # ---- stage B
    b = mm("B", x_aug)                                        # (40, tb)
    z = x_star * sp(b[S_CPMID:S_CPMID + H, :])
    y = x0s * b[S_CLMID:S_CLMID + D, :]
    x_star = sp(b[S_LAT:S_LAT + H, :] + mm("Cp1", z) + mm("Cl1", y))
    x_aug = sp(b[S_XPROP:S_XPROP + H + 1, :])                 # [softplus(x_prop1(x)) ; 1]

    # ---- stage C
    c = mm("C", x_aug)                                        # (40, tb)
    z = x_star * sp(c[S_CPMID:S_CPMID + H, :])
    y = x0s * c[S_CLMID:S_CLMID + D, :]
    x_star = sp(c[S_LAT:S_LAT + H, :] + mm("Cp2", z) + mm("Cl2", y))
    x_aug = sp(c[S_XPROP:S_XPROP + H + 1, :])                 # [softplus(x_prop2(x)) ; 1]

    # ---- stage D / output: lane-dense (1, tb) store
    d = mm("D", x_aug)                                        # (24, tb)
    z = x_star * sp(d[D_CPMID:D_CPMID + H, :])
    y = x0s * d[D_CLMID:D_CLMID + D, :]
    o8 = mm("Cpout", z) + mm("Clout", y)                      # (8, tb); only row 0 is real
    out_ref[...] = sp(d[D_LAT:D_LAT + 1, :] + o8[0:1, :])


# ---- wrapper ---------------------------------------------------------------------

def pack_slab(params):
    """Pack the 21 torch Linear layers into one (SLAB_ROWS, SLAB_COLS) f32 slab.

    Fused blocks keep each layer's weight in torch (out, in) orientation with its
    bias in the last column (it multiplies the '1' row of the augmented activation).
    The 'ones producer' rows have zero weights and bias softplus^-1(1) so the next
    stage's augmented input [x ; 1] falls straight out of the softplus."""
    slab = jnp.zeros((SLAB_ROWS, SLAB_COLS), jnp.float32)

    def put(block, sub_row, layer_name, fold_bias):
        nonlocal slab
        r0, _, ncols = SLAB_BLOCKS[block]
        w, b = params[layer_name]
        w = jnp.asarray(w, jnp.float32)
        nout, nin = w.shape
        r = r0 + sub_row
        slab = slab.at[r:r + nout, 0:nin].set(w)
        if fold_bias and b is not None:
            slab = slab.at[r:r + nout, ncols - 1].set(jnp.asarray(b, jnp.float32))

    def put_ones_producer(block, sub_row):
        nonlocal slab
        r0, _, ncols = SLAB_BLOCKS[block]
        slab = slab.at[r0 + sub_row, ncols - 1].set(SOFTPLUS_INV_ONE)

    put("A", A_XIN,   "x_input_layer", True)
    put("A", A_CLMID, "conjugate_lateral_layer_in_mid", True)
    put("A", A_LAT,   "x_lateral_layer_1", True)
    put_ones_producer("A", A_ONE)

    put("B", S_CPMID, "conjugate_prop_layer_1_mid", True)
    put("B", S_XPROP, "x_prop_layer1", True)
    put("B", S_CLMID, "conjugate_lateral_layer_1_mid", True)
    put("B", S_LAT,   "x_lateral_layer_2", True)
    put_ones_producer("B", S_ONE)

    put("C", S_CPMID, "conjugate_prop_layer_2_mid", True)
    put("C", S_XPROP, "x_prop_layer2", True)
    put("C", S_CLMID, "conjugate_lateral_layer_2_mid", True)
    put("C", S_LAT,   "x_lateral_layer_3", True)
    put_ones_producer("C", S_ONE)

    put("D", D_CPMID, "conjugate_prop_layer_out_mid", True)
    put("D", D_CLMID, "conjugate_lateral_layer_out_mid", True)
    put("D", D_LAT,   "x_lateral_layer_out", True)

    put("Cin",   0, "conjugate_lateral_layer_in", False)
    put("Cp1",   0, "conjugate_prop_layer_1", False)
    put("Cl1",   0, "conjugate_lateral_layer_1", False)
    put("Cp2",   0, "conjugate_prop_layer_2", False)
    put("Cl2",   0, "conjugate_lateral_layer_2", False)
    put("Cpout", 0, "conjugate_prop_layer_out", False)
    put("Clout", 0, "conjugate_lateral_layer_out", False)
    return slab


def dissipation_forward(x0, x0_star, slab, *, tb=None,
                        precision=jax.lax.Precision.HIGHEST):
    """PICNN forward.  x0, x0_star: (B, DIMENSION) -> (B, 1) float32."""
    B, D = x0.shape
    assert D == DIMENSION

    b128 = _round_up(max(B, 1), 128)
    if tb is None:
        # Balanced lane-dense tiles capped at 512 lanes (per-stage temporaries fit
        # in vregs; avoids spill-store pressure on v5e's single vst slot).  Split
        # into >=2 tiles only when there is more than one vreg-width of real work:
        # ~free on single-TC v5e/v6e, lets v7x's two TensorCores share the grid.
        n_tiles = _cdiv(b128, 512)
        if b128 > 128:
            n_tiles = max(n_tiles, 2)
        tb = _round_up(_cdiv(b128, n_tiles), 128)
    else:
        assert tb % 128 == 0
    n_tiles = _cdiv(b128, tb)
    b_pad = n_tiles * tb

    f32 = jnp.float32
    pad = b_pad - B
    # Batch on the lane axis; append the constant-ones row carrying stage-A biases.
    # Single transpose+pad (no zeros().at[].set() double materialization).
    x0a = jnp.pad(
        jnp.concatenate([x0.T.astype(f32), jnp.ones((1, B), f32)], axis=0),
        ((0, 0), (0, pad)))
    x0s_t = jnp.pad(x0_star.T.astype(f32), ((0, 0), (0, pad)))

    flops = 2 * sum(r * c for (_, r, c) in SLAB_BLOCKS.values()) * b_pad
    cost = pl.CostEstimate(
        flops=flops,
        transcendentals=152 * b_pad,                      # ~2 EUP ops per softplus'd row
        bytes_accessed=4 * (2 * DIMENSION + 2) * b_pad + 4 * SLAB_ROWS * SLAB_COLS,
    )

    out_t = pl.pallas_call(
        functools.partial(picnn_kernel, precision=precision),
        out_shape=jax.ShapeDtypeStruct((1, b_pad), f32),
        grid=(n_tiles,),
        in_specs=[
            pl.BlockSpec((SLAB_ROWS, SLAB_COLS), lambda i: (0, 0)),   # resident param slab
            pl.BlockSpec((DIMENSION + 1, tb), lambda i: (0, i)),
            pl.BlockSpec((DIMENSION, tb), lambda i: (0, i)),
        ],
        out_specs=pl.BlockSpec((1, tb), lambda i: (0, i)),
        # "parallel" lets the megacore split the batch axis; on v7x, if profiling
        # shows one TC idle, switch to pltpu.CORE_PARALLEL.
        compiler_params=pltpu.CompilerParams(dimension_semantics=("parallel",)),
        cost_estimate=cost,
    )(slab, x0a, x0s_t)

    return out_t[0, :B].reshape(B, 1)


# ---- reference & init --------------------------------------------------------------

def _forward_reference(params, x0, x0s):
    """Unfused pure-JAX reference in torch's (B, features) layout."""
    hp = jax.lax.Precision.HIGHEST

    def lin(name, x):
        w, b = params[name]
        y = jnp.dot(x, w.T, precision=hp)
        return y if b is None else y + b

    sp = softplus
    x_star = sp(lin("x_lateral_layer_1", x0)
                + lin("conjugate_lateral_layer_in",
                      x0s * lin("conjugate_lateral_layer_in_mid", x0)))
    x = sp(lin("x_input_layer", x0))
    x_star = sp(lin("x_lateral_layer_2", x)
                + lin("conjugate_prop_layer_1",
                      x_star * sp(lin("conjugate_prop_layer_1_mid", x)))
                + lin("conjugate_lateral_layer_1",
                      x0s * lin("conjugate_lateral_layer_1_mid", x)))
    x = sp(lin("x_prop_layer1", x))
    x_star = sp(lin("x_lateral_layer_3", x)
                + lin("conjugate_prop_layer_2",
                      x_star * sp(lin("conjugate_prop_layer_2_mid", x)))
                + lin("conjugate_lateral_layer_2",
                      x0s * lin("conjugate_lateral_layer_2_mid", x)))
    x = sp(lin("x_prop_layer2", x))
    out = sp(lin("x_lateral_layer_out", x)
             + lin("conjugate_prop_layer_out",
                   x_star * sp(lin("conjugate_prop_layer_out_mid", x)))
             + lin("conjugate_lateral_layer_out",
                   x0s * lin("conjugate_lateral_layer_out_mid", x)))
    return out


def init_params(key):
    """Deterministic init mirroring nn.Linear's uniform(-1/sqrt(fan_in), 1/sqrt(fan_in)).
    Weights in torch layout (out_features, in_features)."""
    params = {}
    for name, fin, fout, has_b in TORCH_LAYERS:
        key, kw, kb = jax.random.split(key, 3)
        bound = 1.0 / (fin ** 0.5)
        w = jax.random.uniform(kw, (fout, fin), jnp.float32, -bound, bound)
        b = jax.random.uniform(kb, (fout,), jnp.float32, -bound, bound) if has_b else None
        params[name] = (w, b)
    return params


if __name__ == "__main__":
    key = jax.random.PRNGKey(0)
    kx, ks, kp = jax.random.split(key, 3)
    B = 16
    x0 = jax.random.normal(kx, (B, DIMENSION), dtype=jnp.float32)
    x0_star = jax.random.normal(ks, (B, DIMENSION), dtype=jnp.float32)
    params = init_params(kp)
    slab = pack_slab(params)

    def run(prec):
        fwd = jax.jit(functools.partial(dissipation_forward, slab=slab, precision=prec))
        return jax.block_until_ready(fwd(x0, x0_star))

    try:
        out, tol = run(jax.lax.Precision.HIGHEST), 1e-3
    except Exception:
        # TODO(synk): fallback if this Mosaic build rejects HIGHEST matmul precision
        # in-kernel; default MXU precision may use bf16 passes, so loosen tolerance.
        out, tol = run(jax.lax.Precision.DEFAULT), 1e-2

    ref = _forward_reference(params, x0, x0_star)
    assert out.shape == (B, 1)
    max_err = float(jnp.max(jnp.abs(out - ref)))
    assert jnp.allclose(out, ref, atol=tol, rtol=tol), \
        f"Pallas kernel mismatch vs JAX reference (max abs err {max_err})"
    print("KERNEL_OK")
</pallas_src>

<mosaic_0001>
module attributes {stable_mosaic.version = 11 : i64} {
  func.func @picnn_kernel(%arg0: i32, %arg1: memref<192x128xf32, #tpu.memory_space<vmem>>, %arg2: memref<3x128xf32, #tpu.memory_space<vmem>>, %arg3: memref<2x128xf32, #tpu.memory_space<vmem>>, %arg4: memref<1x128xf32, #tpu.memory_space<vmem>>) attributes {dimension_semantics = [#tpu.dimension_semantics<parallel>], iteration_bounds = array<i64: 1>, scalar_prefetch = 0 : i64, scratch_operands = 0 : i64, tpu.core_type = #tpu.core_type<tc>, window_params = [{pipeline_mode = #tpu.pipeline_mode<synchronous>, transform_indices = @transform_0, window_bounds = array<i64: 192, 128>}, {transform_indices = @transform_1, window_bounds = array<i64: 3, 128>}, {transform_indices = @transform_2, window_bounds = array<i64: 2, 128>}, {transform_indices = @transform_3, window_bounds = array<i64: 1, 128>}]} {
    %c0 = arith.constant 0 : index
    %c0_0 = arith.constant 0 : index
    %0 = vector.load %arg2[%c0, %c0_0] : memref<3x128xf32, #tpu.memory_space<vmem>>, vector<3x128xf32>
    %c0_1 = arith.constant 0 : index
    %c0_2 = arith.constant 0 : index
    %1 = vector.load %arg3[%c0_1, %c0_2] : memref<2x128xf32, #tpu.memory_space<vmem>>, vector<2x128xf32>
    %c0_3 = arith.constant 0 : index
    %c0_4 = arith.constant 0 : index
    %2 = vector.load %arg1[%c0_3, %c0_4] : memref<192x128xf32, #tpu.memory_space<vmem>>, vector<32x3xf32>
    %cst = arith.constant dense<0.000000e+00> : vector<32x128xf32>
    %3 = tpu.matmul %2, %0, %cst {dimension_numbers = #tpu.dot_dimension_numbers<[1], [0], [0], [1], [0, 0, 1, 1], [], []>, precision = #tpu.contract_precision<fp32>} : vector<32x3xf32>, vector<3x128xf32>, vector<32x128xf32> -> vector<32x128xf32>
    %4 = vector.extract_strided_slice %3 {offsets = [0, 0], sizes = [9, 128], strides = [1, 1]} : vector<32x128xf32> to vector<9x128xf32>
    %cst_5 = arith.constant 2.000000e+01 : f32
    %5 = vector.broadcast %cst_5 : f32 to vector<9x128xf32>
    %6 = arith.cmpf ogt, %4, %5 : vector<9x128xf32>
    %7 = math.exp %4 : vector<9x128xf32>
    %8 = math.log1p %7 : vector<9x128xf32>
    %9 = arith.select %6, %4, %8 : vector<9x128xi1>, vector<9x128xf32>
    %10 = vector.extract_strided_slice %3 {offsets = [16, 0], sizes = [2, 128], strides = [1, 1]} : vector<32x128xf32> to vector<2x128xf32>
    %11 = arith.mulf %1, %10 : vector<2x128xf32>
    %12 = vector.extract_strided_slice %3 {offsets = [24, 0], sizes = [8, 128], strides = [1, 1]} : vector<32x128xf32> to vector<8x128xf32>
    %c136 = arith.constant 136 : index
    %c0_6 = arith.constant 0 : index
    %13 = vector.load %arg1[%c136, %c0_6] : memref<192x128xf32, #tpu.memory_space<vmem>>, vector<8x2xf32>
    %cst_7 = arith.constant dense<0.000000e+00> : vector<8x128xf32>
    %14 = tpu.matmul %13, %11, %cst_7 {dimension_numbers = #tpu.dot_dimension_numbers<[1], [0], [0], [1], [0, 0, 1, 1], [], []>, precision = #tpu.contract_precision<fp32>} : vector<8x2xf32>, vector<2x128xf32>, vector<8x128xf32> -> vector<8x128xf32>
    %15 = arith.addf %12, %14 : vector<8x128xf32>
    %cst_8 = arith.constant 2.000000e+01 : f32
    %16 = vector.broadcast %cst_8 : f32 to vector<8x128xf32>
    %17 = arith.cmpf ogt, %15, %16 : vector<8x128xf32>
    %18 = math.exp %15 : vector<8x128xf32>
    %19 = math.log1p %18 : vector<8x128xf32>
    %20 = arith.select %17, %15, %19 : vector<8x128xi1>, vector<8x128xf32>
    %c32 = arith.constant 32 : index
    %c0_9 = arith.constant 0 : index
    %21 = vector.load %arg1[%c32, %c0_9] : memref<192x128xf32, #tpu.memory_space<vmem>>, vector<40x9xf32>
    %cst_10 = arith.constant dense<0.000000e+00> : vector<40x128xf32>
    %22 = tpu.matmul %21, %9, %cst_10 {dimension_numbers = #tpu.dot_dimension_numbers<[1], [0], [0], [1], [0, 0, 1, 1], [], []>, precision = #tpu.contract_precision<fp32>} : vector<40x9xf32>, vector<9x128xf32>, vector<40x128xf32> -> vector<40x128xf32>
    %23 = vector.extract_strided_slice %22 {offsets = [0, 0], sizes = [8, 128], strides = [1, 1]} : vector<40x128xf32> to vector<8x128xf32>
    %cst_11 = arith.constant 2.000000e+01 : f32
    %24 = vector.broadcast %cst_11 : f32 to vector<8x128xf32>
    %25 = arith.cmpf ogt, %23, %24 : vector<8x128xf32>
    %26 = math.exp %23 : vector<8x128xf32>
    %27 = math.log1p %26 : vector<8x128xf32>
    %28 = arith.select %25, %23, %27 : vector<8x128xi1>, vector<8x128xf32>
    %29 = arith.mulf %20, %28 : vector<8x128xf32>
    %30 = vector.extract_strided_slice %22 {offsets = [24, 0], sizes = [2, 128], strides = [1, 1]} : vector<40x128xf32> to vector<2x128xf32>
    %31 = arith.mulf %1, %30 : vector<2x128xf32>
    %32 = vector.extract_strided_slice %22 {offsets = [32, 0], sizes = [8, 128], strides = [1, 1]} : vector<40x128xf32> to vector<8x128xf32>
    %c144 = arith.constant 144 : index
    %c0_12 = arith.constant 0 : index
    %33 = vector.load %arg1[%c144, %c0_12] : memref<192x128xf32, #tpu.memory_space<vmem>>, vector<8x8xf32>
    %cst_13 = arith.constant dense<0.000000e+00> : vector<8x128xf32>
    %34 = tpu.matmul %33, %29, %cst_13 {dimension_numbers = #tpu.dot_dimension_numbers<[1], [0], [0], [1], [0, 0, 1, 1], [], []>, precision = #tpu.contract_precision<fp32>} : vector<8x8xf32>, vector<8x128xf32>, vector<8x128xf32> -> vector<8x128xf32>
    %35 = arith.addf %32, %34 : vector<8x128xf32>
    %c152 = arith.constant 152 : index
    %c0_14 = arith.constant 0 : index
    %36 = vector.load %arg1[%c152, %c0_14] : memref<192x128xf32, #tpu.memory_space<vmem>>, vector<8x2xf32>
    %cst_15 = arith.constant dense<0.000000e+00> : vector<8x128xf32>
    %37 = tpu.matmul %36, %31, %cst_15 {dimension_numbers = #tpu.dot_dimension_numbers<[1], [0], [0], [1], [0, 0, 1, 1], [], []>, precision = #tpu.contract_precision<fp32>} : vector<8x2xf32>, vector<2x128xf32>, vector<8x128xf32> -> vector<8x128xf32>
    %38 = arith.addf %35, %37 : vector<8x128xf32>
    %cst_16 = arith.constant 2.000000e+01 : f32
    %39 = vector.broadcast %cst_16 : f32 to vector<8x128xf32>
    %40 = arith.cmpf ogt, %38, %39 : vector<8x128xf32>
    %41 = math.exp %38 : vector<8x128xf32>
    %42 = math.log1p %41 : vector<8x128xf32>
    %43 = arith.select %40, %38, %42 : vector<8x128xi1>, vector<8x128xf32>
    %44 = vector.extract_strided_slice %22 {offsets = [8, 0], sizes = [9, 128], strides = [1, 1]} : vector<40x128xf32> to vector<9x128xf32>
    %cst_17 = arith.constant 2.000000e+01 : f32
    %45 = vector.broadcast %cst_17 : f32 to vector<9x128xf32>
    %46 = arith.cmpf ogt, %44, %45 : vector<9x128xf32>
    %47 = math.exp %44 : vector<9x128xf32>
    %48 = math.log1p %47 : vector<9x128xf32>
    %49 = arith.select %46, %44, %48 : vector<9x128xi1>, vector<9x128xf32>
    %c72 = arith.constant 72 : index
    %c0_18 = arith.constant 0 : index
    %50 = vector.load %arg1[%c72, %c0_18] : memref<192x128xf32, #tpu.memory_space<vmem>>, vector<40x9xf32>
    %cst_19 = arith.constant dense<0.000000e+00> : vector<40x128xf32>
    %51 = tpu.matmul %50, %49, %cst_19 {dimension_numbers = #tpu.dot_dimension_numbers<[1], [0], [0], [1], [0, 0, 1, 1], [], []>, precision = #tpu.contract_precision<fp32>} : vector<40x9xf32>, vector<9x128xf32>, vector<40x128xf32> -> vector<40x128xf32>
    %52 = vector.extract_strided_slice %51 {offsets = [0, 0], sizes = [8, 128], strides = [1, 1]} : vector<40x128xf32> to vector<8x128xf32>
    %cst_20 = arith.constant 2.000000e+01 : f32
    %53 = vector.broadcast %cst_20 : f32 to vector<8x128xf32>
    %54 = arith.cmpf ogt, %52, %53 : vector<8x128xf32>
    %55 = math.exp %52 : vector<8x128xf32>
    %56 = math.log1p %55 : vector<8x128xf32>
    %57 = arith.select %54, %52, %56 : vector<8x128xi1>, vector<8x128xf32>
    %58 = arith.mulf %43, %57 : vector<8x128xf32>
    %59 = vector.extract_strided_slice %51 {offsets = [24, 0], sizes = [2, 128], strides = [1, 1]} : vector<40x128xf32> to vector<2x128xf32>
    %60 = arith.mulf %1, %59 : vector<2x128xf32>
    %61 = vector.extract_strided_slice %51 {offsets = [32, 0], sizes = [8, 128], strides = [1, 1]} : vector<40x128xf32> to vector<8x128xf32>
    %c160 = arith.constant 160 : index
    %c0_21 = arith.constant 0 : index
    %62 = vector.load %arg1[%c160, %c0_21] : memref<192x128xf32, #tpu.memory_space<vmem>>, vector<8x8xf32>
    %cst_22 = arith.constant dense<0.000000e+00> : vector<8x128xf32>
    %63 = tpu.matmul %62, %58, %cst_22 {dimension_numbers = #tpu.dot_dimension_numbers<[1], [0], [0], [1], [0, 0, 1, 1], [], []>, precision = #tpu.contract_precision<fp32>} : vector<8x8xf32>, vector<8x128xf32>, vector<8x128xf32> -> vector<8x128xf32>
    %64 = arith.addf %61, %63 : vector<8x128xf32>
    %c168 = arith.constant 168 : index
    %c0_23 = arith.constant 0 : index
    %65 = vector.load %arg1[%c168, %c0_23] : memref<192x128xf32, #tpu.memory_space<vmem>>, vector<8x2xf32>
    %cst_24 = arith.constant dense<0.000000e+00> : vector<8x128xf32>
    %66 = tpu.matmul %65, %60, %cst_24 {dimension_numbers = #tpu.dot_dimension_numbers<[1], [0], [0], [1], [0, 0, 1, 1], [], []>, precision = #tpu.contract_precision<fp32>} : vector<8x2xf32>, vector<2x128xf32>, vector<8x128xf32> -> vector<8x128xf32>
    %67 = arith.addf %64, %66 : vector<8x128xf32>
    %cst_25 = arith.constant 2.000000e+01 : f32
    %68 = vector.broadcast %cst_25 : f32 to vector<8x128xf32>
    %69 = arith.cmpf ogt, %67, %68 : vector<8x128xf32>
    %70 = math.exp %67 : vector<8x128xf32>
    %71 = math.log1p %70 : vector<8x128xf32>
    %72 = arith.select %69, %67, %71 : vector<8x128xi1>, vector<8x128xf32>
    %73 = vector.extract_strided_slice %51 {offsets = [8, 0], sizes = [9, 128], strides = [1, 1]} : vector<40x128xf32> to vector<9x128xf32>
    %cst_26 = arith.constant 2.000000e+01 : f32
    %74 = vector.broadcast %cst_26 : f32 to vector<9x128xf32>
    %75 = arith.cmpf ogt, %73, %74 : vector<9x128xf32>
    %76 = math.exp %73 : vector<9x128xf32>
    %77 = math.log1p %76 : vector<9x128xf32>
    %78 = arith.select %75, %73, %77 : vector<9x128xi1>, vector<9x128xf32>
    %c112 = arith.constant 112 : index
    %c0_27 = arith.constant 0 : index
    %79 = vector.load %arg1[%c112, %c0_27] : memref<192x128xf32, #tpu.memory_space<vmem>>, vector<24x9xf32>
    %cst_28 = arith.constant dense<0.000000e+00> : vector<24x128xf32>
    %80 = tpu.matmul %79, %78, %cst_28 {dimension_numbers = #tpu.dot_dimension_numbers<[1], [0], [0], [1], [0, 0, 1, 1], [], []>, precision = #tpu.contract_precision<fp32>} : vector<24x9xf32>, vector<9x128xf32>, vector<24x128xf32> -> vector<24x128xf32>
    %81 = vector.extract_strided_slice %80 {offsets = [0, 0], sizes = [8, 128], strides = [1, 1]} : vector<24x128xf32> to vector<8x128xf32>
    %cst_29 = arith.constant 2.000000e+01 : f32
    %82 = vector.broadcast %cst_29 : f32 to vector<8x128xf32>
    %83 = arith.cmpf ogt, %81, %82 : vector<8x128xf32>
    %84 = math.exp %81 : vector<8x128xf32>
    %85 = math.log1p %84 : vector<8x128xf32>
    %86 = arith.select %83, %81, %85 : vector<8x128xi1>, vector<8x128xf32>
    %87 = arith.mulf %72, %86 : vector<8x128xf32>
    %88 = vector.extract_strided_slice %80 {offsets = [8, 0], sizes = [2, 128], strides = [1, 1]} : vector<24x128xf32> to vector<2x128xf32>
    %89 = arith.mulf %1, %88 : vector<2x128xf32>
    %c176 = arith.constant 176 : index
    %c0_30 = arith.constant 0 : index
    %90 = vector.load %arg1[%c176, %c0_30] : memref<192x128xf32, #tpu.memory_space<vmem>>, vector<8x8xf32>
    %cst_31 = arith.constant dense<0.000000e+00> : vector<8x128xf32>
    %91 = tpu.matmul %90, %87, %cst_31 {dimension_numbers = #tpu.dot_dimension_numbers<[1], [0], [0], [1], [0, 0, 1, 1], [], []>, precision = #tpu.contract_precision<fp32>} : vector<8x8xf32>, vector<8x128xf32>, vector<8x128xf32> -> vector<8x128xf32>
    %c184 = arith.constant 184 : index
    %c0_32 = arith.constant 0 : index
    %92 = vector.load %arg1[%c184, %c0_32] : memref<192x128xf32, #tpu.memory_space<vmem>>, vector<8x2xf32>
    %cst_33 = arith.constant dense<0.000000e+00> : vector<8x128xf32>
    %93 = tpu.matmul %92, %89, %cst_33 {dimension_numbers = #tpu.dot_dimension_numbers<[1], [0], [0], [1], [0, 0, 1, 1], [], []>, precision = #tpu.contract_precision<fp32>} : vector<8x2xf32>, vector<2x128xf32>, vector<8x128xf32> -> vector<8x128xf32>
    %94 = arith.addf %91, %93 : vector<8x128xf32>
    %95 = vector.extract_strided_slice %80 {offsets = [16, 0], sizes = [1, 128], strides = [1, 1]} : vector<24x128xf32> to vector<1x128xf32>
    %96 = vector.extract_strided_slice %94 {offsets = [0, 0], sizes = [1, 128], strides = [1, 1]} : vector<8x128xf32> to vector<1x128xf32>
    %97 = arith.addf %95, %96 : vector<1x128xf32>
    %cst_34 = arith.constant 2.000000e+01 : f32
    %98 = vector.broadcast %cst_34 : f32 to vector<1x128xf32>
    %99 = arith.cmpf ogt, %97, %98 : vector<1x128xf32>
    %100 = math.exp %97 : vector<1x128xf32>
    %101 = math.log1p %100 : vector<1x128xf32>
    %102 = arith.select %99, %97, %101 : vector<1x128xi1>, vector<1x128xf32>
    %c0_35 = arith.constant 0 : index
    %c0_36 = arith.constant 0 : index
    %103 = vector.load %arg4[%c0_35, %c0_36] : memref<1x128xf32, #tpu.memory_space<vmem>>, vector<1x128xf32>
    tpu.vector_store %arg4[%c0_35, %c0_36], %102 {strides = array<i32>} : memref<1x128xf32, #tpu.memory_space<vmem>>, vector<1x128xf32>,
    return
  }
  func.func @transform_0(%arg0: i32) -> (i32, i32) {
    %c0_i32 = arith.constant 0 : i32
    %c0_i32_0 = arith.constant 0 : i32
    %c0_i32_1 = arith.constant 0 : i32
    return %c0_i32, %c0_i32_0 : i32, i32
  }
  func.func @transform_1(%arg0: i32) -> (i32, i32) {
    %c0_i32 = arith.constant 0 : i32
    %c0_i32_0 = arith.constant 0 : i32
    return %c0_i32, %arg0 : i32, i32
  }
  func.func @transform_2(%arg0: i32) -> (i32, i32) {
    %c0_i32 = arith.constant 0 : i32
    %c0_i32_0 = arith.constant 0 : i32
    return %c0_i32, %arg0 : i32, i32
  }
  func.func @transform_3(%arg0: i32) -> (i32, i32) {
    %c0_i32 = arith.constant 0 : i32
    %c0_i32_0 = arith.constant 0 : i32
    return %c0_i32, %arg0 : i32, i32
  }
}

module attributes {stable_mosaic.version = 11 : i64} {
  func.func @picnn_kernel(%arg0: i32, %arg1: memref<192x128xf32, #tpu.memory_space<vmem>>, %arg2: memref<3x128xf32, #tpu.memory_space<vmem>>, %arg3: memref<2x128xf32, #tpu.memory_space<vmem>>, %arg4: memref<1x128xf32, #tpu.memory_space<vmem>>) attributes {dimension_semantics = [#tpu.dimension_semantics<parallel>], iteration_bounds = array<i64: 1>, scalar_prefetch = 0 : i64, scratch_operands = 0 : i64, tpu.core_type = #tpu.core_type<tc>, window_params = [{pipeline_mode = #tpu.pipeline_mode<synchronous>, transform_indices = @transform_0, window_bounds = array<i64: 192, 128>}, {transform_indices = @transform_1, window_bounds = array<i64: 3, 128>}, {transform_indices = @transform_2, window_bounds = array<i64: 2, 128>}, {transform_indices = @transform_3, window_bounds = array<i64: 1, 128>}]} {
    %c0 = arith.constant 0 : index
    %c0_0 = arith.constant 0 : index
    %0 = vector.load %arg2[%c0, %c0_0] : memref<3x128xf32, #tpu.memory_space<vmem>>, vector<3x128xf32>
    %c0_1 = arith.constant 0 : index
    %c0_2 = arith.constant 0 : index
    %1 = vector.load %arg3[%c0_1, %c0_2] : memref<2x128xf32, #tpu.memory_space<vmem>>, vector<2x128xf32>
    %c0_3 = arith.constant 0 : index
    %c0_4 = arith.constant 0 : index
    %2 = vector.load %arg1[%c0_3, %c0_4] : memref<192x128xf32, #tpu.memory_space<vmem>>, vector<32x3xf32>
    %cst = arith.constant dense<0.000000e+00> : vector<32x128xf32>
    %3 = tpu.matmul %2, %0, %cst {dimension_numbers = #tpu.dot_dimension_numbers<[1], [0], [0], [1], [0, 0, 1, 1], [], []>} : vector<32x3xf32>, vector<3x128xf32>, vector<32x128xf32> -> vector<32x128xf32>
    %4 = vector.extract_strided_slice %3 {offsets = [0, 0], sizes = [9, 128], strides = [1, 1]} : vector<32x128xf32> to vector<9x128xf32>
    %cst_5 = arith.constant 2.000000e+01 : f32
    %5 = vector.broadcast %cst_5 : f32 to vector<9x128xf32>
    %6 = arith.cmpf ogt, %4, %5 : vector<9x128xf32>
    %7 = math.exp %4 : vector<9x128xf32>
    %8 = math.log1p %7 : vector<9x128xf32>
    %9 = arith.select %6, %4, %8 : vector<9x128xi1>, vector<9x128xf32>
    %10 = vector.extract_strided_slice %3 {offsets = [16, 0], sizes = [2, 128], strides = [1, 1]} : vector<32x128xf32> to vector<2x128xf32>
    %11 = arith.mulf %1, %10 : vector<2x128xf32>
    %12 = vector.extract_strided_slice %3 {offsets = [24, 0], sizes = [8, 128], strides = [1, 1]} : vector<32x128xf32> to vector<8x128xf32>
    %c136 = arith.constant 136 : index
    %c0_6 = arith.constant 0 : index
    %13 = vector.load %arg1[%c136, %c0_6] : memref<192x128xf32, #tpu.memory_space<vmem>>, vector<8x2xf32>
    %cst_7 = arith.constant dense<0.000000e+00> : vector<8x128xf32>
    %14 = tpu.matmul %13, %11, %cst_7 {dimension_numbers = #tpu.dot_dimension_numbers<[1], [0], [0], [1], [0, 0, 1, 1], [], []>} : vector<8x2xf32>, vector<2x128xf32>, vector<8x128xf32> -> vector<8x128xf32>
    %15 = arith.addf %12, %14 : vector<8x128xf32>
    %cst_8 = arith.constant 2.000000e+01 : f32
    %16 = vector.broadcast %cst_8 : f32 to vector<8x128xf32>
    %17 = arith.cmpf ogt, %15, %16 : vector<8x128xf32>
    %18 = math.exp %15 : vector<8x128xf32>
    %19 = math.log1p %18 : vector<8x128xf32>
    %20 = arith.select %17, %15, %19 : vector<8x128xi1>, vector<8x128xf32>
    %c32 = arith.constant 32 : index
    %c0_9 = arith.constant 0 : index
    %21 = vector.load %arg1[%c32, %c0_9] : memref<192x128xf32, #tpu.memory_space<vmem>>, vector<40x9xf32>
    %cst_10 = arith.constant dense<0.000000e+00> : vector<40x128xf32>
    %22 = tpu.matmul %21, %9, %cst_10 {dimension_numbers = #tpu.dot_dimension_numbers<[1], [0], [0], [1], [0, 0, 1, 1], [], []>} : vector<40x9xf32>, vector<9x128xf32>, vector<40x128xf32> -> vector<40x128xf32>
    %23 = vector.extract_strided_slice %22 {offsets = [0, 0], sizes = [8, 128], strides = [1, 1]} : vector<40x128xf32> to vector<8x128xf32>
    %cst_11 = arith.constant 2.000000e+01 : f32
    %24 = vector.broadcast %cst_11 : f32 to vector<8x128xf32>
    %25 = arith.cmpf ogt, %23, %24 : vector<8x128xf32>
    %26 = math.exp %23 : vector<8x128xf32>
    %27 = math.log1p %26 : vector<8x128xf32>
    %28 = arith.select %25, %23, %27 : vector<8x128xi1>, vector<8x128xf32>
    %29 = arith.mulf %20, %28 : vector<8x128xf32>
    %30 = vector.extract_strided_slice %22 {offsets = [24, 0], sizes = [2, 128], strides = [1, 1]} : vector<40x128xf32> to vector<2x128xf32>
    %31 = arith.mulf %1, %30 : vector<2x128xf32>
    %32 = vector.extract_strided_slice %22 {offsets = [32, 0], sizes = [8, 128], strides = [1, 1]} : vector<40x128xf32> to vector<8x128xf32>
    %c144 = arith.constant 144 : index
    %c0_12 = arith.constant 0 : index
    %33 = vector.load %arg1[%c144, %c0_12] : memref<192x128xf32, #tpu.memory_space<vmem>>, vector<8x8xf32>
    %cst_13 = arith.constant dense<0.000000e+00> : vector<8x128xf32>
    %34 = tpu.matmul %33, %29, %cst_13 {dimension_numbers = #tpu.dot_dimension_numbers<[1], [0], [0], [1], [0, 0, 1, 1], [], []>} : vector<8x8xf32>, vector<8x128xf32>, vector<8x128xf32> -> vector<8x128xf32>
    %35 = arith.addf %32, %34 : vector<8x128xf32>
    %c152 = arith.constant 152 : index
    %c0_14 = arith.constant 0 : index
    %36 = vector.load %arg1[%c152, %c0_14] : memref<192x128xf32, #tpu.memory_space<vmem>>, vector<8x2xf32>
    %cst_15 = arith.constant dense<0.000000e+00> : vector<8x128xf32>
    %37 = tpu.matmul %36, %31, %cst_15 {dimension_numbers = #tpu.dot_dimension_numbers<[1], [0], [0], [1], [0, 0, 1, 1], [], []>} : vector<8x2xf32>, vector<2x128xf32>, vector<8x128xf32> -> vector<8x128xf32>
    %38 = arith.addf %35, %37 : vector<8x128xf32>
    %cst_16 = arith.constant 2.000000e+01 : f32
    %39 = vector.broadcast %cst_16 : f32 to vector<8x128xf32>
    %40 = arith.cmpf ogt, %38, %39 : vector<8x128xf32>
    %41 = math.exp %38 : vector<8x128xf32>
    %42 = math.log1p %41 : vector<8x128xf32>
    %43 = arith.select %40, %38, %42 : vector<8x128xi1>, vector<8x128xf32>
    %44 = vector.extract_strided_slice %22 {offsets = [8, 0], sizes = [9, 128], strides = [1, 1]} : vector<40x128xf32> to vector<9x128xf32>
    %cst_17 = arith.constant 2.000000e+01 : f32
    %45 = vector.broadcast %cst_17 : f32 to vector<9x128xf32>
    %46 = arith.cmpf ogt, %44, %45 : vector<9x128xf32>
    %47 = math.exp %44 : vector<9x128xf32>
    %48 = math.log1p %47 : vector<9x128xf32>
    %49 = arith.select %46, %44, %48 : vector<9x128xi1>, vector<9x128xf32>
    %c72 = arith.constant 72 : index
    %c0_18 = arith.constant 0 : index
    %50 = vector.load %arg1[%c72, %c0_18] : memref<192x128xf32, #tpu.memory_space<vmem>>, vector<40x9xf32>
    %cst_19 = arith.constant dense<0.000000e+00> : vector<40x128xf32>
    %51 = tpu.matmul %50, %49, %cst_19 {dimension_numbers = #tpu.dot_dimension_numbers<[1], [0], [0], [1], [0, 0, 1, 1], [], []>} : vector<40x9xf32>, vector<9x128xf32>, vector<40x128xf32> -> vector<40x128xf32>
    %52 = vector.extract_strided_slice %51 {offsets = [0, 0], sizes = [8, 128], strides = [1, 1]} : vector<40x128xf32> to vector<8x128xf32>
    %cst_20 = arith.constant 2.000000e+01 : f32
    %53 = vector.broadcast %cst_20 : f32 to vector<8x128xf32>
    %54 = arith.cmpf ogt, %52, %53 : vector<8x128xf32>
    %55 = math.exp %52 : vector<8x128xf32>
    %56 = math.log1p %55 : vector<8x128xf32>
    %57 = arith.select %54, %52, %56 : vector<8x128xi1>, vector<8x128xf32>
    %58 = arith.mulf %43, %57 : vector<8x128xf32>
    %59 = vector.extract_strided_slice %51 {offsets = [24, 0], sizes = [2, 128], strides = [1, 1]} : vector<40x128xf32> to vector<2x128xf32>
    %60 = arith.mulf %1, %59 : vector<2x128xf32>
    %61 = vector.extract_strided_slice %51 {offsets = [32, 0], sizes = [8, 128], strides = [1, 1]} : vector<40x128xf32> to vector<8x128xf32>
    %c160 = arith.constant 160 : index
    %c0_21 = arith.constant 0 : index
    %62 = vector.load %arg1[%c160, %c0_21] : memref<192x128xf32, #tpu.memory_space<vmem>>, vector<8x8xf32>
    %cst_22 = arith.constant dense<0.000000e+00> : vector<8x128xf32>
    %63 = tpu.matmul %62, %58, %cst_22 {dimension_numbers = #tpu.dot_dimension_numbers<[1], [0], [0], [1], [0, 0, 1, 1], [], []>} : vector<8x8xf32>, vector<8x128xf32>, vector<8x128xf32> -> vector<8x128xf32>
    %64 = arith.addf %61, %63 : vector<8x128xf32>
    %c168 = arith.constant 168 : index
    %c0_23 = arith.constant 0 : index
    %65 = vector.load %arg1[%c168, %c0_23] : memref<192x128xf32, #tpu.memory_space<vmem>>, vector<8x2xf32>
    %cst_24 = arith.constant dense<0.000000e+00> : vector<8x128xf32>
    %66 = tpu.matmul %65, %60, %cst_24 {dimension_numbers = #tpu.dot_dimension_numbers<[1], [0], [0], [1], [0, 0, 1, 1], [], []>} : vector<8x2xf32>, vector<2x128xf32>, vector<8x128xf32> -> vector<8x128xf32>
    %67 = arith.addf %64, %66 : vector<8x128xf32>
    %cst_25 = arith.constant 2.000000e+01 : f32
    %68 = vector.broadcast %cst_25 : f32 to vector<8x128xf32>
    %69 = arith.cmpf ogt, %67, %68 : vector<8x128xf32>
    %70 = math.exp %67 : vector<8x128xf32>
    %71 = math.log1p %70 : vector<8x128xf32>
    %72 = arith.select %69, %67, %71 : vector<8x128xi1>, vector<8x128xf32>
    %73 = vector.extract_strided_slice %51 {offsets = [8, 0], sizes = [9, 128], strides = [1, 1]} : vector<40x128xf32> to vector<9x128xf32>
    %cst_26 = arith.constant 2.000000e+01 : f32
    %74 = vector.broadcast %cst_26 : f32 to vector<9x128xf32>
    %75 = arith.cmpf ogt, %73, %74 : vector<9x128xf32>
    %76 = math.exp %73 : vector<9x128xf32>
    %77 = math.log1p %76 : vector<9x128xf32>
    %78 = arith.select %75, %73, %77 : vector<9x128xi1>, vector<9x128xf32>
    %c112 = arith.constant 112 : index
    %c0_27 = arith.constant 0 : index
    %79 = vector.load %arg1[%c112, %c0_27] : memref<192x128xf32, #tpu.memory_space<vmem>>, vector<24x9xf32>
    %cst_28 = arith.constant dense<0.000000e+00> : vector<24x128xf32>
    %80 = tpu.matmul %79, %78, %cst_28 {dimension_numbers = #tpu.dot_dimension_numbers<[1], [0], [0], [1], [0, 0, 1, 1], [], []>} : vector<24x9xf32>, vector<9x128xf32>, vector<24x128xf32> -> vector<24x128xf32>
    %81 = vector.extract_strided_slice %80 {offsets = [0, 0], sizes = [8, 128], strides = [1, 1]} : vector<24x128xf32> to vector<8x128xf32>
    %cst_29 = arith.constant 2.000000e+01 : f32
    %82 = vector.broadcast %cst_29 : f32 to vector<8x128xf32>
    %83 = arith.cmpf ogt, %81, %82 : vector<8x128xf32>
    %84 = math.exp %81 : vector<8x128xf32>
    %85 = math.log1p %84 : vector<8x128xf32>
    %86 = arith.select %83, %81, %85 : vector<8x128xi1>, vector<8x128xf32>
    %87 = arith.mulf %72, %86 : vector<8x128xf32>
    %88 = vector.extract_strided_slice %80 {offsets = [8, 0], sizes = [2, 128], strides = [1, 1]} : vector<24x128xf32> to vector<2x128xf32>
    %89 = arith.mulf %1, %88 : vector<2x128xf32>
    %c176 = arith.constant 176 : index
    %c0_30 = arith.constant 0 : index
    %90 = vector.load %arg1[%c176, %c0_30] : memref<192x128xf32, #tpu.memory_space<vmem>>, vector<8x8xf32>
    %cst_31 = arith.constant dense<0.000000e+00> : vector<8x128xf32>
    %91 = tpu.matmul %90, %87, %cst_31 {dimension_numbers = #tpu.dot_dimension_numbers<[1], [0], [0], [1], [0, 0, 1, 1], [], []>} : vector<8x8xf32>, vector<8x128xf32>, vector<8x128xf32> -> vector<8x128xf32>
    %c184 = arith.constant 184 : index
    %c0_32 = arith.constant 0 : index
    %92 = vector.load %arg1[%c184, %c0_32] : memref<192x128xf32, #tpu.memory_space<vmem>>, vector<8x2xf32>
    %cst_33 = arith.constant dense<0.000000e+00> : vector<8x128xf32>
    %93 = tpu.matmul %92, %89, %cst_33 {dimension_numbers = #tpu.dot_dimension_numbers<[1], [0], [0], [1], [0, 0, 1, 1], [], []>} : vector<8x2xf32>, vector<2x128xf32>, vector<8x128xf32> -> vector<8x128xf32>
    %94 = arith.addf %91, %93 : vector<8x128xf32>
    %95 = vector.extract_strided_slice %80 {offsets = [16, 0], sizes = [1, 128], strides = [1, 1]} : vector<24x128xf32> to vector<1x128xf32>
    %96 = vector.extract_strided_slice %94 {offsets = [0, 0], sizes = [1, 128], strides = [1, 1]} : vector<8x128xf32> to vector<1x128xf32>
    %97 = arith.addf %95, %96 : vector<1x128xf32>
    %cst_34 = arith.constant 2.000000e+01 : f32
    %98 = vector.broadcast %cst_34 : f32 to vector<1x128xf32>
    %99 = arith.cmpf ogt, %97, %98 : vector<1x128xf32>
    %100 = math.exp %97 : vector<1x128xf32>
    %101 = math.log1p %100 : vector<1x128xf32>
    %102 = arith.select %99, %97, %101 : vector<1x128xi1>, vector<1x128xf32>
    %c0_35 = arith.constant 0 : index
    %c0_36 = arith.constant 0 : index
    %103 = vector.load %arg4[%c0_35, %c0_36] : memref<1x128xf32, #tpu.memory_space<vmem>>, vector<1x128xf32>
    tpu.vector_store %arg4[%c0_35, %c0_36], %102 {strides = array<i32>} : memref<1x128xf32, #tpu.memory_space<vmem>>, vector<1x128xf32>,
    return
  }
  func.func @transform_0(%arg0: i32) -> (i32, i32) {
    %c0_i32 = arith.constant 0 : i32
    %c0_i32_0 = arith.constant 0 : i32
    %c0_i32_1 = arith.constant 0 : i32
    return %c0_i32, %c0_i32_0 : i32, i32
  }
  func.func @transform_1(%arg0: i32) -> (i32, i32) {
    %c0_i32 = arith.constant 0 : i32
    %c0_i32_0 = arith.constant 0 : i32
    return %c0_i32, %arg0 : i32, i32
  }
  func.func @transform_2(%arg0: i32) -> (i32, i32) {
    %c0_i32 = arith.constant 0 : i32
    %c0_i32_0 = arith.constant 0 : i32
    return %c0_i32, %arg0 : i32, i32
  }
  func.func @transform_3(%arg0: i32) -> (i32, i32) {
    %c0_i32 = arith.constant 0 : i32
    %c0_i32_0 = arith.constant 0 : i32
    return %c0_i32, %arg0 : i32, i32
  }
}

</mosaic_0001>

<bundles_post_ra>
// kernel: dissipation_forward.1
= control target key start
LH: loop header
LB: loop body
LE: loop exit
PB: predicated region body
PF: predicated region fallthrough
CT: control target
= control target key end

     0   :  { %8 = vsyncpa [#allocation3], 0  ;;  %s6721_s12 = smov [#allocation2]   ;;  %s7577_s0 = inlined_call_operand.hbm [shape: f32[192,128], index: 0, kind: input, shape index: {}]   ;;  %s7578_s1 = inlined_call_operand.vmem [shape: f32[3,128], index: 1, kind: input, shape index: {}]   ;;  %s7579_s2 = inlined_call_operand.vmem [shape: f32[2,128], index: 2, kind: input, shape index: {}]   ;;  %s7580_s3 = inlined_call_operand.vmem [shape: f32[1,128], index: 3, kind: output, shape index: {}]  }
   0x1   :  { %s14_s13 = sshll.u32 %s6721_s12, 4  ;;  %s15_s13 = int_to_ptr.vmem [resolvable:$true] %s14_s13 }
   0x2   :  { %s6707_s14 = scalar_lea.vmem %s15_s13, 3072  ;;  %p6712_p1 = scmp.lt.s32.totalorder %s15_s13, %s15_s13 }
   0x3   :  { %p6708_p0 = scmp.ne.s32.totalorder %s15_s13, %s6707_s14  ;;  %p6713_p2 = scmp.lt.s32.totalorder %s6707_s14, %s6707_s14 }
   0x5   :  { %p6714_p3 = por %p6713_p2, %p6712_p1 }
   0x7   :  { %p6715_p4 = pnand %p6714_p3, %p6708_p0 }
   0x9   :  { %6718 = shalt.err (!%p6715_p4)
}
   0xa   :  { %s6722_s15 = smov 128   ;;  %s6723_s16 = smov 8  }
   0xb   :  { %20 = dma.hbm_to_vmem [thread:$0]  %s7577_s0, 3072, %s15_s13, [#allocation3], %s6722_s15, %s6722_s15, %s6723_s16  }
   0xc   :  { %6719 = dma.done.wait [#allocation3], 3072  }
   0xd   :  { %6720 = vsyncadd [#allocation3], 4294964224  ;;  %vm47_vm0 = vcmask 1042432   ;;  %vm34_vm1 = vcmask 23552   ;;  %v28_v0 = vld [vmem:[%s7578_s1] sm:$0x7] }
   0xe   :  { %v30_v1 = vld [vmem:[#allocation2] sm:$0xff]  ;;  %v31_v2 = vld [vmem:[#allocation2 + $0x8] sm:$0xff]  ;;  %v49_v3 = vsel %vm47_vm0, %v28_v0, 0  ;;  %v32_v6 = vld [vmem:[#allocation2 + $0x10] sm:$0xff]  ;;  %v6724_v35 = vmov 0.0   ;;  %vm6725_vm2 = vmmov 0  }
   0xf   :  { %v36_v4 = vsel %vm34_vm1, %v30_v1, 0  ;;  %v39_v5 = vsel %vm34_vm1, %v31_v2, 0  ;;  %v33_v7 = vld [vmem:[#allocation2 + $0x18] sm:$0xff]  ;;  %v82_v8 = vand.u32 4294901760, %v49_v3  ;;  %v42_v11 = vsel %vm34_vm1, %v32_v6, 0  ;;  %v653_v44 = vld [vmem:[#allocation2 + $0x88] sm:$0xff] }
  0x10   :  { %v117_v9 = vand.u32 4294901760, %v36_v4  ;;  %v127_v10 = vand.u32 4294901760, %v39_v5  ;;  %v137_v12 = vand.u32 4294901760, %v42_v11  ;;  %v45_v13 = vsel %vm34_vm1, %v33_v7, 0 }
  0x11   :  { %6077 = vmatprep.subr.mxu0 %v82_v8  ;;  %v189_v15 = vsub.f32 %v49_v3, %v82_v8  ;;  %v147_v17 = vand.u32 4294901760, %v45_v13  ;;  %vm654_vm3 = vcmask 15360   ;;  %vm658_vm4 = vcmask 1041408  }
  0x12   :  { %v118_v14 = vsub.f32 %v36_v4, %v117_v9  ;;  %v128_v16 = vsub.f32 %v39_v5, %v127_v10  ;;  %6087 = vmatprep.mubr.f32.mxu1 %v117_v9  ;;  %6078 = vmatpush3.msra.mxu0 %v82_v8  ;;  %v138_v18 = vsub.f32 %v42_v11, %v137_v12  ;;  %v656_v49 = vsel %vm654_vm3, %v653_v44, 0 }
  0x13   :  { %v190_v20 = vand.u32 4294901760, %v189_v15  ;;  %v148_v22 = vsub.f32 %v45_v13, %v147_v17  ;;  %6093 = vmatprep.subr.mxu0 %v189_v15  ;;  %v6759_v55 = vand.u32 4294901760, %v656_v49  ;;  %vm1127_vm5 = vcmask 72704  }
  0x14   :  { %v119_v19 = vand.u32 4294901760, %v118_v14  ;;  %v129_v21 = vand.u32 4294901760, %v128_v16  ;;  %v139_v23 = vand.u32 4294901760, %v138_v18  ;;  %vm1143_vm6 = vcmask 1040384  }
  0x15   :  { %v191_v25 = vsub.f32 %v189_v15, %v190_v20  ;;  %v149_v27 = vand.u32 4294901760, %v148_v22  ;;  %v6762_v1 = vsub.f32 %v656_v49, %v6759_v55  ;;  %v1125_v49 = vld [vmem:[#allocation2 + $0x38] sm:$0xff]  ;;  %vm1794_vm11 = vcmask 64512  }
  0x16   :  { %v120_v24 = vsub.f32 %v118_v14, %v119_v19  ;;  %v130_v26 = vsub.f32 %v128_v16, %v129_v21  ;;  %v140_v28 = vsub.f32 %v138_v18, %v139_v23 }
  0x17   :  { %v192_v30 = vand.u32 4294901760, %v191_v25  ;;  %v150_v32 = vsub.f32 %v148_v22, %v149_v27  ;;  %v730_v11 = vand.u32 4294901760, %v6762_v1 }
  0x18   :  { %v121_v29 = vand.u32 4294901760, %v120_v24  ;;  %v131_v31 = vand.u32 4294901760, %v130_v26  ;;  %v141_v33 = vand.u32 4294901760, %v140_v28 }
  0x19   :  { %6085 = vmatprep.subr.mxu1 %v192_v30  ;;  %v151_v34 = vand.u32 4294901760, %v150_v32  ;;  %v731_v24 = vsub.f32 %v6762_v1, %v730_v11 }
  0x1a   :  { %6079 = vmatprep.mubr.f32.mxu0 %v121_v29  ;;  %6086 = vmatpush3.msra.mxu1 %v192_v30 }
  0x1b   :  { %6080 = vmatmul.mubr.f32.vlgmr.msra.gmra.mxu0 %v131_v31  ;;  %6088 = vmatmul.mubr.f32.vlgmr.msra.gmra.mxu1 %v127_v10  ;;  %v1122_v31 = vld [vmem:[#allocation2 + $0x20] sm:$0xff] }
  0x1c   :  { %6082 = vmatprep.mubr.f32.mxu0 %v141_v33  ;;  %6090 = vmatprep.mubr.f32.mxu1 %v137_v12 }
  0x1d   :  { %6094 = vmatpush3.msra.mxu0 %v189_v15  ;;  %6101 = vmatprep.subr.mxu1 %v82_v8 }
  0x1e   :  { %6109 = vmatprep.subr.mxu0 %v190_v20  ;;  %6102 = vmatpush3.msra.mxu1 %v82_v8 }
  0x1f   :  { %6083 = vmatmul.mubr.f32.gmra.mxu0 %v151_v34  ;;  %6091 = vmatmul.mubr.f32.gmra.mxu1 %v147_v17 }
  0x20   :  { %6095 = vmatprep.mubr.f32.mxu0 %v118_v14  ;;  %6103 = vmatprep.mubr.f32.mxu1 %v119_v19 }
  0x21   :  { %6117 = vmatprep.subr.mxu1 %v82_v8 }
  0x23   :  { %6096 = vmatmul.mubr.f32.vlgmr.msra.gmra.mxu0 %v128_v16  ;;  %6104 = vmatmul.mubr.f32.vlgmr.msra.gmra.mxu1 %v129_v21 }
  0x24   :  { %6098 = vmatprep.mubr.f32.mxu0 %v138_v18  ;;  %6106 = vmatprep.mubr.f32.mxu1 %v139_v23 }
  0x25   :  { %6110 = vmatpush3.msra.mxu0 %v190_v20  ;;  %6118 = vmatpush3.msra.mxu1 %v82_v8 }
  0x26   :  { %6125 = vmatprep.subr.mxu0 %v6724_v35  ;;  %6130 = vmatprep.subr.mxu1 %v6724_v35 }
  0x27   :  { %6099 = vmatmul.mubr.f32.gmra.mxu0 %v148_v22  ;;  %6107 = vmatmul.mubr.f32.gmra.mxu1 %v149_v27  ;;  %v6776_v22 = vld [vmem:[%s7579_s2] sm:$0x3]  ;;  %v732_v27 = vand.u32 4294901760, %v731_v24 }
  0x28   :  { %6111 = vmatprep.mubr.f32.mxu0 %v117_v9  ;;  %6119 = vmatprep.mubr.f32.mxu1 %v117_v9 }
  0x2b   :  { %6112 = vmatmul.mubr.f32.vlgmr.msra.gmra.mxu0 %v127_v10  ;;  %6120 = vmatmul.mubr.f32.vlgmr.msra.gmra.mxu1 %v127_v10 }
  0x2c   :  { %6114 = vmatprep.mubr.f32.mxu0 %v137_v12  ;;  %6122 = vmatprep.mubr.f32.mxu1 %v137_v12 }
  0x2f   :  { %6115 = vmatmul.mubr.f32.gmra.mxu0 %v147_v17  ;;  %6123 = vmatmul.mubr.f32.gmra.mxu1 %v147_v17 }
  0x30   :  { %6127 = vmatprep.mubr.msk.f32.mxu0 %vm6725_vm2, %v6724_v35  ;;  %6132 = vmatprep.mubr.msk.f32.mxu1 %vm6725_vm2, %v6724_v35 }
  0xdb   :  { %v6081_v36 = vpop.f32.mrf.mxu0  ;;  %v6089_v37 = vpop.f32.mrf.mxu1 }
  0xdc   :  { %v236_v47 = vadd.f32 %v6089_v37, %v6081_v36 }
  0xdd   :  { %v123_v38 = vpop.f32.mrf.mxu0  ;;  %v229_v39 = vpop.f32.mrf.mxu1 }
  0xde   :  { %v230_v51 = vadd.f32 %v229_v39, %v123_v38  ;;  %v1129_v38 = vsel %vm1127_vm5, %v1122_v31, 0 }
  0xdf   :  { %v6084_v40 = vpop.f32.mrf.mxu0  ;;  %v6092_v41 = vpop.f32.mrf.mxu1 }
  0xe0   :  { %v248_v42 = vadd.f32 %v6092_v41, %v6084_v40  ;;  %v1123_v40 = vld [vmem:[#allocation2 + $0x28] sm:$0xff]  ;;  %v6792_v41 = vand.u32 4294901760, %v1129_v38 }
  0xe1   :  { %v143_v43 = vpop.f32.mrf.mxu0  ;;  %v241_v45 = vpop.f32.mrf.mxu1 }
  0xe2   :  { %v242_v60 = vadd.f32 %v241_v45, %v143_v43  ;;  %v1124_v43 = vld [vmem:[#allocation2 + $0x30] sm:$0xff]  ;;  %v6802_v45 = vsub.f32 %v1129_v38, %v6792_v41 }
  0xe3   :  { %v6097_v46 = vpop.f32.mrf.mxu0  ;;  %v6105_v48 = vpop.f32.mrf.mxu1 }
  0xe4   :  { %v329_v52 = vadd.f32 %v6097_v46, %v236_v47 }
  0xe5   :  { %v321_v50 = vpop.f32.mrf.mxu0  ;;  %v416_v53 = vpop.f32.mrf.mxu1 }
  0xe6   :  { %v322_v56 = vadd.f32 %v321_v50, %v230_v51  ;;  %v425_v61 = vadd.f32 %v6105_v48, %v329_v52  ;;  %v1135_v48 = vsel %vm1127_vm5, %v1124_v43, 0  ;;  %v1216_v51 = vand.u32 4294901760, %v6802_v45 }
  0xe7   :  { %v6100_v54 = vpop.f32.mrf.mxu0  ;;  %v6108_v58 = vpop.f32.mrf.mxu1 }
  0xe8   :  { %v343_v57 = vadd.f32 %v6100_v54, %v248_v42  ;;  %v417_v2 = vadd.f32 %v416_v53, %v322_v56  ;;  %v1132_v42 = vsel %vm1127_vm5, %v1123_v40, 0  ;;  %v6817_v54 = vand.u32 4294901760, %v1135_v48 }
  0xe9   :  { %v335_v59 = vpop.f32.mrf.mxu0  ;;  %v432_v63 = vpop.f32.mrf.mxu1  ;;  %v6806_v46 = vand.u32 4294901760, %v1132_v42 }
  0xea   :  { %v441_v62 = vadd.f32 %v6108_v58, %v343_v57  ;;  %v336_v3 = vadd.f32 %v335_v59, %v242_v60  ;;  %v1138_v57 = vsel %vm1127_vm5, %v1125_v49, 0 }
  0xeb   :  { %v6113_v0 = vpop.f32.mrf.mxu0  ;;  %v6121_v5 = vpop.f32.mrf.mxu1  ;;  %v6813_v53 = vsub.f32 %v1132_v42, %v6806_v46 }
  0xec   :  { %v521_v4 = vadd.f32 %v6113_v0, %v425_v61  ;;  %v433_v12 = vadd.f32 %v432_v63, %v336_v3 }
  0xed   :  { %v514_v6 = vpop.f32.mrf.mxu0  ;;  %v604_v9 = vpop.f32.mrf.mxu1  ;;  %v1226_v0 = vand.u32 4294901760, %v6813_v53 }
  0xee   :  { %v6764_v7 = vadd.f32 %v6121_v5, %v521_v4  ;;  %v515_v8 = vadd.f32 %v514_v6, %v417_v2  ;;  %v6827_v2 = vand.u32 4294901760, %v1138_v57 }
  0xef   :  { %v6116_v10 = vpop.f32.mrf.mxu0  ;;  %v6124_v16 = vpop.f32.mrf.mxu1 }
  0xf0   :  { %v630_v13 = vmul.f32 1.442695, %v6764_v7  ;;  %v6768_v14 = vadd.f32 %v604_v9, %v515_v8  ;;  %v533_v15 = vadd.f32 %v6116_v10, %v441_v62  ;;  %v1126_v62 = vld [vmem:[#allocation2 + $0x40] sm:$0xff]  ;;  %vm627_vm8 = vcmp.gt.f32.partialorder %v6764_v7, 20.0 }
  0xf1   :  { %v526_v17 = vpop.f32.mrf.mxu0  ;;  %v616_v20 = vpop.f32.mrf.mxu1  ;;  %v1141_v8 = vsel %vm1127_vm5, %v1126_v62, 0 }
  0xf2   :  { %6646 = vpow2.f32 %v630_v13  ;;  %v628_v18 = vmul.f32 1.442695, %v6768_v14  ;;  %v527_v19 = vadd.f32 %v526_v17, %v433_v12  ;;  %v6771_v21 = vadd.f32 %v6124_v16, %v533_v15 }
  0xf3   :  { %vm626_vm10 = vcmp.gt.f32.partialorder %v6768_v14, 20.0  ;;  %v1227_v15 = vsub.f32 %v6813_v53, %v1226_v0  ;;  %v6844_v17 = vsub.f32 %v1138_v57, %v6827_v2 }
  0xf4   :  { %6648 = vpow2.f32 %v628_v18  ;;  %v617_v23 = vadd.f32 %v616_v20, %v527_v19  ;;  %v6846_v18 = vand.u32 4294901760, %v1141_v8 }
  0xf5   :  { %v1228_v20 = vand.u32 4294901760, %v1227_v15 }
  0xf6   :  { %v652_v25 = vmul.f32 %v617_v23, %v6776_v22 }
  0xf8   :  { %v660_v26 = vsel %vm658_vm4, %v652_v25, 0 }
  0xf9   :  { %v693_v28 = vand.u32 4294901760, %v660_v26 }
  0xfb   :  { %v770_v29 = vsub.f32 %v660_v26, %v693_v28  ;;  %6126 = vmatpush3.msra.mxu0 %v693_v28  ;;  %v1246_v26 = vand.u32 4294901760, %v6844_v17 }
  0xfc   :  { %6128 = vmatmul.mubr.f32.vlgmr.msra.gmra.mxu0 %v732_v27  ;;  %6135 = vmatprep.subr.mxu0 %v6724_v35  ;;  %v6859_v27 = vsub.f32 %v1141_v8, %v6846_v18 }
  0xfd   :  { %6136 = vmatpush3.msra.mxu0 %v770_v29  ;;  %6137 = vmatprep.mubr.msk.f32.mxu0 %vm6725_vm2, %v6724_v35  ;;  %v771_v30 = vand.u32 4294901760, %v770_v29 }
  0xfe   :  { %6145 = vmatprep.subr.mxu0 %v6724_v35 }
  0xff   :  { %v6647_v32 = vpop.eup %6646  ;;  %v772_v33 = vsub.f32 %v770_v29, %v771_v30 }
 0x100   :  { %v641_v34 = vadd.f32 1.0, %v6647_v32  ;;  %6138 = vmatmul.mubr.f32.vlgmr.msra.gmra.mxu0 %v6762_v1  ;;  %v644_v44 = vmul.f32 -0.5, %v6647_v32  ;;  %v647_v52 = vand.u32 2147483647, %v6647_v32  ;;  %v6825_v1 = vsub.f32 %v1135_v48, %v6817_v54 }
 0x101   :  { %v6649_v36 = vpop.eup %6648  ;;  %6146 = vmatpush3.msra.mxu0 %v771_v30  ;;  %v773_v37 = vand.u32 4294901760, %v772_v33  ;;  %6147 = vmatprep.mubr.msk.f32.mxu0 %vm6725_vm2, %v6724_v35  ;;  %v1247_v33 = vsub.f32 %v6844_v17, %v1246_v26 }
 0x102   :  { %6650 = vlog2.f32 %v641_v34  ;;  %v632_v39 = vadd.f32 1.0, %v6649_v36  ;;  %6155 = vmatprep.subr.mxu0 %v6724_v35  ;;  %v635_v47 = vmul.f32 -0.5, %v6649_v36  ;;  %v645_v50 = vadd.f32 1.0, %v644_v44 }
 0x103   :  { %6131 = vmatpush3.msra.mxu1 %v773_v37  ;;  %v638_v59 = vand.u32 2147483647, %v6649_v36  ;;  %vm648_vm7 = vcmp.lt.f32.partialorder %v647_v52, 0.0004427343  ;;  %v1256_v34 = vand.u32 4294901760, %v6859_v27 }
 0x104   :  { %6652 = vlog2.f32 %v632_v39  ;;  %6133 = vmatmul.mubr.f32.vlgmr.msra.gmra.mxu1 %v6759_v55  ;;  %6140 = vmatprep.subr.mxu1 %v6724_v35  ;;  %v636_v56 = vadd.f32 1.0, %v635_v47  ;;  %v646_v61 = vmul.f32 %v6647_v32, %v645_v50 }
 0x105   :  { %6141 = vmatpush3.msra.mxu1 %v693_v28  ;;  %6142 = vmatprep.mubr.msk.f32.mxu1 %vm6725_vm2, %v6724_v35  ;;  %vm639_vm9 = vcmp.lt.f32.partialorder %v638_v59, 0.0004427343  ;;  %v1257_v37 = vsub.f32 %v6859_v27, %v1256_v34 }
 0x106   :  { %6150 = vmatprep.subr.mxu1 %v6724_v35  ;;  %6148 = vmatmul.mubr.f32.vlgmr.msra.gmra.mxu0 %v6759_v55  ;;  %v637_v5 = vmul.f32 %v6649_v36, %v636_v56  ;;  %v1248_v36 = vand.u32 4294901760, %v1247_v33 }
 0x107   :  { %6159 = vmatprep.mubr.msk.f32.mxu0 %vm6725_vm2, %v6724_v35  ;;  %v1258_v38 = vand.u32 4294901760, %v1257_v37 }
 0x108   :  { %6143 = vmatmul.mubr.f32.vlgmr.msra.gmra.mxu1 %v730_v11 }
 0x109   :  { %6151 = vmatpush3.msra.mxu1 %v693_v28  ;;  %6152 = vmatprep.mubr.msk.f32.mxu1 %vm6725_vm2, %v6724_v35 }
 0x10a   :  { %6174 = vmatprep.subr.mxu1 %v6724_v35 }
 0x10c   :  { %6153 = vmatmul.mubr.f32.vlgmr.msra.gmra.mxu1 %v6759_v55  ;;  %v1217_v55 = vsub.f32 %v6802_v45, %v1216_v51 }
 0x10d   :  { %6178 = vmatprep.mubr.msk.f32.mxu1 %vm6725_vm2, %v6724_v35 }
 0x10e   :  { %v1218_v13 = vand.u32 4294901760, %v1217_v55 }
 0x10f   :  { %v6651_v58 = vpop.eup %6650 }
 0x110   :  { %v643_v60 = vmul.f32 0.6931472, %v6651_v58 }
 0x111   :  { %v6653_v63 = vpop.eup %6652 }
 0x112   :  { %v649_v3 = vsel %vm648_vm7, %v646_v61, %v643_v60  ;;  %v634_v4 = vmul.f32 0.6931472, %v6653_v63 }
 0x113   :  { %v651_v6 = vsel %vm627_vm8, %v6764_v7, %v649_v3  ;;  %v1236_v7 = vand.u32 4294901760, %v6825_v1 }
 0x114   :  { %v1145_v9 = vsel %vm1143_vm6, %v651_v6, 0  ;;  %v640_v10 = vsel %vm639_vm9, %v637_v5, %v634_v4 }
 0x115   :  { %v6834_v11 = vand.u32 4294901760, %v1145_v9  ;;  %v650_v12 = vsel %vm626_vm10, %v6768_v14, %v640_v10  ;;  %v1237_v25 = vsub.f32 %v6825_v1, %v1236_v7 }
 0x116   :  { %v6840_v16 = vand.u32 4294901760, %v650_v12 }
 0x117   :  { %v1294_v19 = vsub.f32 %v1145_v9, %v6834_v11  ;;  %6156 = vmatpush3.msra.mxu0 %v6834_v11  ;;  %v1238_v32 = vand.u32 4294901760, %v1237_v25 }
 0x118   :  { %v1301_v14 = vsub.f32 %v650_v12, %v6840_v16  ;;  %6157 = vmatprep.subr.mxu0 %v6724_v35 }
 0x119   :  { %6158 = vmatpush3.msra.mxu0 %v6840_v16  ;;  %v1295_v23 = vand.u32 4294901760, %v1294_v19 }
 0x11a   :  { %6160 = vmatmul.mubr.f32.vlgmr.msra.gmra.mxu0 %v1218_v13  ;;  %6193 = vmatprep.subr.mxu0 %v6724_v35  ;;  %v1302_v24 = vand.u32 4294901760, %v1301_v14 }
 0x11b   :  { %6194 = vmatpush3.msra.mxu0 %v1294_v19  ;;  %6162 = vmatprep.mubr.msk.f32.mxu0 %vm6725_vm2, %v6724_v35  ;;  %v1296_v28 = vsub.f32 %v1294_v19, %v1295_v23 }
 0x11c   :  { %6195 = vmatprep.subr.mxu0 %v6724_v35  ;;  %v1303_v29 = vsub.f32 %v1301_v14, %v1302_v24 }
 0x11d   :  { %6196 = vmatpush3.msra.mxu0 %v1301_v14  ;;  %v1297_v30 = vand.u32 4294901760, %v1296_v28 }
 0x11e   :  { %6163 = vmatmul.mubr.f32.gmra.mxu0 %v1228_v20  ;;  %v1304_v31 = vand.u32 4294901760, %v1303_v29  ;;  %6231 = vmatprep.subr.mxu0 %v6724_v35 }
 0x11f   :  { %6175 = vmatpush3.msra.mxu1 %v1297_v30  ;;  %6165 = vmatprep.mubr.msk.f32.mxu0 %vm6725_vm2, %v6724_v35 }
 0x120   :  { %6176 = vmatprep.subr.mxu1 %v6724_v35 }
 0x121   :  { %6177 = vmatpush3.msra.mxu1 %v1304_v31 }
 0x122   :  { %6166 = vmatmul.mubr.f32.gmra.mxu0 %v1238_v32  ;;  %6179 = vmatmul.mubr.f32.vlgmr.msra.gmra.mxu1 %v6792_v41 }
 0x123   :  { %6212 = vmatprep.subr.mxu1 %v6724_v35  ;;  %6168 = vmatprep.mubr.msk.f32.mxu0 %vm6725_vm2, %v6724_v35 }
 0x124   :  { %6213 = vmatpush3.msra.mxu1 %v6834_v11  ;;  %6181 = vmatprep.mubr.msk.f32.mxu1 %vm6725_vm2, %v6724_v35 }
 0x125   :  { %6214 = vmatprep.subr.mxu1 %v6724_v35 }
 0x126   :  { %6215 = vmatpush3.msra.mxu1 %v6840_v16  ;;  %6169 = vmatmul.mubr.f32.gmra.mxu0 %v1248_v36 }
 0x127   :  { %6182 = vmatmul.mubr.f32.gmra.mxu1 %v6806_v46  ;;  %6171 = vmatprep.mubr.msk.f32.mxu0 %vm6725_vm2, %v6724_v35 }
 0x128   :  { %6184 = vmatprep.mubr.msk.f32.mxu1 %vm6725_vm2, %v6724_v35  ;;  %6250 = vmatprep.subr.mxu1 %v6724_v35 }
 0x12a   :  { %6172 = vmatmul.mubr.f32.gmra.mxu0 %v1258_v38 }
 0x12b   :  { %6185 = vmatmul.mubr.f32.gmra.mxu1 %v6817_v54  ;;  %6197 = vmatprep.mubr.msk.f32.mxu0 %vm6725_vm2, %v6724_v35 }
 0x12c   :  { %6187 = vmatprep.mubr.msk.f32.mxu1 %vm6725_vm2, %v6724_v35 }
 0x12e   :  { %6198 = vmatmul.mubr.f32.vlgmr.msra.gmra.mxu0 %v6802_v45 }
 0x12f   :  { %6188 = vmatmul.mubr.f32.gmra.mxu1 %v6827_v2  ;;  %6232 = vmatpush3.msra.mxu0 %v1295_v23 }
 0x130   :  { %6233 = vmatprep.subr.mxu0 %v6724_v35  ;;  %6190 = vmatprep.mubr.msk.f32.mxu1 %vm6725_vm2, %v6724_v35 }
 0x131   :  { %6234 = vmatpush3.msra.mxu0 %v1302_v24  ;;  %6200 = vmatprep.mubr.msk.f32.mxu0 %vm6725_vm2, %v6724_v35 }
 0x132   :  { %6201 = vmatmul.mubr.f32.gmra.mxu0 %v6813_v53  ;;  %6269 = vmatprep.subr.mxu0 %v6724_v35 }
 0x133   :  { %6191 = vmatmul.mubr.f32.gmra.mxu1 %v6846_v18  ;;  %6203 = vmatprep.mubr.msk.f32.mxu0 %vm6725_vm2, %v6724_v35 }
 0x134   :  { %6216 = vmatprep.mubr.msk.f32.mxu1 %vm6725_vm2, %v6724_v35 }
 0x136   :  { %6204 = vmatmul.mubr.f32.gmra.mxu0 %v6825_v1 }
 0x137   :  { %6217 = vmatmul.mubr.f32.vlgmr.msra.gmra.mxu1 %v1216_v51  ;;  %6206 = vmatprep.mubr.msk.f32.mxu0 %vm6725_vm2, %v6724_v35 }
 0x138   :  { %6251 = vmatpush3.msra.mxu1 %v6834_v11  ;;  %6219 = vmatprep.mubr.msk.f32.mxu1 %vm6725_vm2, %v6724_v35 }
 0x139   :  { %6252 = vmatprep.subr.mxu1 %v6724_v35 }
 0x13a   :  { %6253 = vmatpush3.msra.mxu1 %v6840_v16  ;;  %6207 = vmatmul.mubr.f32.gmra.mxu0 %v6844_v17 }
 0x13b   :  { %6220 = vmatmul.mubr.f32.gmra.mxu1 %v1226_v0  ;;  %6209 = vmatprep.mubr.msk.f32.mxu0 %vm6725_vm2, %v6724_v35 }
 0x13c   :  { %6222 = vmatprep.mubr.msk.f32.mxu1 %vm6725_vm2, %v6724_v35  ;;  %6274 = vmatprep.subr.mxu1 %v6724_v35 }
 0x13e   :  { %6210 = vmatmul.mubr.f32.gmra.mxu0 %v6859_v27 }
 0x13f   :  { %6223 = vmatmul.mubr.f32.gmra.mxu1 %v1236_v7  ;;  %6235 = vmatprep.mubr.msk.f32.mxu0 %vm6725_vm2, %v6724_v35 }
 0x140   :  { %6225 = vmatprep.mubr.msk.f32.mxu1 %vm6725_vm2, %v6724_v35 }
 0x142   :  { %6236 = vmatmul.mubr.f32.vlgmr.msra.gmra.mxu0 %v6792_v41 }
 0x143   :  { %6226 = vmatmul.mubr.f32.gmra.mxu1 %v1246_v26  ;;  %6238 = vmatprep.mubr.msk.f32.mxu0 %vm6725_vm2, %v6724_v35 }
 0x144   :  { %6228 = vmatprep.mubr.msk.f32.mxu1 %vm6725_vm2, %v6724_v35 }
 0x146   :  { %6239 = vmatmul.mubr.f32.gmra.mxu0 %v6806_v46 }
 0x147   :  { %6229 = vmatmul.mubr.f32.gmra.mxu1 %v1256_v34  ;;  %6241 = vmatprep.mubr.msk.f32.mxu0 %vm6725_vm2, %v6724_v35 }
 0x148   :  { %6254 = vmatprep.mubr.msk.f32.mxu1 %vm6725_vm2, %v6724_v35 }
 0x14a   :  { %6242 = vmatmul.mubr.f32.gmra.mxu0 %v6817_v54 }
 0x14b   :  { %6255 = vmatmul.mubr.f32.vlgmr.msra.gmra.mxu1 %v6792_v41  ;;  %6244 = vmatprep.mubr.msk.f32.mxu0 %vm6725_vm2, %v6724_v35 }
 0x14c   :  { %6257 = vmatprep.mubr.msk.f32.mxu1 %vm6725_vm2, %v6724_v35 }
 0x14e   :  { %6245 = vmatmul.mubr.f32.gmra.mxu0 %v6827_v2 }
 0x14f   :  { %6258 = vmatmul.mubr.f32.gmra.mxu1 %v6806_v46  ;;  %6247 = vmatprep.mubr.msk.f32.mxu0 %vm6725_vm2, %v6724_v35 }
 0x150   :  { %6260 = vmatprep.mubr.msk.f32.mxu1 %vm6725_vm2, %v6724_v35 }
 0x152   :  { %6248 = vmatmul.mubr.f32.gmra.mxu0 %v6846_v18 }
 0x153   :  { %6261 = vmatmul.mubr.f32.gmra.mxu1 %v6817_v54  ;;  %6271 = vmatprep.mubr.msk.f32.mxu0 %vm6725_vm2, %v6724_v35 }
 0x154   :  { %6263 = vmatprep.mubr.msk.f32.mxu1 %vm6725_vm2, %v6724_v35 }
 0x157   :  { %6264 = vmatmul.mubr.f32.gmra.mxu1 %v6827_v2 }
 0x158   :  { %6266 = vmatprep.mubr.msk.f32.mxu1 %vm6725_vm2, %v6724_v35 }
 0x15b   :  { %6267 = vmatmul.mubr.f32.gmra.mxu1 %v6846_v18 }
 0x15c   :  { %6276 = vmatprep.mubr.msk.f32.mxu1 %vm6725_vm2, %v6724_v35 }
 0x1bc   :  { %v734_v39 = vpop.f32.mrf.mxu0 }
 0x1be   :  { %v6129_v40 = vpop.f32.mrf.mxu0 }
 0x1c0   :  { %v884_v41 = vpop.f32.mrf.mxu0 }
 0x1c2   :  { %v6139_v42 = vpop.f32.mrf.mxu0 }
 0x1c4   :  { %v810_v43 = vpop.f32.mrf.mxu1 }
 0x1c5   :  { %v811_v44 = vadd.f32 %v810_v43, %v734_v39 }
 0x1c6   :  { %v6134_v45 = vpop.f32.mrf.mxu1  ;;  %v1032_v46 = vpop.f32.mrf.mxu0 }
 0x1c7   :  { %v885_v47 = vadd.f32 %v884_v41, %v811_v44 }
 0x1c8   :  { %v958_v48 = vpop.f32.mrf.mxu1  ;;  %v6149_v49 = vpop.f32.mrf.mxu0 }
 0x1c9   :  { %v959_v50 = vadd.f32 %v958_v48, %v885_v47 }
 0x1ca   :  { %v6144_v51 = vpop.f32.mrf.mxu1 }
 0x1cb   :  { %v1033_v52 = vadd.f32 %v1032_v46, %v959_v50 }
 0x1cc   :  { %v1104_v53 = vpop.f32.mrf.mxu1 }
 0x1cd   :  { %v1105_v54 = vadd.f32 %v1104_v53, %v1033_v52 }
 0x1ce   :  { %v6154_v56 = vpop.f32.mrf.mxu1 }
 0x1cf   :  { %v6969_v57 = vadd.f32 %v1105_v54, %v6771_v21 }
 0x1d1   :  { %v1110_v33 = vmul.f32 1.442695, %v6969_v57  ;;  %vm1109_vm14 = vcmp.gt.f32.partialorder %v6969_v57, 20.0 }
 0x1d3   :  { %6654 = vpow2.f32 %v1110_v33 }
 0x1da   :  { %v1220_v58 = vpop.f32.mrf.mxu0 }
 0x1dc   :  { %v6161_v59 = vpop.f32.mrf.mxu0 }
 0x1de   :  { %v1230_v60 = vpop.f32.mrf.mxu0 }
 0x1e0   :  { %v6164_v61 = vpop.f32.mrf.mxu0 }
 0x1e2   :  { %v1240_v55 = vpop.f32.mrf.mxu0  ;;  %v1341_v62 = vpop.f32.mrf.mxu1 }
 0x1e3   :  { %v1342_v37 = vadd.f32 %v1341_v62, %v1220_v58 }
 0x1e4   :  { %v6167_v63 = vpop.f32.mrf.mxu0  ;;  %v6180_v0 = vpop.f32.mrf.mxu1 }
 0x1e6   :  { %v1250_v1 = vpop.f32.mrf.mxu0 }
 0x1e7   :  { %v1347_v2 = vpop.f32.mrf.mxu1 }
 0x1e8   :  { %v6170_v3 = vpop.f32.mrf.mxu0  ;;  %v1348_v43 = vadd.f32 %v1347_v2, %v1230_v60 }
 0x1e9   :  { %v6183_v4 = vpop.f32.mrf.mxu1 }
 0x1ea   :  { %v1260_v5 = vpop.f32.mrf.mxu0 }
 0x1eb   :  { %v1353_v6 = vpop.f32.mrf.mxu1 }
 0x1ec   :  { %v6173_v8 = vpop.f32.mrf.mxu0  ;;  %v1354_v52 = vadd.f32 %v1353_v6, %v1240_v55  ;;  %v6655_v55 = vpop.eup %6654 }
 0x1ed   :  { %v6186_v9 = vpop.f32.mrf.mxu1 }
 0x1ee   :  { %v1441_v10 = vpop.f32.mrf.mxu0 }
 0x1ef   :  { %v1359_v11 = vpop.f32.mrf.mxu1  ;;  %v1442_v40 = vadd.f32 %v1441_v10, %v1342_v37 }
 0x1f0   :  { %v6971_v21 = vadd.f32 %v1359_v11, %v1250_v1  ;;  %v6199_v12 = vpop.f32.mrf.mxu0 }
 0x1f1   :  { %v6189_v13 = vpop.f32.mrf.mxu1 }
 0x1f2   :  { %v1448_v15 = vpop.f32.mrf.mxu0  ;;  %v1112_v13 = vadd.f32 1.0, %v6655_v55 }
 0x1f3   :  { %v1365_v16 = vpop.f32.mrf.mxu1  ;;  %v1449_v48 = vadd.f32 %v1448_v15, %v1348_v43 }
 0x1f4   :  { %v1366_v7 = vadd.f32 %v1365_v16, %v1260_v5  ;;  %v6202_v17 = vpop.f32.mrf.mxu0 }
 0x1f5   :  { %v6192_v18 = vpop.f32.mrf.mxu1 }
 0x1f6   :  { %v1455_v19 = vpop.f32.mrf.mxu0 }
 0x1f7   :  { %v1544_v14 = vpop.f32.mrf.mxu1  ;;  %v1456_v59 = vadd.f32 %v1455_v19, %v1354_v52 }
 0x1f8   :  { %v6205_v20 = vpop.f32.mrf.mxu0  ;;  %v1545_v44 = vadd.f32 %v1544_v14, %v1442_v40  ;;  %v1793_v14 = vld [vmem:[#allocation2 + $0x90] sm:$0xff]  ;;  %v1118_v40 = vand.u32 2147483647, %v6655_v55 }
 0x1f9   :  { %v6218_v23 = vpop.f32.mrf.mxu1 }
 0x1fa   :  { %v6973_v24 = vpop.f32.mrf.mxu0  ;;  %vm1119_vm12 = vcmp.lt.f32.partialorder %v1118_v40, 0.0004427343 }
 0x1fb   :  { %v1552_v25 = vpop.f32.mrf.mxu1 }
 0x1fc   :  { %v6208_v26 = vpop.f32.mrf.mxu0  ;;  %v1553_v53 = vadd.f32 %v1552_v25, %v1449_v48  ;;  %v1796_v25 = vsel %vm1794_vm11, %v1793_v14, 0 }
 0x1fd   :  { %v6221_v27 = vpop.f32.mrf.mxu1  ;;  %v6990_v26 = vand.u32 4294901760, %v1796_v25 }
 0x1fe   :  { %v1469_v28 = vpop.f32.mrf.mxu0 }
 0x1ff   :  { %v1470_v29 = vadd.f32 %v1469_v28, %v1366_v7  ;;  %v1560_v30 = vpop.f32.mrf.mxu1  ;;  %v1115_v28 = vmul.f32 -0.5, %v6655_v55  ;;  %v6998_v37 = vsub.f32 %v1796_v25, %v6990_v26 }
 0x200   :  { %v6211_v31 = vpop.f32.mrf.mxu0  ;;  %v1561_v0 = vadd.f32 %v1560_v30, %v1456_v59  ;;  %v1463_v30 = vadd.f32 %v6973_v24, %v6971_v21 }
 0x201   :  { %v6224_v32 = vpop.f32.mrf.mxu1  ;;  %v1866_v21 = vand.u32 4294901760, %v6998_v37 }
 0x202   :  { %v1653_v34 = vpop.f32.mrf.mxu0 }
 0x203   :  { %v6976_v36 = vpop.f32.mrf.mxu1  ;;  %v1654_v49 = vadd.f32 %v1653_v34, %v1545_v44  ;;  %v2245_v44 = vld [vmem:[#allocation2 + $0x98] sm:$0xff]  ;;  %v1867_v52 = vsub.f32 %v6998_v37, %v1866_v21 }
 0x204   :  { %v6237_v38 = vpop.f32.mrf.mxu0  ;;  %v1569_v34 = vadd.f32 %v6976_v36, %v1463_v30  ;;  %v2247_v36 = vsel %vm654_vm3, %v2245_v44, 0 }
 0x205   :  { %v6227_v39 = vpop.f32.mrf.mxu1  ;;  %v1116_v38 = vadd.f32 1.0, %v1115_v28 }
 0x206   :  { %v1659_v41 = vpop.f32.mrf.mxu0 }
 0x207   :  { %v1576_v42 = vpop.f32.mrf.mxu1  ;;  %v1660_v61 = vadd.f32 %v1659_v41, %v1553_v53  ;;  %v1117_v24 = vmul.f32 %v6655_v55, %v1116_v38  ;;  %v2740_v38 = vld [vmem:[#allocation2 + $0x58] sm:$0xff] }
 0x208   :  { %v1577_v45 = vadd.f32 %v1576_v42, %v1470_v29  ;;  %v6240_v46 = vpop.f32.mrf.mxu0 }
 0x209   :  { %v6230_v47 = vpop.f32.mrf.mxu1 }
 0x20a   :  { %v1665_v50 = vpop.f32.mrf.mxu0 }
 0x20b   :  { %v1750_v51 = vpop.f32.mrf.mxu1  ;;  %v1666_v4 = vadd.f32 %v1665_v50, %v1561_v0 }
 0x20c   :  { %v6978_v54 = vadd.f32 %v1750_v51, %v1654_v49  ;;  %v6243_v56 = vpop.f32.mrf.mxu0 }
 0x20d   :  { %v6256_v58 = vpop.f32.mrf.mxu1  ;;  %v7009_v56 = vand.u32 4294901760, %v2247_v36 }
 0x20e   :  { %v1779_v62 = vmul.f32 1.442695, %v6978_v54  ;;  %v1671_v63 = vpop.f32.mrf.mxu0  ;;  %vm1778_vm15 = vcmp.gt.f32.partialorder %v6978_v54, 20.0 }
 0x20f   :  { %v1756_v60 = vpop.f32.mrf.mxu1  ;;  %v1672_v41 = vadd.f32 %v1671_v63, %v1569_v34  ;;  %v7017_v0 = vsub.f32 %v2247_v36, %v7009_v56 }
 0x210   :  { %6656 = vpow2.f32 %v1779_v62  ;;  %v6981_v1 = vadd.f32 %v1756_v60, %v1660_v61  ;;  %v6246_v2 = vpop.f32.mrf.mxu0 }
 0x211   :  { %v6259_v3 = vpop.f32.mrf.mxu1 }
 0x212   :  { %v1677_v5 = vpop.f32.mrf.mxu0  ;;  %v2714_v6 = vmul.f32 1.442695, %v6981_v1  ;;  %vm2712_vm8 = vcmp.gt.f32.partialorder %v6981_v1, 20.0 }
 0x213   :  { %v1678_v8 = vadd.f32 %v1677_v5, %v1577_v45  ;;  %v1762_v9 = vpop.f32.mrf.mxu1 }
 0x214   :  { %v6984_v10 = vadd.f32 %v1762_v9, %v1666_v4  ;;  %v6249_v11 = vpop.f32.mrf.mxu0  ;;  %6658 = vpow2.f32 %v2714_v6  ;;  %v2320_v9 = vand.u32 4294901760, %v7017_v0 }
 0x215   :  { %v6262_v12 = vpop.f32.mrf.mxu1 }
 0x216   :  { %v2716_v15 = vmul.f32 1.442695, %v6984_v10  ;;  %v2321_v28 = vsub.f32 %v7017_v0, %v2320_v9  ;;  %vm2713_vm1 = vcmp.gt.f32.partialorder %v6984_v10, 20.0 }
 0x217   :  { %v1768_v16 = vpop.f32.mrf.mxu1 }
 0x218   :  { %6660 = vpow2.f32 %v2716_v15  ;;  %v1769_v46 = vadd.f32 %v1768_v16, %v1672_v41 }
 0x219   :  { %v6265_v7 = vpop.f32.mrf.mxu1  ;;  %6662 = vlog2.f32 %v1112_v13 }
 0x21a   :  { %v1792_v51 = vmul.f32 %v1769_v46, %v6776_v22  ;;  %v1868_v22 = vand.u32 4294901760, %v1867_v52 }
 0x21b   :  { %v1774_v17 = vpop.f32.mrf.mxu1 }
 0x21c   :  { %v6987_v18 = vadd.f32 %v1774_v17, %v1678_v8  ;;  %v2250_v63 = vsel %vm658_vm4, %v1792_v51, 0 }
 0x21d   :  { %v6657_v19 = vpop.eup %6656  ;;  %v6268_v20 = vpop.f32.mrf.mxu1  ;;  %v7020_v55 = vand.u32 4294901760, %v2250_v63 }
 0x21e   :  { %v1781_v23 = vadd.f32 1.0, %v6657_v19  ;;  %v1784_v31 = vmul.f32 -0.5, %v6657_v19  ;;  %v1787_v45 = vand.u32 2147483647, %v6657_v19  ;;  %v2739_v20 = vld [vmem:[#allocation2 + $0x50] sm:$0xff] }
 0x21f   :  { %v2360_v7 = vsub.f32 %v2250_v63, %v7020_v55 }
 0x220   :  { %6664 = vlog2.f32 %v1781_v23  ;;  %v1785_v43 = vadd.f32 1.0, %v1784_v31  ;;  %vm1788_vm13 = vcmp.lt.f32.partialorder %v1787_v45, 0.0004427343  ;;  %v2741_v45 = vld [vmem:[#allocation2 + $0x60] sm:$0xff] }
 0x221   :  { %v6992_v27 = vpop.eup %6658 }
 0x222   :  { %v2718_v39 = vadd.f32 1.0, %v6992_v27  ;;  %v1786_v50 = vmul.f32 %v6657_v19, %v1785_v43  ;;  %v2721_v4 = vmul.f32 -0.5, %v6992_v27  ;;  %v2724_v19 = vand.u32 2147483647, %v6992_v27 }
 0x223   :  { %v2750_v43 = vsel %vm1127_vm5, %v2740_v38, 0 }
 0x224   :  { %v2722_v15 = vadd.f32 1.0, %v2721_v4  ;;  %vm7051_vm7 = vcmp.lt.f32.partialorder %v2724_v19, 0.0004427343 }
 0x225   :  { %v6661_v29 = vpop.eup %6660 }
 0x226   :  { %v2727_v32 = vadd.f32 1.0, %v6661_v29  ;;  %v6663_v33 = vpop.eup %6662  ;;  %v2730_v61 = vmul.f32 -0.5, %v6661_v29  ;;  %v2733_v5 = vand.u32 2147483647, %v6661_v29  ;;  %v2723_v30 = vmul.f32 %v6992_v27, %v2722_v15 }
 0x227   :  { %v1114_v42 = vmul.f32 0.6931472, %v6663_v33  ;;  %v2747_v33 = vsel %vm1127_vm5, %v2739_v20, 0 }
 0x228   :  { %6666 = vlog2.f32 %v2727_v32  ;;  %v2731_v3 = vadd.f32 1.0, %v2730_v61  ;;  %vm7030_vm0 = vcmp.lt.f32.partialorder %v2733_v5, 0.0004427343  ;;  %v2361_v32 = vand.u32 4294901760, %v2360_v7 }
 0x229   :  { %6668 = vlog2.f32 %v2718_v39  ;;  %v1120_v48 = vsel %vm1119_vm12, %v1117_v24, %v1114_v42  ;;  %v7068_v41 = vand.u32 4294901760, %v2747_v33 }
 0x22a   :  { %v1121_v58 = vsel %vm1109_vm14, %v6969_v57, %v1120_v48  ;;  %v2732_v12 = vmul.f32 %v6661_v29, %v2731_v3  ;;  %v2362_v42 = vsub.f32 %v2360_v7, %v2361_v32  ;;  %v2742_v48 = vld [vmem:[#allocation2 + $0x68] sm:$0xff] }
 0x22d   :  { %v6665_v47 = vpop.eup %6664 }
 0x22e   :  { %v1783_v49 = vmul.f32 0.6931472, %v6665_v47  ;;  %v7086_v47 = vsub.f32 %v2747_v33, %v7068_v41 }
 0x230   :  { %v1789_v53 = vsel %vm1788_vm13, %v1786_v50, %v1783_v49  ;;  %v2840_v51 = vand.u32 4294901760, %v7086_v47 }
 0x231   :  { %v1790_v59 = vsel %vm1778_vm15, %v6978_v54, %v1789_v53  ;;  %v2738_v54 = vld [vmem:[#allocation2 + $0x48] sm:$0xff] }
 0x232   :  { %v1791_v62 = vmul.f32 %v1790_v59, %v1121_v58  ;;  %v2744_v13 = vsel %vm1127_vm5, %v2738_v54, 0  ;;  %v2756_v58 = vsel %vm1127_vm5, %v2742_v48, 0 }
 0x233   :  { %v7044_v29 = vand.u32 4294901760, %v2744_v13 }
 0x234   :  { %v7014_v60 = vand.u32 4294901760, %v1791_v62 }
 0x235   :  { %v6667_v2 = vpop.eup %6666  ;;  %v7062_v27 = vsub.f32 %v2744_v13, %v7044_v29 }
 0x236   :  { %6270 = vmatpush3.msra.mxu0 %v7014_v60  ;;  %v1906_v57 = vsub.f32 %v1791_v62, %v7014_v60  ;;  %v2729_v6 = vmul.f32 0.6931472, %v6667_v2  ;;  %v6669_v11 = vpop.eup %6668  ;;  %v2841_v62 = vsub.f32 %v7086_v47, %v2840_v51 }
 0x237   :  { %6272 = vmatmul.mubr.f32.vlgmr.msra.gmra.mxu0 %v1868_v22  ;;  %6279 = vmatprep.subr.mxu0 %v6724_v35  ;;  %v2720_v23 = vmul.f32 0.6931472, %v6669_v11  ;;  %v2830_v24 = vand.u32 4294901760, %v7062_v27 }
 0x238   :  { %6280 = vmatpush3.msra.mxu0 %v1906_v57  ;;  %6281 = vmatprep.mubr.msk.f32.mxu0 %vm6725_vm2, %v6724_v35  ;;  %v1907_v8 = vand.u32 4294901760, %v1906_v57  ;;  %v2735_v14 = vsel %vm7030_vm0, %v2732_v12, %v2729_v6  ;;  %v2842_v4 = vand.u32 4294901760, %v2841_v62 }
 0x239   :  { %6289 = vmatprep.subr.mxu0 %v6724_v35  ;;  %v2737_v31 = vsel %vm2713_vm1, %v6984_v10, %v2735_v14  ;;  %v2726_v39 = vsel %vm7051_vm7, %v2723_v30, %v2720_v23  ;;  %v2322_v10 = vand.u32 4294901760, %v2321_v28  ;;  %v2831_v50 = vsub.f32 %v7062_v27, %v2830_v24 }
 0x23a   :  { %v1908_v17 = vsub.f32 %v1906_v57, %v1907_v8  ;;  %v2759_v40 = vsel %vm1143_vm6, %v2737_v31, 0  ;;  %v2736_v44 = vsel %vm2712_vm8, %v6981_v1, %v2726_v39  ;;  %v7088_v1 = vand.u32 4294901760, %v2750_v43 }
 0x23b   :  { %6282 = vmatmul.mubr.f32.vlgmr.msra.gmra.mxu0 %v6998_v37  ;;  %v7079_v46 = vand.u32 4294901760, %v2759_v40  ;;  %v7090_v36 = vand.u32 4294901760, %v2736_v44  ;;  %v2363_v37 = vand.u32 4294901760, %v2362_v42  ;;  %v2832_v59 = vand.u32 4294901760, %v2831_v50 }
 0x23c   :  { %6290 = vmatpush3.msra.mxu0 %v1907_v8  ;;  %v1909_v25 = vand.u32 4294901760, %v1908_v17  ;;  %6291 = vmatprep.mubr.msk.f32.mxu0 %vm6725_vm2, %v6724_v35  ;;  %v7109_v52 = vsub.f32 %v2750_v43, %v7088_v1 }
 0x23d   :  { %6299 = vmatprep.subr.mxu0 %v6724_v35  ;;  %v7099_v49 = vsub.f32 %v2759_v40, %v7079_v46  ;;  %v7114_v53 = vsub.f32 %v2736_v44, %v7090_v36 }
 0x23e   :  { %6275 = vmatpush3.msra.mxu1 %v1909_v25  ;;  %v2850_v63 = vand.u32 4294901760, %v7109_v52 }
 0x23f   :  { %6277 = vmatmul.mubr.f32.vlgmr.msra.gmra.mxu1 %v6990_v26  ;;  %6284 = vmatprep.subr.mxu1 %v6724_v35  ;;  %v2909_v61 = vand.u32 4294901760, %v7099_v49  ;;  %v2916_v2 = vand.u32 4294901760, %v7114_v53 }
 0x240   :  { %6292 = vmatmul.mubr.f32.vlgmr.msra.gmra.mxu0 %v6990_v26  ;;  %6285 = vmatpush3.msra.mxu1 %v7014_v60  ;;  %v2851_v5 = vsub.f32 %v7109_v52, %v2850_v63 }
 0x241   :  { %6300 = vmatpush3.msra.mxu0 %v7020_v55  ;;  %6286 = vmatprep.mubr.msk.f32.mxu1 %vm6725_vm2, %v6724_v35  ;;  %v2910_v3 = vsub.f32 %v7099_v49, %v2909_v61 }
 0x242   :  { %6294 = vmatprep.subr.mxu1 %v6724_v35  ;;  %6301 = vmatprep.mubr.msk.f32.mxu0 %vm6725_vm2, %v6724_v35  ;;  %v2852_v6 = vand.u32 4294901760, %v2851_v5 }
 0x243   :  { %6309 = vmatprep.subr.mxu0 %v6724_v35  ;;  %6287 = vmatmul.mubr.f32.vlgmr.msra.gmra.mxu1 %v1866_v21  ;;  %v2753_v21 = vsel %vm1127_vm5, %v2741_v45, 0 }
 0x244   :  { %6295 = vmatpush3.msra.mxu1 %v7014_v60  ;;  %6302 = vmatmul.mubr.f32.vlgmr.msra.gmra.mxu0 %v2322_v10  ;;  %v7135_v60 = vand.u32 4294901760, %v2756_v58 }
 0x245   :  { %6310 = vmatpush3.msra.mxu0 %v2360_v7  ;;  %6296 = vmatprep.mubr.msk.f32.mxu1 %vm6725_vm2, %v6724_v35 }
 0x246   :  { %6304 = vmatprep.subr.mxu1 %v6724_v35  ;;  %6311 = vmatprep.mubr.msk.f32.mxu0 %vm6725_vm2, %v6724_v35  ;;  %v7153_v54 = vsub.f32 %v2756_v58, %v7135_v60 }
 0x247   :  { %6319 = vmatprep.subr.mxu0 %v6724_v35  ;;  %6297 = vmatmul.mubr.f32.vlgmr.msra.gmra.mxu1 %v6990_v26  ;;  %v7111_v26 = vand.u32 4294901760, %v2753_v21 }
 0x248   :  { %6305 = vmatpush3.msra.mxu1 %v2363_v37  ;;  %6312 = vmatmul.mubr.f32.vlgmr.msra.gmra.mxu0 %v7017_v0  ;;  %v2917_v0 = vsub.f32 %v7114_v53, %v2916_v2 }
 0x249   :  { %6320 = vmatpush3.msra.mxu0 %v2361_v32  ;;  %6306 = vmatprep.mubr.msk.f32.mxu1 %vm6725_vm2, %v6724_v35  ;;  %v7133_v22 = vsub.f32 %v2753_v21, %v7111_v26 }
 0x24a   :  { %6314 = vmatprep.subr.mxu1 %v6724_v35  ;;  %6321 = vmatprep.mubr.msk.f32.mxu0 %vm6725_vm2, %v6724_v35  ;;  %v2918_v11 = vand.u32 4294901760, %v2917_v0 }
 0x24b   :  { %6329 = vmatprep.subr.mxu0 %v6724_v35  ;;  %6307 = vmatmul.mubr.f32.vlgmr.msra.gmra.mxu1 %v7009_v56  ;;  %v2860_v57 = vand.u32 4294901760, %v7133_v22 }
 0x24c   :  { %6315 = vmatpush3.msra.mxu1 %v7020_v55  ;;  %6322 = vmatmul.mubr.f32.vlgmr.msra.gmra.mxu0 %v7009_v56 }
 0x24d   :  { %6330 = vmatpush3.msra.mxu0 %v7079_v46  ;;  %6316 = vmatprep.mubr.msk.f32.mxu1 %vm6725_vm2, %v6724_v35  ;;  %v2861_v8 = vsub.f32 %v7133_v22, %v2860_v57 }
 0x24e   :  { %6331 = vmatprep.subr.mxu0 %v6724_v35  ;;  %6324 = vmatprep.subr.mxu1 %v6724_v35 }
 0x24f   :  { %6332 = vmatpush3.msra.mxu0 %v7090_v36  ;;  %6333 = vmatprep.mubr.msk.f32.mxu0 %vm6725_vm2, %v6724_v35 }
 0x250   :  { %6367 = vmatprep.subr.mxu0 %v6724_v35  ;;  %6317 = vmatmul.mubr.f32.vlgmr.msra.gmra.mxu1 %v2320_v9  ;;  %v2870_v9 = vand.u32 4294901760, %v7153_v54 }
 0x251   :  { %6325 = vmatpush3.msra.mxu1 %v7020_v55  ;;  %6334 = vmatmul.mubr.f32.vlgmr.msra.gmra.mxu0 %v2832_v59  ;;  %v2911_v55 = vand.u32 4294901760, %v2910_v3 }
 0x252   :  { %6368 = vmatpush3.msra.mxu0 %v7099_v49  ;;  %6326 = vmatprep.mubr.msk.f32.mxu1 %vm6725_vm2, %v6724_v35  ;;  %v2871_v12 = vsub.f32 %v7153_v54, %v2870_v9 }
 0x253   :  { %6369 = vmatprep.subr.mxu0 %v6724_v35  ;;  %6336 = vmatprep.mubr.msk.f32.mxu0 %vm6725_vm2, %v6724_v35 }
 0x254   :  { %6370 = vmatpush3.msra.mxu0 %v7114_v53  ;;  %6348 = vmatprep.subr.mxu1 %v6724_v35  ;;  %v2872_v13 = vand.u32 4294901760, %v2871_v12 }
 0x255   :  { %6327 = vmatmul.mubr.f32.vlgmr.msra.gmra.mxu1 %v7009_v56  ;;  %6337 = vmatmul.mubr.f32.gmra.mxu0 %v2842_v4  ;;  %v2862_v56 = vand.u32 4294901760, %v2861_v8 }
 0x256   :  { %6349 = vmatpush3.msra.mxu1 %v2911_v55  ;;  %6339 = vmatprep.mubr.msk.f32.mxu0 %vm6725_vm2, %v6724_v35 }
 0x257   :  { %6350 = vmatprep.subr.mxu1 %v6724_v35  ;;  %6352 = vmatprep.mubr.msk.f32.mxu1 %vm6725_vm2, %v6724_v35 }
 0x258   :  { %6351 = vmatpush3.msra.mxu1 %v2918_v11  ;;  %6405 = vmatprep.subr.mxu0 %v6724_v35 }
 0x259   :  { %6386 = vmatprep.subr.mxu1 %v6724_v35  ;;  %6340 = vmatmul.mubr.f32.gmra.mxu0 %v2852_v6 }
 0x25a   :  { %6353 = vmatmul.mubr.f32.vlgmr.msra.gmra.mxu1 %v7044_v29  ;;  %6342 = vmatprep.mubr.msk.f32.mxu0 %vm6725_vm2, %v6724_v35 }
 0x25b   :  { %6387 = vmatpush3.msra.mxu1 %v7079_v46  ;;  %6355 = vmatprep.mubr.msk.f32.mxu1 %vm6725_vm2, %v6724_v35 }
 0x25c   :  { %6388 = vmatprep.subr.mxu1 %v6724_v35 }
 0x25d   :  { %6389 = vmatpush3.msra.mxu1 %v7090_v36  ;;  %6343 = vmatmul.mubr.f32.gmra.mxu0 %v2862_v56 }
 0x25e   :  { %6356 = vmatmul.mubr.f32.gmra.mxu1 %v7068_v41  ;;  %6345 = vmatprep.mubr.msk.f32.mxu0 %vm6725_vm2, %v6724_v35 }
 0x25f   :  { %6358 = vmatprep.mubr.msk.f32.mxu1 %vm6725_vm2, %v6724_v35  ;;  %6424 = vmatprep.subr.mxu1 %v6724_v35 }
 0x261   :  { %6346 = vmatmul.mubr.f32.gmra.mxu0 %v2872_v13 }
 0x262   :  { %6359 = vmatmul.mubr.f32.gmra.mxu1 %v7088_v1  ;;  %6371 = vmatprep.mubr.msk.f32.mxu0 %vm6725_vm2, %v6724_v35 }
 0x263   :  { %6361 = vmatprep.mubr.msk.f32.mxu1 %vm6725_vm2, %v6724_v35 }
 0x265   :  { %6372 = vmatmul.mubr.f32.vlgmr.msra.gmra.mxu0 %v7062_v27 }
 0x266   :  { %6362 = vmatmul.mubr.f32.gmra.mxu1 %v7111_v26  ;;  %6406 = vmatpush3.msra.mxu0 %v2909_v61 }
 0x267   :  { %6407 = vmatprep.subr.mxu0 %v6724_v35  ;;  %6364 = vmatprep.mubr.msk.f32.mxu1 %vm6725_vm2, %v6724_v35 }
 0x268   :  { %6408 = vmatpush3.msra.mxu0 %v2916_v2  ;;  %6374 = vmatprep.mubr.msk.f32.mxu0 %vm6725_vm2, %v6724_v35 }
 0x269   :  { %6375 = vmatmul.mubr.f32.gmra.mxu0 %v7086_v47  ;;  %6443 = vmatprep.subr.mxu0 %v6724_v35 }
 0x26a   :  { %6365 = vmatmul.mubr.f32.gmra.mxu1 %v7135_v60  ;;  %6377 = vmatprep.mubr.msk.f32.mxu0 %vm6725_vm2, %v6724_v35 }
 0x26b   :  { %6390 = vmatprep.mubr.msk.f32.mxu1 %vm6725_vm2, %v6724_v35 }
 0x26d   :  { %6378 = vmatmul.mubr.f32.gmra.mxu0 %v7109_v52 }
 0x26e   :  { %6391 = vmatmul.mubr.f32.vlgmr.msra.gmra.mxu1 %v2830_v24  ;;  %6380 = vmatprep.mubr.msk.f32.mxu0 %vm6725_vm2, %v6724_v35 }
 0x26f   :  { %6425 = vmatpush3.msra.mxu1 %v7079_v46  ;;  %6393 = vmatprep.mubr.msk.f32.mxu1 %vm6725_vm2, %v6724_v35 }
 0x270   :  { %6426 = vmatprep.subr.mxu1 %v6724_v35 }
 0x271   :  { %6427 = vmatpush3.msra.mxu1 %v7090_v36  ;;  %6381 = vmatmul.mubr.f32.gmra.mxu0 %v7133_v22 }
 0x272   :  { %6394 = vmatmul.mubr.f32.gmra.mxu1 %v2840_v51  ;;  %6383 = vmatprep.mubr.msk.f32.mxu0 %vm6725_vm2, %v6724_v35 }
 0x273   :  { %6396 = vmatprep.mubr.msk.f32.mxu1 %vm6725_vm2, %v6724_v35  ;;  %6448 = vmatprep.subr.mxu1 %v6724_v35 }
 0x275   :  { %6384 = vmatmul.mubr.f32.gmra.mxu0 %v7153_v54 }
 0x276   :  { %6397 = vmatmul.mubr.f32.gmra.mxu1 %v2850_v63  ;;  %6409 = vmatprep.mubr.msk.f32.mxu0 %vm6725_vm2, %v6724_v35 }
 0x277   :  { %6399 = vmatprep.mubr.msk.f32.mxu1 %vm6725_vm2, %v6724_v35 }
 0x279   :  { %6410 = vmatmul.mubr.f32.vlgmr.msra.gmra.mxu0 %v7044_v29 }
 0x27a   :  { %6400 = vmatmul.mubr.f32.gmra.mxu1 %v2860_v57  ;;  %6412 = vmatprep.mubr.msk.f32.mxu0 %vm6725_vm2, %v6724_v35 }
 0x27b   :  { %6402 = vmatprep.mubr.msk.f32.mxu1 %vm6725_vm2, %v6724_v35 }
 0x27d   :  { %6413 = vmatmul.mubr.f32.gmra.mxu0 %v7068_v41 }
 0x27e   :  { %6403 = vmatmul.mubr.f32.gmra.mxu1 %v2870_v9  ;;  %6415 = vmatprep.mubr.msk.f32.mxu0 %vm6725_vm2, %v6724_v35 }
 0x27f   :  { %6428 = vmatprep.mubr.msk.f32.mxu1 %vm6725_vm2, %v6724_v35 }
 0x281   :  { %6416 = vmatmul.mubr.f32.gmra.mxu0 %v7088_v1 }
 0x282   :  { %6429 = vmatmul.mubr.f32.vlgmr.msra.gmra.mxu1 %v7044_v29  ;;  %6418 = vmatprep.mubr.msk.f32.mxu0 %vm6725_vm2, %v6724_v35 }
 0x283   :  { %6431 = vmatprep.mubr.msk.f32.mxu1 %vm6725_vm2, %v6724_v35 }
 0x285   :  { %6419 = vmatmul.mubr.f32.gmra.mxu0 %v7111_v26 }
 0x286   :  { %6432 = vmatmul.mubr.f32.gmra.mxu1 %v7068_v41  ;;  %6421 = vmatprep.mubr.msk.f32.mxu0 %vm6725_vm2, %v6724_v35 }
 0x287   :  { %6434 = vmatprep.mubr.msk.f32.mxu1 %vm6725_vm2, %v6724_v35 }
 0x289   :  { %6422 = vmatmul.mubr.f32.gmra.mxu0 %v7135_v60 }
 0x28a   :  { %6435 = vmatmul.mubr.f32.gmra.mxu1 %v7088_v1  ;;  %6445 = vmatprep.mubr.msk.f32.mxu0 %vm6725_vm2, %v6724_v35 }
 0x28b   :  { %6437 = vmatprep.mubr.msk.f32.mxu1 %vm6725_vm2, %v6724_v35 }
 0x28e   :  { %6438 = vmatmul.mubr.f32.gmra.mxu1 %v7111_v26 }
 0x28f   :  { %6440 = vmatprep.mubr.msk.f32.mxu1 %vm6725_vm2, %v6724_v35 }
 0x292   :  { %6441 = vmatmul.mubr.f32.gmra.mxu1 %v7135_v60 }
 0x293   :  { %6450 = vmatprep.mubr.msk.f32.mxu1 %vm6725_vm2, %v6724_v35 }
 0x2f7   :  { %v1870_v15 = vpop.f32.mrf.mxu0 }
 0x2f9   :  { %v6273_v16 = vpop.f32.mrf.mxu0 }
 0x2fb   :  { %v2020_v7 = vpop.f32.mrf.mxu0 }
 0x2fd   :  { %v6283_v17 = vpop.f32.mrf.mxu0 }
 0x2ff   :  { %v1946_v19 = vpop.f32.mrf.mxu1 }
 0x300   :  { %v2168_v14 = vpop.f32.mrf.mxu0  ;;  %v1947_v49 = vadd.f32 %v1946_v19, %v1870_v15 }
 0x301   :  { %v6278_v20 = vpop.f32.mrf.mxu1 }
 0x302   :  { %v6293_v23 = vpop.f32.mrf.mxu0  ;;  %v2021_v58 = vadd.f32 %v2020_v7, %v1947_v49 }
 0x303   :  { %v2094_v25 = vpop.f32.mrf.mxu1 }
 0x304   :  { %v2324_v28 = vpop.f32.mrf.mxu0  ;;  %v2095_v60 = vadd.f32 %v2094_v25, %v2021_v58 }
 0x305   :  { %v6288_v29 = vpop.f32.mrf.mxu1 }
 0x306   :  { %v6303_v30 = vpop.f32.mrf.mxu0  ;;  %v2169_v0 = vadd.f32 %v2168_v14, %v2095_v60 }
 0x307   :  { %v2240_v31 = vpop.f32.mrf.mxu1 }
 0x308   :  { %v2474_v32 = vpop.f32.mrf.mxu0  ;;  %v2241_v12 = vadd.f32 %v2240_v31, %v2169_v0 }
 0x309   :  { %v6298_v33 = vpop.f32.mrf.mxu1 }
 0x30a   :  { %v6313_v34 = vpop.f32.mrf.mxu0  ;;  %v2244_v19 = vadd.f32 %v2241_v12, %v6987_v18 }
 0x30b   :  { %v2400_v38 = vpop.f32.mrf.mxu1 }
 0x30c   :  { %v2622_v39 = vpop.f32.mrf.mxu0  ;;  %v2401_v52 = vadd.f32 %v2400_v38, %v2324_v28 }
 0x30d   :  { %v6308_v10 = vpop.f32.mrf.mxu1 }
 0x30e   :  { %v6323_v27 = vpop.f32.mrf.mxu0  ;;  %v2475_v62 = vadd.f32 %v2474_v32, %v2401_v52 }
 0x310   :  { %v2548_v40 = vpop.f32.mrf.mxu1 }
 0x311   :  { %v2834_v41 = vpop.f32.mrf.mxu0  ;;  %v2549_v5 = vadd.f32 %v2548_v40, %v2475_v62 }
 0x312   :  { %v6318_v42 = vpop.f32.mrf.mxu1 }
 0x313   :  { %v6335_v43 = vpop.f32.mrf.mxu0  ;;  %v2623_v9 = vadd.f32 %v2622_v39, %v2549_v5 }
 0x315   :  { %v2694_v44 = vpop.f32.mrf.mxu1  ;;  %v2844_v45 = vpop.f32.mrf.mxu0 }
 0x316   :  { %v2695_v16 = vadd.f32 %v2694_v44, %v2623_v9 }
 0x317   :  { %v6328_v46 = vpop.f32.mrf.mxu1  ;;  %v6338_v24 = vpop.f32.mrf.mxu0 }
 0x318   :  { %v7278_v25 = vadd.f32 %v2695_v16, %v2244_v19 }
 0x319   :  { %v7271_v47 = vpop.f32.mrf.mxu0 }
 0x31a   :  { %v2955_v1 = vpop.f32.mrf.mxu1  ;;  %v2700_v33 = vmul.f32 1.442695, %v7278_v25  ;;  %vm2699_vm12 = vcmp.gt.f32.partialorder %v7278_v25, 20.0 }
 0x31b   :  { %v6341_v36 = vpop.f32.mrf.mxu0  ;;  %v2956_v38 = vadd.f32 %v2955_v1, %v2834_v41 }
 0x31c   :  { %v6354_v37 = vpop.f32.mrf.mxu1  ;;  %6670 = vpow2.f32 %v2700_v33 }
 0x31d   :  { %v2864_v21 = vpop.f32.mrf.mxu0 }
 0x31e   :  { %v2961_v48 = vpop.f32.mrf.mxu1 }
 0x31f   :  { %v6344_v50 = vpop.f32.mrf.mxu0  ;;  %v2962_v42 = vadd.f32 %v2961_v48, %v2844_v45 }
 0x320   :  { %v6357_v51 = vpop.f32.mrf.mxu1 }
 0x321   :  { %v2874_v26 = vpop.f32.mrf.mxu0 }
 0x322   :  { %v2967_v53 = vpop.f32.mrf.mxu1 }
 0x323   :  { %v6347_v59 = vpop.f32.mrf.mxu0  ;;  %v2968_v50 = vadd.f32 %v2967_v53, %v7271_v47 }
 0x324   :  { %v6360_v61 = vpop.f32.mrf.mxu1 }
 0x325   :  { %v3055_v63 = vpop.f32.mrf.mxu0 }
 0x326   :  { %v2973_v22 = vpop.f32.mrf.mxu1  ;;  %v3056_v27 = vadd.f32 %v3055_v63, %v2956_v38 }
 0x327   :  { %v7273_v2 = vadd.f32 %v2973_v22, %v2864_v21  ;;  %v6373_v3 = vpop.f32.mrf.mxu0 }
 0x328   :  { %v6363_v4 = vpop.f32.mrf.mxu1 }
 0x329   :  { %v3062_v57 = vpop.f32.mrf.mxu0  ;;  %v6671_v47 = vpop.eup %6670 }
 0x32a   :  { %v2979_v54 = vpop.f32.mrf.mxu1  ;;  %v3063_v36 = vadd.f32 %v3062_v57, %v2962_v42  ;;  %v3858_v42 = vld [vmem:[#allocation2 + $0xa8] sm:$0xff] }
 0x32b   :  { %v2980_v55 = vadd.f32 %v2979_v54, %v2874_v26  ;;  %v6376_v6 = vpop.f32.mrf.mxu0 }
 0x32c   :  { %v6366_v8 = vpop.f32.mrf.mxu1 }
 0x32d   :  { %v3069_v11 = vpop.f32.mrf.mxu0 }
 0x32e   :  { %v3158_v56 = vpop.f32.mrf.mxu1  ;;  %v3070_v26 = vadd.f32 %v3069_v11, %v2968_v50 }
 0x32f   :  { %v6379_v13 = vpop.f32.mrf.mxu0  ;;  %v3159_v43 = vadd.f32 %v3158_v56, %v3056_v27 }
 0x330   :  { %v6392_v15 = vpop.f32.mrf.mxu1  ;;  %v3407_v13 = vld [vmem:[#allocation2 + $0xa0] sm:$0xff] }
 0x331   :  { %v7275_v7 = vpop.f32.mrf.mxu0 }
 0x332   :  { %v3166_v17 = vpop.f32.mrf.mxu1 }
 0x333   :  { %v6382_v20 = vpop.f32.mrf.mxu0  ;;  %v3167_v51 = vadd.f32 %v3166_v17, %v3063_v36  ;;  %v3409_v17 = vsel %vm1794_vm11, %v3407_v13, 0 }
 0x334   :  { %v6395_v23 = vpop.f32.mrf.mxu1  ;;  %v7296_v19 = vand.u32 4294901760, %v3409_v17 }
 0x335   :  { %v3083_v14 = vpop.f32.mrf.mxu0  ;;  %v2705_v23 = vmul.f32 -0.5, %v6671_v47 }
 0x336   :  { %v3084_v28 = vadd.f32 %v3083_v14, %v2980_v55  ;;  %v3174_v29 = vpop.f32.mrf.mxu1  ;;  %v2702_v55 = vadd.f32 1.0, %v6671_v47 }
 0x337   :  { %v6385_v30 = vpop.f32.mrf.mxu0  ;;  %v3175_v61 = vadd.f32 %v3174_v29, %v3070_v26  ;;  %v2706_v38 = vadd.f32 1.0, %v2705_v23 }
 0x338   :  { %v6398_v32 = vpop.f32.mrf.mxu1 }
 0x339   :  { %v3267_v31 = vpop.f32.mrf.mxu0 }
 0x33a   :  { %v7281_v34 = vpop.f32.mrf.mxu1  ;;  %v3268_v37 = vadd.f32 %v3267_v31, %v3159_v43  ;;  %v7304_v31 = vsub.f32 %v3409_v17, %v7296_v19 }
 0x33b   :  { %v6411_v39 = vpop.f32.mrf.mxu0 }
 0x33c   :  { %v6401_v10 = vpop.f32.mrf.mxu1 }
 0x33d   :  { %v3273_v18 = vpop.f32.mrf.mxu0  ;;  %v2708_v10 = vand.u32 2147483647, %v6671_v47 }
 0x33e   :  { %v3190_v40 = vpop.f32.mrf.mxu1  ;;  %v3274_v58 = vadd.f32 %v3273_v18, %v3167_v51 }
 0x33f   :  { %v3191_v44 = vadd.f32 %v3190_v40, %v3084_v28  ;;  %v6414_v46 = vpop.f32.mrf.mxu0  ;;  %v3077_v28 = vadd.f32 %v7275_v7, %v7273_v2  ;;  %v3479_v2 = vand.u32 4294901760, %v7304_v31  ;;  %v2707_v7 = vmul.f32 %v6671_v47, %v2706_v38 }
 0x340   :  { %v6404_v24 = vpop.f32.mrf.mxu1  ;;  %vm2709_vm9 = vcmp.lt.f32.partialorder %v2708_v10, 0.0004427343 }
 0x341   :  { %v3279_v21 = vpop.f32.mrf.mxu0  ;;  %v3183_v33 = vadd.f32 %v7281_v34, %v3077_v28  ;;  %v3860_v34 = vsel %vm654_vm3, %v3858_v42, 0  ;;  %v3480_v50 = vsub.f32 %v7304_v31, %v3479_v2 }
 0x342   :  { %v3364_v49 = vpop.f32.mrf.mxu1  ;;  %v3280_v60 = vadd.f32 %v3279_v21, %v3175_v61  ;;  %v7312_v21 = vld [vmem:[%s7579_s2] sm:$0x3] }
 0x343   :  { %v7284_v52 = vadd.f32 %v3364_v49, %v3268_v37  ;;  %v6417_v41 = vpop.f32.mrf.mxu0 }
 0x344   :  { %v6430_v1 = vpop.f32.mrf.mxu1  ;;  %v7320_v41 = vand.u32 4294901760, %v3860_v34 }
 0x345   :  { %v3393_v59 = vmul.f32 1.442695, %v7284_v52  ;;  %v3285_v45 = vpop.f32.mrf.mxu0  ;;  %vm3392_vm13 = vcmp.gt.f32.partialorder %v7284_v52, 20.0 }
 0x346   :  { %v3370_v48 = vpop.f32.mrf.mxu1  ;;  %v3286_v27 = vadd.f32 %v3285_v45, %v3183_v33 }
 0x347   :  { %6672 = vpow2.f32 %v3393_v59  ;;  %v7287_v62 = vadd.f32 %v3370_v48, %v3274_v58  ;;  %v6420_v63 = vpop.f32.mrf.mxu0  ;;  %v3481_v48 = vand.u32 4294901760, %v3480_v50 }
 0x348   :  { %v6433_v22 = vpop.f32.mrf.mxu1  ;;  %v7328_v63 = vsub.f32 %v3860_v34, %v7320_v41 }
 0x349   :  { %v3291_v3 = vpop.f32.mrf.mxu0  ;;  %v4327_v53 = vmul.f32 1.442695, %v7287_v62  ;;  %vm4325_vm1 = vcmp.gt.f32.partialorder %v7287_v62, 20.0 }
 0x34a   :  { %v3292_v4 = vadd.f32 %v3291_v3, %v3191_v44  ;;  %v3376_v5 = vpop.f32.mrf.mxu1 }
 0x34b   :  { %v7290_v57 = vadd.f32 %v3376_v5, %v3280_v60  ;;  %v6423_v54 = vpop.f32.mrf.mxu0  ;;  %6674 = vpow2.f32 %v4327_v53 }
 0x34c   :  { %v6436_v0 = vpop.f32.mrf.mxu1  ;;  %v3933_v54 = vand.u32 4294901760, %v7328_v63 }
 0x34d   :  { %v4329_v6 = vmul.f32 1.442695, %v7290_v57  ;;  %vm4326_vm15 = vcmp.gt.f32.partialorder %v7290_v57, 20.0 }
 0x34e   :  { %v3382_v8 = vpop.f32.mrf.mxu1 }
 0x34f   :  { %6676 = vpow2.f32 %v4329_v6  ;;  %v3383_v44 = vadd.f32 %v3382_v8, %v3286_v27 }
 0x350   :  { %v6439_v9 = vpop.f32.mrf.mxu1  ;;  %6678 = vlog2.f32 %v2702_v55 }
 0x351   :  { %v3406_v49 = vmul.f32 %v7312_v21, %v3383_v44 }
 0x352   :  { %v3388_v11 = vpop.f32.mrf.mxu1 }
 0x353   :  { %v7293_v56 = vadd.f32 %v3388_v11, %v3292_v4  ;;  %v3863_v45 = vsel %vm658_vm4, %v3406_v49, 0 }
 0x354   :  { %v6673_v12 = vpop.eup %6672  ;;  %v6442_v15 = vpop.f32.mrf.mxu1  ;;  %v7331_v53 = vand.u32 4294901760, %v3863_v45 }
 0x355   :  { %v3395_v16 = vadd.f32 1.0, %v6673_v12  ;;  %v3398_v29 = vmul.f32 -0.5, %v6673_v12  ;;  %v3401_v43 = vand.u32 2147483647, %v6673_v12 }
 0x356   :  { %v3973_v11 = vsub.f32 %v3863_v45, %v7331_v53 }
 0x357   :  { %6680 = vlog2.f32 %v3395_v16  ;;  %v3399_v40 = vadd.f32 1.0, %v3398_v29  ;;  %vm3402_vm10 = vcmp.lt.f32.partialorder %v3401_v43, 0.0004427343  ;;  %v4352_v16 = vld [vmem:[#allocation2 + $0x78] sm:$0xff] }
 0x358   :  { %v7298_v20 = vpop.eup %6674  ;;  %v4358_v33 = vsel %vm1127_vm5, %v4352_v16, 0 }
 0x359   :  { %v4331_v39 = vadd.f32 1.0, %v7298_v20  ;;  %v3400_v37 = vmul.f32 %v6673_v12, %v3399_v40  ;;  %v4334_v3 = vmul.f32 -0.5, %v7298_v20  ;;  %v4337_v13 = vand.u32 2147483647, %v7298_v20 }
 0x35b   :  { %v4335_v8 = vadd.f32 1.0, %v4334_v3  ;;  %vm7362_vm0 = vcmp.lt.f32.partialorder %v4337_v13, 0.0004427343 }
 0x35c   :  { %v6677_v14 = vpop.eup %6676 }
 0x35d   :  { %v4340_v30 = vadd.f32 1.0, %v6677_v14  ;;  %v6679_v32 = vpop.eup %6678  ;;  %v4343_v58 = vmul.f32 -0.5, %v6677_v14  ;;  %v4346_v47 = vand.u32 2147483647, %v6677_v14  ;;  %v4336_v29 = vmul.f32 %v7298_v20, %v4335_v8 }
 0x35e   :  { %v2704_v18 = vmul.f32 0.6931472, %v6679_v32  ;;  %v3974_v32 = vand.u32 4294901760, %v3973_v11 }
 0x35f   :  { %6682 = vlog2.f32 %v4340_v30  ;;  %v4344_v60 = vadd.f32 1.0, %v4343_v58  ;;  %vm7341_vm14 = vcmp.lt.f32.partialorder %v4346_v47, 0.0004427343 }
 0x360   :  { %6684 = vlog2.f32 %v4331_v39  ;;  %v2710_v24 = vsel %vm2709_vm9, %v2707_v7, %v2704_v18  ;;  %v4353_v39 = vld [vmem:[#allocation2 + $0x80] sm:$0xff]  ;;  %v7379_v18 = vand.u32 4294901760, %v4358_v33  ;;  %v3975_v40 = vsub.f32 %v3973_v11, %v3974_v32 }
 0x361   :  { %v2711_v1 = vsel %vm2699_vm12, %v7278_v25, %v2710_v24  ;;  %v4345_v55 = vmul.f32 %v6677_v14, %v4344_v60  ;;  %v3934_v14 = vsub.f32 %v7328_v63, %v3933_v54  ;;  %v4361_v42 = vsel %vm1127_vm5, %v4353_v39, 0 }
 0x364   :  { %v6681_v46 = vpop.eup %6680 }
 0x365   :  { %v3397_v36 = vmul.f32 0.6931472, %v6681_v46  ;;  %v7397_v46 = vsub.f32 %v4358_v33, %v7379_v18 }
 0x367   :  { %v3403_v51 = vsel %vm3402_vm10, %v3400_v37, %v3397_v36  ;;  %v4445_v36 = vand.u32 4294901760, %v7397_v46 }
 0x368   :  { %v3404_v26 = vsel %vm3392_vm13, %v7284_v52, %v3403_v51  ;;  %v4351_v52 = vld [vmem:[#allocation2 + $0x70] sm:$0xff] }
 0x369   :  { %v3405_v59 = vmul.f32 %v3404_v26, %v2711_v1  ;;  %v4355_v6 = vsel %vm1127_vm5, %v4351_v52, 0  ;;  %v4446_v51 = vsub.f32 %v7397_v46, %v4445_v36 }
 0x36a   :  { %v7357_v28 = vand.u32 4294901760, %v4355_v6 }
 0x36b   :  { %v7325_v61 = vand.u32 4294901760, %v3405_v59 }
 0x36c   :  { %v6683_v22 = vpop.eup %6682  ;;  %v7377_v27 = vsub.f32 %v4355_v6, %v7357_v28 }
 0x36d   :  { %6444 = vmatpush3.msra.mxu0 %v7325_v61  ;;  %v3519_v25 = vsub.f32 %v3405_v59, %v7325_v61  ;;  %v4342_v4 = vmul.f32 0.6931472, %v6683_v22  ;;  %v6685_v0 = vpop.eup %6684  ;;  %v4447_v59 = vand.u32 4294901760, %v4446_v51 }
 0x36e   :  { %6446 = vmatmul.mubr.f32.vlgmr.msra.gmra.mxu0 %v3481_v48  ;;  %6453 = vmatprep.subr.mxu0 %v6724_v35  ;;  %v4333_v17 = vmul.f32 0.6931472, %v6685_v0  ;;  %v4435_v7 = vand.u32 4294901760, %v7377_v27 }
 0x36f   :  { %6454 = vmatpush3.msra.mxu0 %v3519_v25  ;;  %6455 = vmatprep.mubr.msk.f32.mxu0 %vm6725_vm2, %v6724_v35  ;;  %v3520_v5 = vand.u32 4294901760, %v3519_v25  ;;  %v4348_v15 = vsel %vm7341_vm14, %v4345_v55, %v4342_v4 }
 0x370   :  { %6463 = vmatprep.subr.mxu0 %v6724_v35  ;;  %v4350_v30 = vsel %vm4326_vm15, %v7290_v57, %v4348_v15  ;;  %v4339_v10 = vsel %vm7362_vm0, %v4336_v29, %v4333_v17  ;;  %v3935_v57 = vand.u32 4294901760, %v3934_v14  ;;  %v4436_v24 = vsub.f32 %v7377_v27, %v4435_v7 }
 0x371   :  { %v3521_v12 = vsub.f32 %v3519_v25, %v3520_v5  ;;  %v4364_v20 = vsel %vm1143_vm6, %v4350_v30, 0  ;;  %v4349_v43 = vsel %vm4325_vm1, %v7287_v62, %v4339_v10  ;;  %v7399_v62 = vand.u32 4294901760, %v4361_v42 }
 0x372   :  { %6456 = vmatmul.mubr.f32.vlgmr.msra.gmra.mxu0 %v7304_v31  ;;  %v7390_v44 = vand.u32 4294901760, %v4364_v20  ;;  %v7401_v34 = vand.u32 4294901760, %v4349_v43  ;;  %v3976_v31 = vand.u32 4294901760, %v3975_v40  ;;  %v4437_v50 = vand.u32 4294901760, %v4436_v24 }
 0x373   :  { %6464 = vmatpush3.msra.mxu0 %v3520_v5  ;;  %v3522_v23 = vand.u32 4294901760, %v3521_v12  ;;  %6465 = vmatprep.mubr.msk.f32.mxu0 %vm6725_vm2, %v6724_v35  ;;  %v7417_v37 = vsub.f32 %v4361_v42, %v7399_v62 }
 0x374   :  { %6473 = vmatprep.subr.mxu0 %v6724_v35 }
 0x375   :  { %6449 = vmatpush3.msra.mxu1 %v3522_v23  ;;  %v4455_v1 = vand.u32 4294901760, %v7417_v37 }
 0x376   :  { %6451 = vmatmul.mubr.f32.vlgmr.msra.gmra.mxu1 %v7296_v19  ;;  %6458 = vmatprep.subr.mxu1 %v6724_v35 }
 0x377   :  { %6466 = vmatmul.mubr.f32.vlgmr.msra.gmra.mxu0 %v7296_v19  ;;  %6459 = vmatpush3.msra.mxu1 %v7325_v61  ;;  %v4456_v45 = vsub.f32 %v7417_v37, %v4455_v1 }
 0x378   :  { %6474 = vmatpush3.msra.mxu0 %v7331_v53  ;;  %6460 = vmatprep.mubr.msk.f32.mxu1 %vm6725_vm2, %v6724_v35 }
 0x379   :  { %6468 = vmatprep.subr.mxu1 %v6724_v35  ;;  %6475 = vmatprep.mubr.msk.f32.mxu0 %vm6725_vm2, %v6724_v35 }
 0x37a   :  { %6483 = vmatprep.subr.mxu0 %v6724_v35  ;;  %6461 = vmatmul.mubr.f32.vlgmr.msra.gmra.mxu1 %v3479_v2  ;;  %v4493_v2 = vsub.f32 %v4364_v20, %v7390_v44 }
 0x37b   :  { %6469 = vmatpush3.msra.mxu1 %v7325_v61  ;;  %6476 = vmatmul.mubr.f32.vlgmr.msra.gmra.mxu0 %v3935_v57 }
 0x37c   :  { %6484 = vmatpush3.msra.mxu0 %v3973_v11  ;;  %6470 = vmatprep.mubr.msk.f32.mxu1 %vm6725_vm2, %v6724_v35  ;;  %v4494_v49 = vand.u32 4294901760, %v4493_v2 }
 0x37d   :  { %6478 = vmatprep.subr.mxu1 %v6724_v35  ;;  %6485 = vmatprep.mubr.msk.f32.mxu0 %vm6725_vm2, %v6724_v35 }
 0x37e   :  { %6493 = vmatprep.subr.mxu0 %v6724_v35  ;;  %6471 = vmatmul.mubr.f32.vlgmr.msra.gmra.mxu1 %v7296_v19  ;;  %v4500_v19 = vsub.f32 %v4349_v43, %v7401_v34  ;;  %v4495_v58 = vsub.f32 %v4493_v2, %v4494_v49 }
 0x37f   :  { %6479 = vmatpush3.msra.mxu1 %v3976_v31  ;;  %6486 = vmatmul.mubr.f32.vlgmr.msra.gmra.mxu0 %v7328_v63  ;;  %v4457_v63 = vand.u32 4294901760, %v4456_v45 }
 0x380   :  { %6494 = vmatpush3.msra.mxu0 %v3974_v32  ;;  %6480 = vmatprep.mubr.msk.f32.mxu1 %vm6725_vm2, %v6724_v35  ;;  %v4501_v26 = vand.u32 4294901760, %v4500_v19  ;;  %v4496_v61 = vand.u32 4294901760, %v4495_v58  ;;  %v4927_v58 = vld [vmem:[#allocation2 + $0xb8] sm:$0xff] }
 0x381   :  { %6488 = vmatprep.subr.mxu1 %v6724_v35  ;;  %6495 = vmatprep.mubr.msk.f32.mxu0 %vm6725_vm2, %v6724_v35 }
 0x382   :  { %6503 = vmatprep.subr.mxu0 %v6724_v35  ;;  %6481 = vmatmul.mubr.f32.vlgmr.msra.gmra.mxu1 %v7320_v41  ;;  %v4502_v48 = vsub.f32 %v4500_v19, %v4501_v26 }
 0x383   :  { %6489 = vmatpush3.msra.mxu1 %v7331_v53  ;;  %6496 = vmatmul.mubr.f32.vlgmr.msra.gmra.mxu0 %v7320_v41 }
 0x384   :  { %6504 = vmatpush3.msra.mxu0 %v7390_v44  ;;  %6490 = vmatprep.mubr.msk.f32.mxu1 %vm6725_vm2, %v6724_v35  ;;  %v4503_v22 = vand.u32 4294901760, %v4502_v48 }
 0x385   :  { %6505 = vmatprep.subr.mxu0 %v6724_v35  ;;  %6498 = vmatprep.subr.mxu1 %v6724_v35 }
 0x386   :  { %6506 = vmatpush3.msra.mxu0 %v7401_v34  ;;  %6507 = vmatprep.mubr.msk.f32.mxu0 %vm6725_vm2, %v6724_v35 }
 0x387   :  { %6529 = vmatprep.subr.mxu0 %v6724_v35  ;;  %6491 = vmatmul.mubr.f32.vlgmr.msra.gmra.mxu1 %v3933_v54 }
 0x388   :  { %6499 = vmatpush3.msra.mxu1 %v7331_v53  ;;  %6508 = vmatmul.mubr.f32.vlgmr.msra.gmra.mxu0 %v4437_v50 }
 0x389   :  { %6530 = vmatpush3.msra.mxu0 %v4493_v2  ;;  %6500 = vmatprep.mubr.msk.f32.mxu1 %vm6725_vm2, %v6724_v35 }
 0x38a   :  { %6531 = vmatprep.subr.mxu0 %v6724_v35  ;;  %6510 = vmatprep.mubr.msk.f32.mxu0 %vm6725_vm2, %v6724_v35 }
 0x38b   :  { %6532 = vmatpush3.msra.mxu0 %v4500_v19  ;;  %6516 = vmatprep.subr.mxu1 %v6724_v35 }
 0x38c   :  { %6501 = vmatmul.mubr.f32.vlgmr.msra.gmra.mxu1 %v7320_v41  ;;  %6511 = vmatmul.mubr.f32.gmra.mxu0 %v4447_v59 }
 0x38d   :  { %6517 = vmatpush3.msra.mxu1 %v4496_v61  ;;  %6513 = vmatprep.mubr.msk.f32.mxu0 %vm6725_vm2, %v6724_v35 }
 0x38e   :  { %6518 = vmatprep.subr.mxu1 %v6724_v35  ;;  %6520 = vmatprep.mubr.msk.f32.mxu1 %vm6725_vm2, %v6724_v35 }
 0x38f   :  { %6519 = vmatpush3.msra.mxu1 %v4503_v22  ;;  %6555 = vmatprep.subr.mxu0 %v6724_v35 }
 0x390   :  { %6542 = vmatprep.subr.mxu1 %v6724_v35  ;;  %6514 = vmatmul.mubr.f32.gmra.mxu0 %v4457_v63  ;;  %v4929_v63 = vsel %vm654_vm3, %v4927_v58, 0 }
 0x391   :  { %6521 = vmatmul.mubr.f32.vlgmr.msra.gmra.mxu1 %v7357_v28  ;;  %6533 = vmatprep.mubr.msk.f32.mxu0 %vm6725_vm2, %v6724_v35 }
 0x392   :  { %6543 = vmatpush3.msra.mxu1 %v7390_v44  ;;  %6523 = vmatprep.mubr.msk.f32.mxu1 %vm6725_vm2, %v6724_v35 }
 0x393   :  { %6544 = vmatprep.subr.mxu1 %v6724_v35 }
 0x394   :  { %6545 = vmatpush3.msra.mxu1 %v7401_v34  ;;  %6534 = vmatmul.mubr.f32.vlgmr.msra.gmra.mxu0 %v7377_v27 }
 0x395   :  { %6524 = vmatmul.mubr.f32.gmra.mxu1 %v7379_v18  ;;  %6556 = vmatpush3.msra.mxu0 %v4494_v49 }
 0x396   :  { %6557 = vmatprep.subr.mxu0 %v6724_v35  ;;  %6526 = vmatprep.mubr.msk.f32.mxu1 %vm6725_vm2, %v6724_v35 }
 0x397   :  { %6558 = vmatpush3.msra.mxu0 %v4501_v26  ;;  %6536 = vmatprep.mubr.msk.f32.mxu0 %vm6725_vm2, %v6724_v35 }
 0x398   :  { %6568 = vmatprep.subr.mxu1 %v6724_v35  ;;  %6537 = vmatmul.mubr.f32.gmra.mxu0 %v7397_v46 }
 0x399   :  { %6527 = vmatmul.mubr.f32.gmra.mxu1 %v7399_v62  ;;  %6539 = vmatprep.mubr.msk.f32.mxu0 %vm6725_vm2, %v6724_v35 }
 0x39a   :  { %6546 = vmatprep.mubr.msk.f32.mxu1 %vm6725_vm2, %v6724_v35  ;;  %6581 = vmatprep.subr.mxu0 %v6724_v35 }
 0x39c   :  { %6540 = vmatmul.mubr.f32.gmra.mxu0 %v7417_v37 }
 0x39d   :  { %6547 = vmatmul.mubr.f32.vlgmr.msra.gmra.mxu1 %v4435_v7  ;;  %6559 = vmatprep.mubr.msk.f32.mxu0 %vm6725_vm2, %v6724_v35 }
 0x39e   :  { %6569 = vmatpush3.msra.mxu1 %v7390_v44  ;;  %6549 = vmatprep.mubr.msk.f32.mxu1 %vm6725_vm2, %v6724_v35 }
 0x39f   :  { %6570 = vmatprep.subr.mxu1 %v6724_v35 }
 0x3a0   :  { %6571 = vmatpush3.msra.mxu1 %v7401_v34  ;;  %6560 = vmatmul.mubr.f32.vlgmr.msra.gmra.mxu0 %v7357_v28 }
 0x3a1   :  { %6550 = vmatmul.mubr.f32.gmra.mxu1 %v4445_v36  ;;  %6562 = vmatprep.mubr.msk.f32.mxu0 %vm6725_vm2, %v6724_v35 }
 0x3a2   :  { %6552 = vmatprep.mubr.msk.f32.mxu1 %vm6725_vm2, %v6724_v35  ;;  %6586 = vmatprep.subr.mxu1 %v6724_v35 }
 0x3a4   :  { %6563 = vmatmul.mubr.f32.gmra.mxu0 %v7379_v18 }
 0x3a5   :  { %6553 = vmatmul.mubr.f32.gmra.mxu1 %v4455_v1  ;;  %6565 = vmatprep.mubr.msk.f32.mxu0 %vm6725_vm2, %v6724_v35 }
 0x3a6   :  { %6572 = vmatprep.mubr.msk.f32.mxu1 %vm6725_vm2, %v6724_v35 }
 0x3a8   :  { %6566 = vmatmul.mubr.f32.gmra.mxu0 %v7399_v62 }
 0x3a9   :  { %6573 = vmatmul.mubr.f32.vlgmr.msra.gmra.mxu1 %v7357_v28  ;;  %6583 = vmatprep.mubr.msk.f32.mxu0 %vm6725_vm2, %v6724_v35 }
 0x3aa   :  { %6575 = vmatprep.mubr.msk.f32.mxu1 %vm6725_vm2, %v6724_v35 }
 0x3ad   :  { %6576 = vmatmul.mubr.f32.gmra.mxu1 %v7379_v18 }
 0x3ae   :  { %6578 = vmatprep.mubr.msk.f32.mxu1 %vm6725_vm2, %v6724_v35 }
 0x3b1   :  { %6579 = vmatmul.mubr.f32.gmra.mxu1 %v7399_v62 }
 0x3b2   :  { %6588 = vmatprep.mubr.msk.f32.mxu1 %vm6725_vm2, %v6724_v35 }
 0x42e   :  { %v3483_v41 = vpop.f32.mrf.mxu0 }
 0x430   :  { %v6447_v60 = vpop.f32.mrf.mxu0 }
 0x432   :  { %v3633_v3 = vpop.f32.mrf.mxu0 }
 0x434   :  { %v6457_v47 = vpop.f32.mrf.mxu0 }
 0x436   :  { %v3559_v53 = vpop.f32.mrf.mxu1 }
 0x437   :  { %v3781_v25 = vpop.f32.mrf.mxu0  ;;  %v3560_v17 = vadd.f32 %v3559_v53, %v3483_v41 }
 0x438   :  { %v6452_v52 = vpop.f32.mrf.mxu1 }
 0x439   :  { %v6467_v4 = vpop.f32.mrf.mxu0  ;;  %v3634_v30 = vadd.f32 %v3633_v3, %v3560_v17 }
 0x43a   :  { %v3707_v5 = vpop.f32.mrf.mxu1 }
 0x43b   :  { %v3937_v54 = vpop.f32.mrf.mxu0  ;;  %v3708_v10 = vadd.f32 %v3707_v5, %v3634_v30 }
 0x43c   :  { %v6462_v0 = vpop.f32.mrf.mxu1 }
 0x43d   :  { %v6477_v55 = vpop.f32.mrf.mxu0  ;;  %v3782_v42 = vadd.f32 %v3781_v25, %v3708_v10 }
 0x43e   :  { %v3853_v6 = vpop.f32.mrf.mxu1 }
 0x43f   :  { %v4087_v8 = vpop.f32.mrf.mxu0  ;;  %v3854_v34 = vadd.f32 %v3853_v6, %v3782_v42 }
 0x440   :  { %v6472_v9 = vpop.f32.mrf.mxu1 }
 0x441   :  { %v6487_v11 = vpop.f32.mrf.mxu0  ;;  %v3857_v19 = vadd.f32 %v3854_v34, %v7293_v56  ;;  %v7525_v56 = vand.u32 4294901760, %v4929_v63 }
 0x442   :  { %v4013_v12 = vpop.f32.mrf.mxu1 }
 0x443   :  { %v4235_v13 = vpop.f32.mrf.mxu0  ;;  %v4014_v14 = vadd.f32 %v4013_v12, %v3937_v54  ;;  %v5001_v6 = vsub.f32 %v4929_v63, %v7525_v56 }
 0x444   :  { %v6482_v15 = vpop.f32.mrf.mxu1 }
 0x445   :  { %v6497_v16 = vpop.f32.mrf.mxu0  ;;  %v4088_v33 = vadd.f32 %v4087_v8, %v4014_v14 }
 0x447   :  { %v4161_v23 = vpop.f32.mrf.mxu1 }
 0x448   :  { %v4439_v28 = vpop.f32.mrf.mxu0  ;;  %v4162_v27 = vadd.f32 %v4161_v23, %v4088_v33  ;;  %v5002_v23 = vand.u32 4294901760, %v5001_v6 }
 0x449   :  { %v6492_v29 = vpop.f32.mrf.mxu1 }
 0x44a   :  { %v6509_v32 = vpop.f32.mrf.mxu0  ;;  %v4236_v7 = vadd.f32 %v4235_v13, %v4162_v27 }
 0x44c   :  { %v4307_v38 = vpop.f32.mrf.mxu1  ;;  %v4449_v39 = vpop.f32.mrf.mxu0 }
 0x44d   :  { %v4308_v24 = vadd.f32 %v4307_v38, %v4236_v7  ;;  %v5003_v38 = vsub.f32 %v5001_v6, %v5002_v23 }
 0x44e   :  { %v6502_v57 = vpop.f32.mrf.mxu1  ;;  %v6512_v20 = vpop.f32.mrf.mxu0 }
 0x44f   :  { %v7521_v1 = vadd.f32 %v4308_v24, %v3857_v19 }
 0x450   :  { %v4459_v18 = vpop.f32.mrf.mxu0 }
 0x451   :  { %v4540_v40 = vpop.f32.mrf.mxu1  ;;  %v4313_v22 = vmul.f32 1.442695, %v7521_v1  ;;  %vm4312_vm5 = vcmp.gt.f32.partialorder %v7521_v1, 20.0 }
 0x452   :  { %v6515_v43 = vpop.f32.mrf.mxu0  ;;  %v4541_v3 = vadd.f32 %v4540_v40, %v4439_v28  ;;  %v5004_v40 = vand.u32 4294901760, %v5003_v38 }
 0x453   :  { %v6522_v44 = vpop.f32.mrf.mxu1  ;;  %6686 = vpow2.f32 %v4313_v22 }
 0x454   :  { %v4628_v46 = vpop.f32.mrf.mxu0 }
 0x455   :  { %v4546_v62 = vpop.f32.mrf.mxu1  ;;  %v4629_v25 = vadd.f32 %v4628_v46, %v4541_v3 }
 0x456   :  { %v6535_v31 = vpop.f32.mrf.mxu0  ;;  %v4547_v5 = vadd.f32 %v4546_v62, %v4449_v39 }
 0x457   :  { %v6525_v2 = vpop.f32.mrf.mxu1  ;;  %v4926_v31 = vld [vmem:[#allocation2 + $0xb0] sm:$0xff] }
 0x458   :  { %v4635_v36 = vpop.f32.mrf.mxu0  ;;  %v5381_v24 = vsel %vm1794_vm11, %v4926_v31, 0 }
 0x459   :  { %v4552_v37 = vpop.f32.mrf.mxu1  ;;  %v4636_v9 = vadd.f32 %v4635_v36, %v4547_v5  ;;  %v5449_v36 = vand.u32 4294901760, %v5381_v24 }
 0x45a   :  { %v4553_v49 = vadd.f32 %v4552_v37, %v4459_v18  ;;  %v6538_v50 = vpop.f32.mrf.mxu0 }
 0x45b   :  { %v6528_v51 = vpop.f32.mrf.mxu1  ;;  %v5450_v50 = vsub.f32 %v5381_v24, %v5449_v36 }
 0x45c   :  { %v4642_v26 = vpop.f32.mrf.mxu0 }
 0x45d   :  { %v4717_v59 = vpop.f32.mrf.mxu1  ;;  %v4643_v45 = vadd.f32 %v4642_v26, %v4553_v49 }
 0x45e   :  { %v6541_v48 = vpop.f32.mrf.mxu0  ;;  %v4718_v54 = vadd.f32 %v4717_v59, %v4629_v25 }
 0x45f   :  { %v6548_v61 = vpop.f32.mrf.mxu1  ;;  %v5451_v48 = vand.u32 4294901760, %v5450_v50 }
 0x460   :  { %v4810_v41 = vpop.f32.mrf.mxu0  ;;  %v6687_v57 = vpop.eup %6686 }
 0x461   :  { %v4725_v60 = vpop.f32.mrf.mxu1  ;;  %v4811_v11 = vadd.f32 %v4810_v41, %v4718_v54  ;;  %v4315_v44 = vadd.f32 1.0, %v6687_v57  ;;  %v4318_v37 = vmul.f32 -0.5, %v6687_v57  ;;  %v4321_v26 = vand.u32 2147483647, %v6687_v57 }
 0x462   :  { %v6561_v47 = vpop.f32.mrf.mxu0  ;;  %v4726_v16 = vadd.f32 %v4725_v60, %v4636_v9  ;;  %v5452_v3 = vsub.f32 %v5450_v50, %v5451_v48 }
 0x463   :  { %v6551_v53 = vpop.f32.mrf.mxu1  ;;  %v4319_v51 = vadd.f32 1.0, %v4318_v37  ;;  %vm4322_vm3 = vcmp.lt.f32.partialorder %v4321_v26, 0.0004427343 }
 0x464   :  { %v4816_v52 = vpop.f32.mrf.mxu0 }
 0x465   :  { %v4733_v4 = vpop.f32.mrf.mxu1  ;;  %v4817_v29 = vadd.f32 %v4816_v52, %v4726_v16  ;;  %v4320_v61 = vmul.f32 %v6687_v57, %v4319_v51  ;;  %v5453_v52 = vand.u32 4294901760, %v5452_v3 }
 0x466   :  { %v4734_v0 = vadd.f32 %v4733_v4, %v4643_v45  ;;  %v6564_v55 = vpop.f32.mrf.mxu0 }
 0x467   :  { %v6554_v8 = vpop.f32.mrf.mxu1 }
 0x468   :  { %v4822_v12 = vpop.f32.mrf.mxu0 }
 0x469   :  { %v4895_v13 = vpop.f32.mrf.mxu1  ;;  %v4823_v15 = vadd.f32 %v4822_v12, %v4734_v0 }
 0x46a   :  { %v7528_v17 = vadd.f32 %v4895_v13, %v4811_v11  ;;  %v6567_v14 = vpop.f32.mrf.mxu0 }
 0x46b   :  { %v6574_v28 = vpop.f32.mrf.mxu1 }
 0x46c   :  { %v4912_v30 = vmul.f32 1.442695, %v7528_v17  ;;  %vm4911_vm6 = vcmp.gt.f32.partialorder %v7528_v17, 20.0 }
 0x46d   :  { %v4901_v32 = vpop.f32.mrf.mxu1 }
 0x46e   :  { %6688 = vpow2.f32 %v4912_v30  ;;  %v4902_v33 = vadd.f32 %v4901_v32, %v4817_v29 }
 0x46f   :  { %v6577_v39 = vpop.f32.mrf.mxu1  ;;  %6690 = vlog2.f32 %v4315_v44 }
 0x470   :  { %v4925_v10 = vmul.f32 %v7312_v21, %v4902_v33 }
 0x471   :  { %v4907_v20 = vpop.f32.mrf.mxu1 }
 0x472   :  { %v4932_v27 = vsel %vm658_vm4, %v4925_v10, 0  ;;  %v7533_v18 = vadd.f32 %v4907_v20, %v4823_v15 }
 0x473   :  { %v4965_v42 = vand.u32 4294901760, %v4932_v27  ;;  %v6580_v43 = vpop.f32.mrf.mxu1 }
 0x475   :  { %v5042_v7 = vsub.f32 %v4932_v27, %v4965_v42  ;;  %6582 = vmatpush3.msra.mxu0 %v4965_v42 }
 0x476   :  { %6584 = vmatmul.mubr.f32.vlgmr.msra.gmra.mxu0 %v5004_v40  ;;  %6591 = vmatprep.subr.mxu0 %v6724_v35 }
 0x477   :  { %6592 = vmatpush3.msra.mxu0 %v5042_v7  ;;  %6593 = vmatprep.mubr.msk.f32.mxu0 %vm6725_vm2, %v6724_v35  ;;  %v5043_v21 = vand.u32 4294901760, %v5042_v7 }
 0x478   :  { %6601 = vmatprep.subr.mxu0 %v6724_v35 }
 0x479   :  { %v5044_v46 = vsub.f32 %v5042_v7, %v5043_v21 }
 0x47a   :  { %6594 = vmatmul.mubr.f32.vlgmr.msra.gmra.mxu0 %v5001_v6 }
 0x47b   :  { %v6689_v62 = vpop.eup %6688  ;;  %6602 = vmatpush3.msra.mxu0 %v5043_v21  ;;  %v5045_v34 = vand.u32 4294901760, %v5044_v46  ;;  %6603 = vmatprep.mubr.msk.f32.mxu0 %vm6725_vm2, %v6724_v35 }
 0x47c   :  { %v4914_v2 = vadd.f32 1.0, %v6689_v62  ;;  %6611 = vmatprep.subr.mxu0 %v6724_v35  ;;  %v4917_v19 = vmul.f32 -0.5, %v6689_v62  ;;  %v6691_v49 = vpop.eup %6690  ;;  %v4920_v45 = vand.u32 2147483647, %v6689_v62 }
 0x47d   :  { %6587 = vmatpush3.msra.mxu1 %v5045_v34  ;;  %v4317_v58 = vmul.f32 0.6931472, %v6691_v49 }
 0x47e   :  { %6692 = vlog2.f32 %v4914_v2  ;;  %6589 = vmatmul.mubr.f32.vlgmr.msra.gmra.mxu1 %v7525_v56  ;;  %6596 = vmatprep.subr.mxu1 %v6724_v35  ;;  %v4918_v59 = vadd.f32 1.0, %v4917_v19  ;;  %vm4921_vm4 = vcmp.lt.f32.partialorder %v4920_v45, 0.0004427343 }
 0x47f   :  { %6597 = vmatpush3.msra.mxu1 %v4965_v42  ;;  %6598 = vmatprep.mubr.msk.f32.mxu1 %vm6725_vm2, %v6724_v35  ;;  %v4323_v22 = vsel %vm4322_vm3, %v4320_v61, %v4317_v58 }
 0x480   :  { %6606 = vmatprep.subr.mxu1 %v6724_v35  ;;  %6604 = vmatmul.mubr.f32.vlgmr.msra.gmra.mxu0 %v7525_v56  ;;  %v4919_v60 = vmul.f32 %v6689_v62, %v4918_v59 }
 0x481   :  { %6613 = vmatprep.mubr.msk.f32.mxu0 %vm6725_vm2, %v6724_v35 }
 0x482   :  { %6599 = vmatmul.mubr.f32.vlgmr.msra.gmra.mxu1 %v5002_v23 }
 0x483   :  { %6607 = vmatpush3.msra.mxu1 %v4965_v42  ;;  %6608 = vmatprep.mubr.msk.f32.mxu1 %vm6725_vm2, %v6724_v35 }
 0x484   :  { %6616 = vmatprep.subr.mxu1 %v6724_v35 }
 0x486   :  { %6609 = vmatmul.mubr.f32.vlgmr.msra.gmra.mxu1 %v7525_v56  ;;  %v4324_v56 = vsel %vm4312_vm5, %v7521_v1, %v4323_v22 }
 0x487   :  { %6618 = vmatprep.mubr.msk.f32.mxu1 %vm6725_vm2, %v6724_v35 }
 0x48b   :  { %v6693_v63 = vpop.eup %6692 }
 0x48c   :  { %v4916_v41 = vmul.f32 0.6931472, %v6693_v63 }
 0x48e   :  { %v4922_v47 = vsel %vm4921_vm4, %v4919_v60, %v4916_v41 }
 0x48f   :  { %v4923_v53 = vsel %vm4911_vm6, %v7528_v17, %v4922_v47 }
 0x490   :  { %v4924_v25 = vmul.f32 %v4923_v53, %v4324_v56 }
 0x492   :  { %v5414_v4 = vand.u32 4294901760, %v4924_v25 }
 0x494   :  { %6612 = vmatpush3.msra.mxu0 %v5414_v4  ;;  %v5491_v5 = vsub.f32 %v4924_v25, %v5414_v4 }
 0x495   :  { %6614 = vmatmul.mubr.f32.vlgmr.msra.gmra.mxu0 %v5453_v52  ;;  %6621 = vmatprep.subr.mxu0 %v6724_v35 }
 0x496   :  { %6622 = vmatpush3.msra.mxu0 %v5491_v5  ;;  %6623 = vmatprep.mubr.msk.f32.mxu0 %vm6725_vm2, %v6724_v35  ;;  %v5492_v54 = vand.u32 4294901760, %v5491_v5 }
 0x497   :  { %6631 = vmatprep.subr.mxu0 %v6724_v35 }
 0x498   :  { %v5493_v0 = vsub.f32 %v5491_v5, %v5492_v54 }
 0x499   :  { %6624 = vmatmul.mubr.f32.vlgmr.msra.gmra.mxu0 %v5450_v50 }
 0x49a   :  { %6632 = vmatpush3.msra.mxu0 %v5492_v54  ;;  %v5494_v1 = vand.u32 4294901760, %v5493_v0  ;;  %6633 = vmatprep.mubr.msk.f32.mxu0 %vm6725_vm2, %v6724_v35 }
 0x49c   :  { %6617 = vmatpush3.msra.mxu1 %v5494_v1 }
 0x49d   :  { %6619 = vmatmul.mubr.f32.vlgmr.msra.gmra.mxu1 %v5449_v36  ;;  %6626 = vmatprep.subr.mxu1 %v6724_v35 }
 0x49e   :  { %6627 = vmatpush3.msra.mxu1 %v5414_v4  ;;  %6628 = vmatprep.mubr.msk.f32.mxu1 %vm6725_vm2, %v6724_v35 }
 0x49f   :  { %6636 = vmatprep.subr.mxu1 %v6724_v35  ;;  %6634 = vmatmul.mubr.f32.vlgmr.msra.gmra.mxu0 %v5449_v36 }
 0x4a1   :  { %6629 = vmatmul.mubr.f32.vlgmr.msra.gmra.mxu1 %v5451_v48 }
 0x4a2   :  { %6637 = vmatpush3.msra.mxu1 %v5414_v4  ;;  %6638 = vmatprep.mubr.msk.f32.mxu1 %vm6725_vm2, %v6724_v35 }
 0x4a5   :  { %6639 = vmatmul.mubr.f32.vlgmr.msra.gmra.mxu1 %v5449_v36 }
 0x536   :  { %v5006_v55 = vpop.f32.mrf.mxu0 }
 0x538   :  { %v6585_v6 = vpop.f32.mrf.mxu0 }
 0x53a   :  { %v5156_v8 = vpop.f32.mrf.mxu0 }
 0x53c   :  { %v6595_v9 = vpop.f32.mrf.mxu0 }
 0x53e   :  { %v5082_v11 = vpop.f32.mrf.mxu1 }
 0x53f   :  { %v5083_v14 = vadd.f32 %v5082_v11, %v5006_v55 }
 0x540   :  { %v6590_v12 = vpop.f32.mrf.mxu1  ;;  %v5304_v13 = vpop.f32.mrf.mxu0 }
 0x541   :  { %v5157_v29 = vadd.f32 %v5156_v8, %v5083_v14 }
 0x542   :  { %v5230_v15 = vpop.f32.mrf.mxu1  ;;  %v6605_v16 = vpop.f32.mrf.mxu0 }
 0x543   :  { %v5231_v30 = vadd.f32 %v5230_v15, %v5157_v29 }
 0x544   :  { %v6600_v17 = vpop.f32.mrf.mxu1 }
 0x545   :  { %v5305_v32 = vadd.f32 %v5304_v13, %v5231_v30 }
 0x546   :  { %v5376_v23 = vpop.f32.mrf.mxu1 }
 0x547   :  { %v5377_v35 = vadd.f32 %v5376_v23, %v5305_v32 }
 0x548   :  { %v6610_v28 = vpop.f32.mrf.mxu1 }
 0x555   :  { %v5455_v33 = vpop.f32.mrf.mxu0 }
 0x556   :  { %v5456_v57 = vadd.f32 %v5455_v33, %v5377_v35 }
 0x557   :  { %v6615_v38 = vpop.f32.mrf.mxu0 }
 0x559   :  { %v5605_v39 = vpop.f32.mrf.mxu0 }
 0x55b   :  { %v6625_v10 = vpop.f32.mrf.mxu0 }
 0x55d   :  { %v5531_v20 = vpop.f32.mrf.mxu1 }
 0x55e   :  { %v5532_v27 = vadd.f32 %v5531_v20, %v5456_v57 }
 0x55f   :  { %v6620_v40 = vpop.f32.mrf.mxu1  ;;  %v5753_v42 = vpop.f32.mrf.mxu0 }
 0x560   :  { %v5606_v43 = vadd.f32 %v5605_v39, %v5532_v27 }
 0x561   :  { %v5679_v44 = vpop.f32.mrf.mxu1  ;;  %v6635_v7 = vpop.f32.mrf.mxu0 }
 0x562   :  { %v5680_v21 = vadd.f32 %v5679_v44, %v5606_v43 }
 0x563   :  { %v6630_v46 = vpop.f32.mrf.mxu1 }
 0x564   :  { %v5754_v62 = vadd.f32 %v5753_v42, %v5680_v21 }
 0x565   :  { %v5825_v34 = vpop.f32.mrf.mxu1 }
 0x566   :  { %v5826_v31 = vadd.f32 %v5825_v34, %v5754_v62 }
 0x567   :  { %v6640_v2 = vpop.f32.mrf.mxu1 }
 0x568   :  { %v5829_v24 = vadd.f32 %v5826_v31, %v7533_v18 }
 0x56a   :  { %v5831_v36 = vmul.f32 1.442695, %v5829_v24  ;;  %vm5830_vm11 = vcmp.gt.f32.partialorder %v5829_v24, 20.0 }
 0x56c   :  { %6694 = vpow2.f32 %v5831_v36 }
 0x579   :  { %v6695_v37 = vpop.eup %6694 }
 0x57a   :  { %v5833_v19 = vadd.f32 1.0, %v6695_v37  ;;  %v5836_v49 = vmul.f32 -0.5, %v6695_v37  ;;  %v5839_v51 = vand.u32 2147483647, %v6695_v37 }
 0x57c   :  { %6696 = vlog2.f32 %v5833_v19  ;;  %v5837_v50 = vadd.f32 1.0, %v5836_v49  ;;  %vm5840_vm2 = vcmp.lt.f32.partialorder %v5839_v51, 0.0004427343 }
 0x57e   :  { %v5838_v59 = vmul.f32 %v6695_v37, %v5837_v50 }
 0x589   :  { %v6697_v26 = vpop.eup %6696 }
 0x58a   :  { %v5835_v58 = vmul.f32 0.6931472, %v6697_v26 }
 0x58c   :  { %v5841_v45 = vsel %vm5840_vm2, %v5838_v59, %v5835_v58 }
 0x58d   :  { %v5842_v48 = vsel %vm5830_vm11, %v5829_v24, %v5841_v45 }
 0x58e   :  { %5843 = vst [vmem:[%s7580_s3] sm:$0x1] %v5842_v48 }
 0x58f   :  { %5848 = vsyncpa [#allocation3], 1 }

// kernel: dissipation_forward.1
= control target key start
LH: loop header
LB: loop body
LE: loop exit
PB: predicated region body
PF: predicated region fallthrough
CT: control target
= control target key end

     0   :  { %8 = vsyncpa [#allocation3], 0  ;;  %s1423_s12 = smov [#allocation2]   ;;  %s1566_s0 = inlined_call_operand.hbm [shape: f32[192,128], index: 0, kind: input, shape index: {}]   ;;  %s1567_s1 = inlined_call_operand.vmem [shape: f32[3,128], index: 1, kind: input, shape index: {}]   ;;  %s1568_s2 = inlined_call_operand.vmem [shape: f32[2,128], index: 2, kind: input, shape index: {}]   ;;  %s1569_s3 = inlined_call_operand.vmem [shape: f32[1,128], index: 3, kind: output, shape index: {}]  }
   0x1   :  { %s14_s13 = sshll.u32 %s1423_s12, 4  ;;  %s15_s13 = int_to_ptr.vmem [resolvable:$true] %s14_s13 }
   0x2   :  { %s1409_s14 = scalar_lea.vmem %s15_s13, 3072  ;;  %p1414_p1 = scmp.lt.s32.totalorder %s15_s13, %s15_s13 }
   0x3   :  { %p1410_p0 = scmp.ne.s32.totalorder %s15_s13, %s1409_s14  ;;  %p1415_p2 = scmp.lt.s32.totalorder %s1409_s14, %s1409_s14 }
   0x5   :  { %p1416_p3 = por %p1415_p2, %p1414_p1 }
   0x7   :  { %p1417_p4 = pnand %p1416_p3, %p1410_p0 }
   0x9   :  { %1420 = shalt.err (!%p1417_p4)
}
   0xa   :  { %s1424_s15 = smov 128   ;;  %s1425_s16 = smov 8  }
   0xb   :  { %20 = dma.hbm_to_vmem [thread:$0]  %s1566_s0, 3072, %s15_s13, [#allocation3], %s1424_s15, %s1424_s15, %s1425_s16  }
   0xc   :  { %1421 = dma.done.wait [#allocation3], 3072  }
   0xd   :  { %1422 = vsyncadd [#allocation3], 4294964224  ;;  %vm47_vm0 = vcmask 1042432   ;;  %vm34_vm1 = vcmask 23552   ;;  %v28_v0 = vld [vmem:[%s1567_s1] sm:$0x7] }
   0xe   :  { %v30_v1 = vld [vmem:[#allocation2] sm:$0xff]  ;;  %v31_v2 = vld [vmem:[#allocation2 + $0x8] sm:$0xff]  ;;  %1250 = vmatprep.subr.msk.mxu0 %vm47_vm0, %v28_v0  ;;  %v32_v3 = vld [vmem:[#allocation2 + $0x10] sm:$0xff]  ;;  %v1426_v5 = vmov 0.0   ;;  %vm1427_vm2 = vmmov 0   ;;  %vm168_vm3 = vcmask 1041408  }
   0xf   :  { %1252 = vmatprep.mubr.msk.f32.mxu0 %vm34_vm1, %v30_v1  ;;  %1251 = vmatpush3.msk.msra.mxu0 %vm47_vm0, %v28_v0  ;;  %v33_v4 = vld [vmem:[#allocation2 + $0x18] sm:$0xff]  ;;  %v1463_v11 = vld [vmem:[%s1568_s2] sm:$0x3]  ;;  %v163_v14 = vld [vmem:[#allocation2 + $0x88] sm:$0xff]  ;;  %vm164_vm4 = vcmask 15360   ;;  %vm277_vm6 = vcmask 1040384  }
  0x10   :  { %1253 = vmatmul.mubr.msk.f32.vlgmr.msra.gmra.mxu0 %vm34_vm1, %v31_v2  ;;  %1258 = vmatprep.subr.mxu1 %v1426_v5  ;;  %v256_v34 = vld [vmem:[#allocation2 + $0x20] sm:$0xff]  ;;  %vm261_vm10 = vcmask 72704   ;;  %v257_v36 = vld [vmem:[#allocation2 + $0x28] sm:$0xff]  ;;  %v258_v37 = vld [vmem:[#allocation2 + $0x30] sm:$0xff]  ;;  %vm387_vm15 = vcmask 64512  }
  0x11   :  { %1255 = vmatprep.mubr.msk.f32.mxu0 %vm34_vm1, %v32_v3  ;;  %1282 = vmatprep.subr.mxu0 %v1426_v5  ;;  %v259_v38 = vld [vmem:[#allocation2 + $0x38] sm:$0xff]  ;;  %v260_v39 = vld [vmem:[#allocation2 + $0x40] sm:$0xff] }
  0x12   :  { %1260 = vmatprep.mubr.msk.f32.mxu1 %vm1427_vm2, %v1426_v5 }
  0x14   :  { %1256 = vmatmul.mubr.msk.f32.gmra.mxu0 %vm34_vm1, %v33_v4 }
  0x15   :  { %1284 = vmatprep.mubr.msk.f32.mxu0 %vm1427_vm2, %v1426_v5 }
  0xd0   :  { %v1254_v6 = vpop.f32.mrf.mxu0 }
  0xd1   :  { %v140_v7 = vmul.f32 1.442695, %v1254_v6  ;;  %vm137_vm7 = vcmp.gt.f32.partialorder %v1254_v6, 20.0 }
  0xd2   :  { %v117_v8 = vpop.f32.mrf.mxu0 }
  0xd3   :  { %1349 = vpow2.f32 %v140_v7  ;;  %v138_v9 = vmul.f32 1.442695, %v117_v8  ;;  %vm136_vm9 = vcmp.gt.f32.partialorder %v117_v8, 20.0 }
  0xd4   :  { %v1257_v10 = vpop.f32.mrf.mxu0 }
  0xd5   :  { %1351 = vpow2.f32 %v138_v9 }
  0xd6   :  { %v127_v12 = vpop.f32.mrf.mxu0 }
  0xd7   :  { %v162_v13 = vmul.f32 %v127_v12, %v1463_v11 }
  0xd9   :  { %1259 = vmatpush3.msk.msra.mxu1 %vm168_vm3, %v162_v13 }
  0xda   :  { %1261 = vmatmul.mubr.msk.f32.vlgmr.msra.gmra.mxu1 %vm164_vm4, %v163_v14  ;;  %1263 = vmatprep.subr.mxu1 %v1426_v5 }
  0xdb   :  { %1267 = vmatprep.mubr.msk.f32.mxu1 %vm1427_vm2, %v1426_v5 }
  0xe0   :  { %v1350_v15 = vpop.eup %1349 }
  0xe1   :  { %v151_v16 = vadd.f32 1.0, %v1350_v15  ;;  %v154_v19 = vmul.f32 -0.5, %v1350_v15  ;;  %v157_v22 = vand.u32 2147483647, %v1350_v15 }
  0xe2   :  { %v1352_v17 = vpop.eup %1351 }
  0xe3   :  { %1353 = vlog2.f32 %v151_v16  ;;  %v142_v18 = vadd.f32 1.0, %v1352_v17  ;;  %v145_v20 = vmul.f32 -0.5, %v1352_v17  ;;  %v155_v21 = vadd.f32 1.0, %v154_v19 }
  0xe4   :  { %v148_v25 = vand.u32 2147483647, %v1352_v17  ;;  %vm158_vm5 = vcmp.lt.f32.partialorder %v157_v22, 0.0004427343 }
  0xe5   :  { %1355 = vlog2.f32 %v142_v18  ;;  %v146_v23 = vadd.f32 1.0, %v145_v20  ;;  %v156_v27 = vmul.f32 %v1350_v15, %v155_v21 }
  0xe6   :  { %vm149_vm8 = vcmp.lt.f32.partialorder %v148_v25, 0.0004427343 }
  0xe7   :  { %v147_v31 = vmul.f32 %v1352_v17, %v146_v23  ;;  %v386_v23 = vld [vmem:[#allocation2 + $0x90] sm:$0xff] }
  0xf0   :  { %v1354_v24 = vpop.eup %1353 }
  0xf1   :  { %v153_v26 = vmul.f32 0.6931472, %v1354_v24 }
  0xf2   :  { %v1356_v28 = vpop.eup %1355 }
  0xf3   :  { %v159_v29 = vsel %vm158_vm5, %v156_v27, %v153_v26  ;;  %v144_v30 = vmul.f32 0.6931472, %v1356_v28 }
  0xf4   :  { %v161_v32 = vsel %vm137_vm7, %v1254_v6, %v159_v29 }
  0xf5   :  { %1264 = vmatpush3.msk.msra.mxu1 %vm277_vm6, %v161_v32  ;;  %v150_v33 = vsel %vm149_vm8, %v147_v31, %v144_v30  ;;  %v462_v31 = vld [vmem:[#allocation2 + $0x98] sm:$0xff] }
  0xf6   :  { %1265 = vmatprep.subr.mxu1 %v1426_v5  ;;  %v160_v35 = vsel %vm136_vm9, %v117_v8, %v150_v33 }
  0xf7   :  { %1266 = vmatpush3.msra.mxu1 %v160_v35 }
  0xf8   :  { %1268 = vmatmul.mubr.msk.f32.vlgmr.msra.gmra.mxu1 %vm261_vm10, %v256_v34  ;;  %1311 = vmatprep.subr.mxu1 %v1426_v5 }
  0xf9   :  { %1270 = vmatprep.mubr.msk.f32.mxu1 %vm1427_vm2, %v1426_v5 }
  0xfc   :  { %1271 = vmatmul.mubr.msk.f32.gmra.mxu1 %vm261_vm10, %v257_v36  ;;  %v579_v36 = vld [vmem:[#allocation2 + $0x48] sm:$0xff] }
  0xfd   :  { %1273 = vmatprep.mubr.msk.f32.mxu1 %vm1427_vm2, %v1426_v5 }
 0x100   :  { %1274 = vmatmul.mubr.msk.f32.gmra.mxu1 %vm261_vm10, %v258_v37 }
 0x101   :  { %1276 = vmatprep.mubr.msk.f32.mxu1 %vm1427_vm2, %v1426_v5 }
 0x104   :  { %1277 = vmatmul.mubr.msk.f32.gmra.mxu1 %vm261_vm10, %v259_v38  ;;  %v580_v38 = vld [vmem:[#allocation2 + $0x50] sm:$0xff] }
 0x105   :  { %1279 = vmatprep.mubr.msk.f32.mxu1 %vm1427_vm2, %v1426_v5 }
 0x108   :  { %1280 = vmatmul.mubr.msk.f32.gmra.mxu1 %vm261_vm10, %v260_v39  ;;  %v581_v39 = vld [vmem:[#allocation2 + $0x58] sm:$0xff] }
 0x109   :  { %1313 = vmatprep.mubr.msk.f32.mxu1 %vm1427_vm2, %v1426_v5 }
 0x19a   :  { %v238_v40 = vpop.f32.mrf.mxu1 }
 0x19b   :  { %v242_v42 = vadd.f32 %v1257_v10, %v238_v40  ;;  %v582_v40 = vld [vmem:[#allocation2 + $0x60] sm:$0xff] }
 0x19c   :  { %v1262_v41 = vpop.f32.mrf.mxu1 }
 0x19d   :  { %v244_v43 = vmul.f32 1.442695, %v242_v42  ;;  %vm243_vm13 = vcmp.gt.f32.partialorder %v242_v42, 20.0 }
 0x19f   :  { %1357 = vpow2.f32 %v244_v43  ;;  %v583_v43 = vld [vmem:[#allocation2 + $0x68] sm:$0xff] }
 0x1ac   :  { %v1358_v48 = vpop.eup %1357 }
 0x1ad   :  { %v246_v51 = vadd.f32 1.0, %v1358_v48  ;;  %v249_v61 = vmul.f32 -0.5, %v1358_v48  ;;  %v252_v3 = vand.u32 2147483647, %v1358_v48 }
 0x1af   :  { %v250_v2 = vadd.f32 1.0, %v249_v61  ;;  %vm253_vm11 = vcmp.lt.f32.partialorder %v252_v3, 0.0004427343 }
 0x1b1   :  { %v251_v7 = vmul.f32 %v1358_v48, %v250_v2 }
 0x1b8   :  { %v347_v44 = vpop.f32.mrf.mxu1 }
 0x1b9   :  { %v372_v45 = vmul.f32 1.442695, %v347_v44  ;;  %vm371_vm14 = vcmp.gt.f32.partialorder %v347_v44, 20.0 }
 0x1ba   :  { %v1269_v46 = vpop.f32.mrf.mxu1 }
 0x1bb   :  { %1359 = vpow2.f32 %v372_v45 }
 0x1bc   :  { %v1489_v47 = vpop.f32.mrf.mxu1 }
 0x1bd   :  { %v555_v49 = vmul.f32 1.442695, %v1489_v47  ;;  %vm553_vm7 = vcmp.gt.f32.partialorder %v1489_v47, 20.0 }
 0x1be   :  { %v1272_v50 = vpop.f32.mrf.mxu1 }
 0x1bf   :  { %1361 = vpow2.f32 %v555_v49 }
 0x1c0   :  { %v1492_v52 = vpop.f32.mrf.mxu1 }
 0x1c1   :  { %v557_v53 = vmul.f32 1.442695, %v1492_v52  ;;  %vm554_vm5 = vcmp.gt.f32.partialorder %v1492_v52, 20.0 }
 0x1c2   :  { %v1275_v54 = vpop.f32.mrf.mxu1 }
 0x1c3   :  { %1363 = vpow2.f32 %v557_v53 }
 0x1c4   :  { %1365 = vlog2.f32 %v246_v51  ;;  %v362_v55 = vpop.f32.mrf.mxu1 }
 0x1c5   :  { %v385_v22 = vmul.f32 %v362_v55, %v1463_v11 }
 0x1c6   :  { %v1278_v56 = vpop.f32.mrf.mxu1 }
 0x1c8   :  { %v1360_v57 = vpop.eup %1359  ;;  %v367_v41 = vpop.f32.mrf.mxu1 }
 0x1c9   :  { %v374_v58 = vadd.f32 1.0, %v1360_v57  ;;  %v377_v0 = vmul.f32 -0.5, %v1360_v57  ;;  %v380_v8 = vand.u32 2147483647, %v1360_v57 }
 0x1cb   :  { %1367 = vlog2.f32 %v374_v58  ;;  %v378_v6 = vadd.f32 1.0, %v377_v0  ;;  %vm381_vm12 = vcmp.lt.f32.partialorder %v380_v8, 0.0004427343 }
 0x1cc   :  { %v1362_v59 = vpop.eup %1361 }
 0x1cd   :  { %v559_v60 = vadd.f32 1.0, %v1362_v59  ;;  %v379_v13 = vmul.f32 %v1360_v57, %v378_v6  ;;  %v562_v15 = vmul.f32 -0.5, %v1362_v59  ;;  %v565_v26 = vand.u32 2147483647, %v1362_v59 }
 0x1cf   :  { %1369 = vlog2.f32 %v559_v60  ;;  %v563_v24 = vadd.f32 1.0, %v562_v15  ;;  %vm566_vm1 = vcmp.lt.f32.partialorder %v565_v26, 0.0004427343 }
 0x1d0   :  { %v1364_v62 = vpop.eup %1363 }
 0x1d1   :  { %v1366_v63 = vpop.eup %1365  ;;  %v568_v1 = vadd.f32 1.0, %v1364_v62  ;;  %v571_v14 = vmul.f32 -0.5, %v1364_v62  ;;  %v574_v25 = vand.u32 2147483647, %v1364_v62  ;;  %v564_v32 = vmul.f32 %v1362_v59, %v563_v24 }
 0x1d2   :  { %v248_v4 = vmul.f32 0.6931472, %v1366_v63 }
 0x1d3   :  { %1371 = vlog2.f32 %v568_v1  ;;  %v572_v21 = vadd.f32 1.0, %v571_v14  ;;  %vm575_vm0 = vcmp.lt.f32.partialorder %v574_v25, 0.0004427343 }
 0x1d4   :  { %v254_v10 = vsel %vm253_vm11, %v251_v7, %v248_v4 }
 0x1d5   :  { %v255_v18 = vsel %vm243_vm13, %v242_v42, %v254_v10  ;;  %v573_v30 = vmul.f32 %v1364_v62, %v572_v21  ;;  %v1281_v42 = vpop.f32.mrf.mxu1 }
 0x1d8   :  { %v1368_v9 = vpop.eup %1367 }
 0x1d9   :  { %v376_v12 = vmul.f32 0.6931472, %v1368_v9 }
 0x1db   :  { %v382_v16 = vsel %vm381_vm12, %v379_v13, %v376_v12 }
 0x1dc   :  { %v1370_v17 = vpop.eup %1369  ;;  %v383_v19 = vsel %vm371_vm14, %v347_v44, %v382_v16 }
 0x1dd   :  { %v384_v20 = vmul.f32 %v383_v19, %v255_v18  ;;  %v561_v27 = vmul.f32 0.6931472, %v1370_v17 }
 0x1df   :  { %1283 = vmatpush3.msra.mxu0 %v384_v20  ;;  %v567_v34 = vsel %vm566_vm1, %v564_v32, %v561_v27 }
 0x1e0   :  { %v1372_v28 = vpop.eup %1371  ;;  %1285 = vmatmul.mubr.msk.f32.vlgmr.msra.gmra.mxu0 %vm387_vm15, %v386_v23  ;;  %1287 = vmatprep.subr.mxu0 %v1426_v5  ;;  %v577_v37 = vsel %vm553_vm7, %v1489_v47, %v567_v34 }
 0x1e1   :  { %v570_v29 = vmul.f32 0.6931472, %v1372_v28  ;;  %1288 = vmatpush3.msk.msra.mxu0 %vm168_vm3, %v385_v22  ;;  %1289 = vmatprep.mubr.msk.f32.mxu0 %vm1427_vm2, %v1426_v5 }
 0x1e2   :  { %1292 = vmatprep.subr.mxu0 %v1426_v5 }
 0x1e3   :  { %v576_v33 = vsel %vm575_vm0, %v573_v30, %v570_v29  ;;  %v707_v30 = vld [vmem:[#allocation2 + $0xa0] sm:$0xff] }
 0x1e4   :  { %v578_v35 = vsel %vm554_vm5, %v1492_v52, %v576_v33  ;;  %1290 = vmatmul.mubr.msk.f32.vlgmr.msra.gmra.mxu0 %vm164_vm4, %v462_v31 }
 0x1e5   :  { %1293 = vmatpush3.msk.msra.mxu0 %vm277_vm6, %v578_v35  ;;  %1296 = vmatprep.mubr.msk.f32.mxu0 %vm1427_vm2, %v1426_v5 }
 0x1e6   :  { %1294 = vmatprep.subr.mxu0 %v1426_v5 }
 0x1e7   :  { %1295 = vmatpush3.msra.mxu0 %v577_v37 }
 0x1e8   :  { %1297 = vmatmul.mubr.msk.f32.vlgmr.msra.gmra.mxu0 %vm261_vm10, %v579_v36  ;;  %1334 = vmatprep.subr.mxu0 %v1426_v5 }
 0x1e9   :  { %1299 = vmatprep.mubr.msk.f32.mxu0 %vm1427_vm2, %v1426_v5 }
 0x1ec   :  { %1300 = vmatmul.mubr.msk.f32.gmra.mxu0 %vm261_vm10, %v580_v38  ;;  %v782_v38 = vld [vmem:[#allocation2 + $0xa8] sm:$0xff] }
 0x1ed   :  { %1302 = vmatprep.mubr.msk.f32.mxu0 %vm1427_vm2, %v1426_v5 }
 0x1f0   :  { %1303 = vmatmul.mubr.msk.f32.gmra.mxu0 %vm261_vm10, %v581_v39 }
 0x1f1   :  { %1305 = vmatprep.mubr.msk.f32.mxu0 %vm1427_vm2, %v1426_v5 }
 0x1f4   :  { %1306 = vmatmul.mubr.msk.f32.gmra.mxu0 %vm261_vm10, %v582_v40 }
 0x1f5   :  { %1308 = vmatprep.mubr.msk.f32.mxu0 %vm1427_vm2, %v1426_v5 }
 0x1f8   :  { %1309 = vmatmul.mubr.msk.f32.gmra.mxu0 %vm261_vm10, %v583_v43  ;;  %v899_v43 = vld [vmem:[#allocation2 + $0x70] sm:$0xff] }
 0x1f9   :  { %1336 = vmatprep.mubr.msk.f32.mxu0 %vm1427_vm2, %v1426_v5 }
 0x2a0   :  { %v457_v44 = vpop.f32.mrf.mxu0 }
 0x2a1   :  { %v461_v46 = vadd.f32 %v457_v44, %v367_v41 }
 0x2a2   :  { %v1286_v45 = vpop.f32.mrf.mxu0 }
 0x2a3   :  { %v900_v45 = vld [vmem:[#allocation2 + $0x78] sm:$0xff] }
 0x2a4   :  { %v535_v47 = vpop.f32.mrf.mxu0 }
 0x2a5   :  { %v539_v48 = vadd.f32 %v535_v47, %v461_v46 }
 0x2a6   :  { %v1291_v49 = vpop.f32.mrf.mxu0 }
 0x2a7   :  { %v541_v50 = vmul.f32 1.442695, %v539_v48  ;;  %vm540_vm11 = vcmp.gt.f32.partialorder %v539_v48, 20.0 }
 0x2a8   :  { %v668_v51 = vpop.f32.mrf.mxu0 }
 0x2a9   :  { %1373 = vpow2.f32 %v541_v50  ;;  %v693_v52 = vmul.f32 1.442695, %v668_v51  ;;  %vm692_vm12 = vcmp.gt.f32.partialorder %v668_v51, 20.0 }
 0x2aa   :  { %v1298_v53 = vpop.f32.mrf.mxu0 }
 0x2ab   :  { %1375 = vpow2.f32 %v693_v52 }
 0x2ac   :  { %v1527_v54 = vpop.f32.mrf.mxu0 }
 0x2ad   :  { %v875_v55 = vmul.f32 1.442695, %v1527_v54  ;;  %vm873_vm1 = vcmp.gt.f32.partialorder %v1527_v54, 20.0 }
 0x2ae   :  { %v1301_v56 = vpop.f32.mrf.mxu0 }
 0x2af   :  { %1377 = vpow2.f32 %v875_v55 }
 0x2b0   :  { %v1530_v57 = vpop.f32.mrf.mxu0 }
 0x2b1   :  { %v877_v58 = vmul.f32 1.442695, %v1530_v57  ;;  %vm874_vm0 = vcmp.gt.f32.partialorder %v1530_v57, 20.0 }
 0x2b2   :  { %v1304_v59 = vpop.f32.mrf.mxu0 }
 0x2b3   :  { %1379 = vpow2.f32 %v877_v58 }
 0x2b4   :  { %v683_v60 = vpop.f32.mrf.mxu0 }
 0x2b5   :  { %v706_v29 = vmul.f32 %v683_v60, %v1463_v11 }
 0x2b6   :  { %v1374_v61 = vpop.eup %1373  ;;  %v1307_v62 = vpop.f32.mrf.mxu0 }
 0x2b7   :  { %v543_v63 = vadd.f32 1.0, %v1374_v61  ;;  %v546_v4 = vmul.f32 -0.5, %v1374_v61  ;;  %v549_v10 = vand.u32 2147483647, %v1374_v61 }
 0x2b8   :  { %v1376_v0 = vpop.eup %1375  ;;  %v688_v46 = vpop.f32.mrf.mxu0 }
 0x2b9   :  { %1381 = vlog2.f32 %v543_v63  ;;  %v695_v1 = vadd.f32 1.0, %v1376_v0  ;;  %v698_v7 = vmul.f32 -0.5, %v1376_v0  ;;  %v547_v9 = vadd.f32 1.0, %v546_v4 }
 0x2ba   :  { %v701_v14 = vand.u32 2147483647, %v1376_v0  ;;  %vm550_vm8 = vcmp.lt.f32.partialorder %v549_v10, 0.0004427343  ;;  %v1310_v47 = vpop.f32.mrf.mxu0 }
 0x2bb   :  { %1383 = vlog2.f32 %v695_v1  ;;  %v699_v12 = vadd.f32 1.0, %v698_v7  ;;  %v548_v16 = vmul.f32 %v1374_v61, %v547_v9  ;;  %v1010_v61 = vld [vmem:[#allocation2 + $0xb8] sm:$0xff] }
 0x2bc   :  { %v1378_v2 = vpop.eup %1377  ;;  %vm702_vm9 = vcmp.lt.f32.partialorder %v701_v14, 0.0004427343 }
 0x2bd   :  { %v879_v3 = vadd.f32 1.0, %v1378_v2  ;;  %v882_v18 = vmul.f32 -0.5, %v1378_v2  ;;  %v700_v21 = vmul.f32 %v1376_v0, %v699_v12  ;;  %v885_v33 = vand.u32 2147483647, %v1378_v2 }
 0x2bf   :  { %1385 = vlog2.f32 %v879_v3  ;;  %v883_v31 = vadd.f32 1.0, %v882_v18  ;;  %vm886_vm14 = vcmp.lt.f32.partialorder %v885_v33, 0.0004427343 }
 0x2c0   :  { %v1380_v6 = vpop.eup %1379 }
 0x2c1   :  { %v888_v8 = vadd.f32 1.0, %v1380_v6  ;;  %v891_v22 = vmul.f32 -0.5, %v1380_v6  ;;  %v894_v32 = vand.u32 2147483647, %v1380_v6  ;;  %v884_v39 = vmul.f32 %v1378_v2, %v883_v31 }
 0x2c3   :  { %1387 = vlog2.f32 %v888_v8  ;;  %v892_v28 = vadd.f32 1.0, %v891_v22  ;;  %vm895_vm13 = vcmp.lt.f32.partialorder %v894_v32, 0.0004427343 }
 0x2c5   :  { %v893_v37 = vmul.f32 %v1380_v6, %v892_v28 }
 0x2c6   :  { %v1382_v13 = vpop.eup %1381 }
 0x2c7   :  { %v545_v15 = vmul.f32 0.6931472, %v1382_v13 }
 0x2c8   :  { %v1384_v17 = vpop.eup %1383 }
 0x2c9   :  { %v551_v19 = vsel %vm550_vm8, %v548_v16, %v545_v15  ;;  %v697_v20 = vmul.f32 0.6931472, %v1384_v17 }
 0x2ca   :  { %v552_v25 = vsel %vm540_vm11, %v539_v48, %v551_v19  ;;  %v901_v48 = vld [vmem:[#allocation2 + $0x80] sm:$0xff] }
 0x2cb   :  { %v703_v23 = vsel %vm702_vm9, %v700_v21, %v697_v20  ;;  %v1009_v20 = vld [vmem:[#allocation2 + $0xb0] sm:$0xff] }
 0x2cc   :  { %v1386_v24 = vpop.eup %1385  ;;  %v704_v26 = vsel %vm692_vm12, %v668_v51, %v703_v23 }
 0x2cd   :  { %v705_v27 = vmul.f32 %v704_v26, %v552_v25  ;;  %v881_v34 = vmul.f32 0.6931472, %v1386_v24 }
 0x2cf   :  { %1312 = vmatpush3.msra.mxu1 %v705_v27  ;;  %v887_v41 = vsel %vm886_vm14, %v884_v39, %v881_v34 }
 0x2d0   :  { %v1388_v35 = vpop.eup %1387  ;;  %1314 = vmatmul.mubr.msk.f32.vlgmr.msra.gmra.mxu1 %vm387_vm15, %v707_v30  ;;  %1316 = vmatprep.subr.mxu1 %v1426_v5  ;;  %v897_v44 = vsel %vm873_vm1, %v1527_v54, %v887_v41 }
 0x2d1   :  { %v890_v36 = vmul.f32 0.6931472, %v1388_v35  ;;  %1317 = vmatpush3.msk.msra.mxu1 %vm168_vm3, %v706_v29  ;;  %1318 = vmatprep.mubr.msk.f32.mxu1 %vm1427_vm2, %v1426_v5 }
 0x2d2   :  { %1321 = vmatprep.subr.mxu1 %v1426_v5 }
 0x2d3   :  { %v896_v40 = vsel %vm895_vm13, %v893_v37, %v890_v36 }
 0x2d4   :  { %v898_v42 = vsel %vm874_vm0, %v1530_v57, %v896_v40  ;;  %1319 = vmatmul.mubr.msk.f32.vlgmr.msra.gmra.mxu1 %vm164_vm4, %v782_v38 }
 0x2d5   :  { %1322 = vmatpush3.msk.msra.mxu1 %vm277_vm6, %v898_v42  ;;  %1325 = vmatprep.mubr.msk.f32.mxu1 %vm1427_vm2, %v1426_v5 }
 0x2d6   :  { %1323 = vmatprep.subr.mxu1 %v1426_v5 }
 0x2d7   :  { %1324 = vmatpush3.msra.mxu1 %v897_v44 }
 0x2d8   :  { %1326 = vmatmul.mubr.msk.f32.vlgmr.msra.gmra.mxu1 %vm261_vm10, %v899_v43 }
 0x2d9   :  { %1328 = vmatprep.mubr.msk.f32.mxu1 %vm1427_vm2, %v1426_v5 }
 0x2dc   :  { %1329 = vmatmul.mubr.msk.f32.gmra.mxu1 %vm261_vm10, %v900_v45 }
 0x2dd   :  { %1331 = vmatprep.mubr.msk.f32.mxu1 %vm1427_vm2, %v1426_v5 }
 0x2e0   :  { %1332 = vmatmul.mubr.msk.f32.gmra.mxu1 %vm261_vm10, %v901_v48 }
 0x390   :  { %v777_v49 = vpop.f32.mrf.mxu1 }
 0x391   :  { %v781_v51 = vadd.f32 %v777_v49, %v688_v46 }
 0x392   :  { %v1315_v50 = vpop.f32.mrf.mxu1 }
 0x394   :  { %v855_v52 = vpop.f32.mrf.mxu1 }
 0x395   :  { %v859_v53 = vadd.f32 %v855_v52, %v781_v51 }
 0x396   :  { %v1320_v54 = vpop.f32.mrf.mxu1 }
 0x397   :  { %v861_v55 = vmul.f32 1.442695, %v859_v53 }
 0x398   :  { %v980_v56 = vpop.f32.mrf.mxu1 }
 0x399   :  { %1389 = vpow2.f32 %v861_v55  ;;  %v995_v57 = vmul.f32 1.442695, %v980_v56  ;;  %vm994_vm6 = vcmp.gt.f32.partialorder %v980_v56, 20.0 }
 0x39a   :  { %v1327_v58 = vpop.f32.mrf.mxu1 }
 0x39b   :  { %1391 = vpow2.f32 %v995_v57 }
 0x39c   :  { %v985_v59 = vpop.f32.mrf.mxu1 }
 0x39d   :  { %v1008_v60 = vmul.f32 %v985_v59, %v1463_v11 }
 0x39e   :  { %v1330_v62 = vpop.f32.mrf.mxu1 }
 0x39f   :  { %1335 = vmatpush3.msk.msra.mxu0 %vm168_vm3, %v1008_v60 }
 0x3a0   :  { %1337 = vmatmul.mubr.msk.f32.vlgmr.msra.gmra.mxu0 %vm164_vm4, %v1010_v61  ;;  %1339 = vmatprep.subr.mxu0 %v1426_v5  ;;  %vm860_vm4 = vcmp.gt.f32.partialorder %v859_v53, 20.0  ;;  %v990_v21 = vpop.f32.mrf.mxu1 }
 0x3a1   :  { %1341 = vmatprep.mubr.msk.f32.mxu0 %vm1427_vm2, %v1426_v5 }
 0x3a2   :  { %v1333_v22 = vpop.f32.mrf.mxu1 }
 0x3a6   :  { %v1390_v63 = vpop.eup %1389 }
 0x3a7   :  { %v863_v0 = vadd.f32 1.0, %v1390_v63  ;;  %v866_v3 = vmul.f32 -0.5, %v1390_v63  ;;  %v869_v6 = vand.u32 2147483647, %v1390_v63 }
 0x3a8   :  { %v1392_v1 = vpop.eup %1391 }
 0x3a9   :  { %1393 = vlog2.f32 %v863_v0  ;;  %v997_v2 = vadd.f32 1.0, %v1392_v1  ;;  %v1000_v4 = vmul.f32 -0.5, %v1392_v1  ;;  %v867_v11 = vadd.f32 1.0, %v866_v3 }
 0x3aa   :  { %v1003_v9 = vand.u32 2147483647, %v1392_v1  ;;  %vm870_vm3 = vcmp.lt.f32.partialorder %v869_v6, 0.0004427343 }
 0x3ab   :  { %1395 = vlog2.f32 %v997_v2  ;;  %v1001_v7 = vadd.f32 1.0, %v1000_v4  ;;  %v868_v12 = vmul.f32 %v1390_v63, %v867_v11 }
 0x3ac   :  { %vm1004_vm2 = vcmp.lt.f32.partialorder %v1003_v9, 0.0004427343 }
 0x3ad   :  { %v1002_v5 = vmul.f32 %v1392_v1, %v1001_v7 }
 0x3b6   :  { %v1394_v8 = vpop.eup %1393 }
 0x3b7   :  { %v865_v10 = vmul.f32 0.6931472, %v1394_v8 }
 0x3b8   :  { %v1396_v13 = vpop.eup %1395 }
 0x3b9   :  { %v871_v14 = vsel %vm870_vm3, %v868_v12, %v865_v10  ;;  %v999_v15 = vmul.f32 0.6931472, %v1396_v13 }
 0x3ba   :  { %v872_v17 = vsel %vm860_vm4, %v859_v53, %v871_v14 }
 0x3bb   :  { %v1005_v16 = vsel %vm1004_vm2, %v1002_v5, %v999_v15 }
 0x3bc   :  { %v1006_v18 = vsel %vm994_vm6, %v980_v56, %v1005_v16 }
 0x3bd   :  { %v1007_v19 = vmul.f32 %v1006_v18, %v872_v17 }
 0x3bf   :  { %1340 = vmatpush3.msra.mxu0 %v1007_v19 }
 0x3c0   :  { %1342 = vmatmul.mubr.msk.f32.vlgmr.msra.gmra.mxu0 %vm387_vm15, %v1009_v20 }
 0x460   :  { %v1083_v23 = vpop.f32.mrf.mxu0 }
 0x462   :  { %v1338_v24 = vpop.f32.mrf.mxu0 }
 0x480   :  { %v1156_v25 = vpop.f32.mrf.mxu0 }
 0x481   :  { %v1157_v26 = vadd.f32 %v1156_v25, %v1083_v23 }
 0x482   :  { %v1343_v27 = vpop.f32.mrf.mxu0 }
 0x483   :  { %v1160_v28 = vadd.f32 %v1157_v26, %v990_v21 }
 0x485   :  { %v1162_v29 = vmul.f32 1.442695, %v1160_v28  ;;  %vm1161_vm15 = vcmp.gt.f32.partialorder %v1160_v28, 20.0 }
 0x487   :  { %1397 = vpow2.f32 %v1162_v29 }
 0x494   :  { %v1398_v30 = vpop.eup %1397 }
 0x495   :  { %v1164_v31 = vadd.f32 1.0, %v1398_v30  ;;  %v1167_v32 = vmul.f32 -0.5, %v1398_v30  ;;  %v1170_v34 = vand.u32 2147483647, %v1398_v30 }
 0x497   :  { %1399 = vlog2.f32 %v1164_v31  ;;  %v1168_v33 = vadd.f32 1.0, %v1167_v32  ;;  %vm1171_vm10 = vcmp.lt.f32.partialorder %v1170_v34, 0.0004427343 }
 0x499   :  { %v1169_v37 = vmul.f32 %v1398_v30, %v1168_v33 }
 0x4a4   :  { %v1400_v35 = vpop.eup %1399 }
 0x4a5   :  { %v1166_v36 = vmul.f32 0.6931472, %v1400_v35 }
 0x4a7   :  { %v1172_v38 = vsel %vm1171_vm10, %v1169_v37, %v1166_v36 }
 0x4a8   :  { %v1173_v39 = vsel %vm1161_vm15, %v1160_v28, %v1172_v38 }
 0x4a9   :  { %1174 = vst [vmem:[%s1569_s3] sm:$0x1] %v1173_v39 }
 0x4aa   :  { %1179 = vsyncpa [#allocation3], 1 }

</bundles_post_ra>
